<compile_context>
chip_gen: v6e
topology: v6e:2x2x1
jax: 0.10.0
libtpu: 0.0.40
codegen_flags: <defaults>
</compile_context>

<pallas_src>
import jax
import jax.numpy as jnp
from jax import lax
from jax.experimental import pallas as pl
from jax.experimental.pallas import tpu as pltpu

EPS = 1e-5      # PyTorch BatchNorm2d default
LANES = 128     # TPU lane width
GUARD = 16      # slab guard rows (bf16 sublane packing = 16 rows / vreg)


def _round_up(v, m):
    return (v + m - 1) // m * m


def _pick_tile_h(H, target=16):
    """Largest divisor of H that is <= target."""
    for d in range(min(H, target), 0, -1):
        if H % d == 0:
            return d
    return 1


def _dense_layer_kernel(x_ref, scale_ref, shift_ref, w_ref, out_ref,
                        slab_ref, col_ref):
    """Fused BN(eval) + ReLU + 3x3 conv (pad=1) for one halo'd H tile.

    x_ref:     (1, 1, (TH+2)*W, Cp)   flattened (TH+2)-row window, native dtype
    scale_ref: (1, Cp)  f32           gamma * rsqrt(running_var + eps)
    shift_ref: (1, Cp)  f32           beta - running_mean * scale
    w_ref:     (3, 3*Cp, Coutp) bf16  conv weights grouped by ky, rows (kx, cin)
    out_ref:   (1, 1, TH*W, Coutp)    conv output only (concat done by caller)
    slab_ref:  (2*GUARD + (TH+2)*W, Cp) bf16  post-activation slab (+guards)
    col_ref:   (2, TH*W, 3*Cp) bf16   2-slot per-ky staging buffer
    """
    rows_in = x_ref.shape[2]                  # (TH+2)*W
    Cp = x_ref.shape[3]
    THW = out_ref.shape[2]                    # TH*W
    W = (rows_in - THW) // 2
    guard = (slab_ref.shape[0] - rows_in) // 2

    hi = pl.program_id(1)

    # BatchNorm (inference, folded scale/shift) + ReLU — f32 on the VPU; cast
    # once to bf16 at the slab store (single cast instead of one per tap).
    act = jnp.maximum(
        x_ref[0, 0].astype(jnp.float32) * scale_ref[0] + shift_ref[0], 0.0)
    slab_ref[guard:guard + rows_in, :] = act.astype(jnp.bfloat16)

    # Conv zero-padding applies AFTER BN+ReLU, but BN+ReLU of a zero input row
    # is max(shift, 0) != 0 — so at the true image top/bottom the halo row must
    # be re-zeroed post-activation.
    zrow = jnp.zeros((W, Cp), jnp.bfloat16)

    @pl.when(hi == 0)
    def _():
        slab_ref[guard:guard + W, :] = zrow

    @pl.when(hi == pl.num_programs(1) - 1)
    def _():
        slab_ref[guard + rows_in - W:guard + rows_in, :] = zrow

    # x-wrap masks for the dx = -1 / +1 taps (dx = 0 taps need no mask; the
    # y / corner out-of-range taps are absorbed by the guard rows + masks).
    x_idx = lax.broadcasted_iota(jnp.int32, (THW, 1), 0) % W
    mask_l = x_idx >= 1            # tap dx = -1 valid
    mask_r = x_idx < (W - 1)       # tap dx = +1 valid

    # 3 accumulating MXU matmuls (K = 3*Cp each) over shifted slab views.
    # Double-buffered col staging lets ky+1's tap stores co-issue with ky's dot.
    acc = None
    for ky in range(3):
        base = guard + ky * W      # slab row of tap (ky, dx=0) for output row 0
        s = ky % 2
        left = slab_ref[base - 1:base - 1 + THW, :]
        col_ref[s, :, 0:Cp] = jnp.where(mask_l, left, 0)
        col_ref[s, :, Cp:2 * Cp] = slab_ref[base:base + THW, :]
        right = slab_ref[base + 1:base + 1 + THW, :]
        col_ref[s, :, 2 * Cp:3 * Cp] = jnp.where(mask_r, right, 0)
        d = jnp.dot(col_ref[s], w_ref[ky], preferred_element_type=jnp.float32)
        acc = d if acc is None else acc + d

    out_ref[0, 0] = acc.astype(out_ref.dtype)


def dense_layer_forward_nhwc(x_nhwc, gamma, beta, running_mean, running_var,
                             w_oihw, *, tile_h=None):
    """NHWC fast path: (N, H, W, Cin) -> (N, H, W, Cin + Cout)."""
    N, H, W, Cin = x_nhwc.shape
    Cout, Cin_w, KH, KW = w_oihw.shape
    assert (Cin_w, KH, KW) == (Cin, 3, 3)

    Cp = _round_up(Cin, LANES)
    Coutp = _round_up(Cout, LANES)

    if tile_h is None:
        tile_h = _pick_tile_h(H)
    assert H % tile_h == 0, (H, tile_h)
    TH = tile_h
    nH = H // TH

    # Fold BN running stats into per-channel scale/shift; zero in pad lanes so
    # padded channels contribute exactly zero.
    inv = (gamma / jnp.sqrt(running_var + EPS)).astype(jnp.float32)
    scale = jnp.pad(inv, (0, Cp - Cin)).reshape(1, Cp)
    shift = jnp.pad((beta - running_mean * inv).astype(jnp.float32),
                    (0, Cp - Cin)).reshape(1, Cp)

    # Channel-pad in the NATIVE dtype (no f32 upcast) and cut halo'd H tiles:
    # (N, nH, (TH+2)*W, Cp).  The 2 duplicated rows per tile are the only extra
    # HBM traffic and make every grid step independent (no cross-step halo DMA).
    x_p = jnp.pad(x_nhwc, ((0, 0), (1, 1), (0, 0), (0, Cp - Cin)))
    x_tiles = jnp.stack(
        [x_p[:, i * TH:i * TH + TH + 2] for i in range(nH)], axis=1)
    x_tiles = x_tiles.reshape(N, nH, (TH + 2) * W, Cp)

    # OIHW -> (ky, kx, cin, cout), channel-padded, grouped by ky into
    # (3, 3*Cp, Coutp) bf16 so each ky group is one K=3*Cp MXU matmul.
    w_hwio = jnp.transpose(w_oihw, (2, 3, 1, 0)).astype(jnp.float32)
    w_p = jnp.pad(w_hwio, ((0, 0), (0, 0), (0, Cp - Cin), (0, Coutp - Cout)))
    w3 = w_p.reshape(3, 3 * Cp, Coutp).astype(jnp.bfloat16)

    # Per-step VMEM (bf16 slab + 2-slot col + in/out blocks) is a few MB at
    # DenseNet sizes, well inside the default scoped limit on v5e/v6e/v7x, so
    # no vmem_limit_bytes override is needed.
    conv_p = pl.pallas_call(
        _dense_layer_kernel,
        out_shape=jax.ShapeDtypeStruct((N, nH, TH * W, Coutp), x_nhwc.dtype),
        grid_spec=pltpu.PrefetchScalarGridSpec(
            num_scalar_prefetch=0,
            grid=(N, nH),
            in_specs=[
                pl.BlockSpec((1, 1, (TH + 2) * W, Cp),
                             lambda n, h: (n, h, 0, 0)),
                pl.BlockSpec((1, Cp), lambda n, h: (0, 0)),
                pl.BlockSpec((1, Cp), lambda n, h: (0, 0)),
                pl.BlockSpec((3, 3 * Cp, Coutp), lambda n, h: (0, 0, 0)),
            ],
            out_specs=pl.BlockSpec((1, 1, TH * W, Coutp),
                                   lambda n, h: (n, h, 0, 0)),
            scratch_shapes=[
                pltpu.VMEM((2 * GUARD + (TH + 2) * W, Cp), jnp.bfloat16),
                pltpu.VMEM((2, TH * W, 3 * Cp), jnp.bfloat16),
            ],
        ),
        compiler_params=pltpu.CompilerParams(
            dimension_semantics=("parallel", "parallel")),
    )(x_tiles, scale, shift, w3)

    conv_out = conv_p.reshape(N, H, W, Coutp)[..., :Cout]
    # Dense concat in the wrapper (lane-dense kernel stores stay untouched).
    return jnp.concatenate([x_nhwc, conv_out], axis=-1)


def dense_layer_forward(x_nchw, gamma, beta, running_mean, running_var, w_oihw,
                        *, tile_h=None):
    """PyTorch-layout entry point: (N, Cin, H, W) -> (N, Cin+Cout, H, W).

    The NCHW<->NHWC transposes are model-boundary glue only; when stacking
    dense layers keep activations NHWC and call dense_layer_forward_nhwc.
    """
    x_nhwc = jnp.transpose(x_nchw, (0, 2, 3, 1))
    out_nhwc = dense_layer_forward_nhwc(x_nhwc, gamma, beta, running_mean,
                                        running_var, w_oihw, tile_h=tile_h)
    return jnp.transpose(out_nhwc, (0, 3, 1, 2))


def _reference_forward(x_nchw, gamma, beta, running_mean, running_var, w_oihw,
                       *, quantize_bf16=False):
    """Plain-JAX reference mirroring the PyTorch module (eval-mode BN)."""
    c = x_nchw.shape[1]
    inv = 1.0 / jnp.sqrt(running_var + EPS)
    xn = (x_nchw - running_mean.reshape(1, c, 1, 1)) * inv.reshape(1, c, 1, 1)
    xn = xn * gamma.reshape(1, c, 1, 1) + beta.reshape(1, c, 1, 1)
    act = jnp.maximum(xn, 0.0)
    w = w_oihw
    if quantize_bf16:  # same operand quantization the MXU path uses (f32 accum)
        act = act.astype(jnp.bfloat16).astype(jnp.float32)
        w = w.astype(jnp.bfloat16).astype(jnp.float32)
    conv = lax.conv_general_dilated(
        act, w, window_strides=(1, 1), padding=((1, 1), (1, 1)),
        dimension_numbers=("NCHW", "OIHW", "NCHW"))
    return jnp.concatenate([x_nchw, conv], axis=1)


if __name__ == "__main__":
    key = jax.random.PRNGKey(0)
    k_x, k_w, k_g, k_b, k_m, k_v = jax.random.split(key, 6)

    N, Cin, Cout, H, W = 2, 4, 8, 16, 16

    x = jax.random.normal(k_x, (N, Cin, H, W), jnp.float32)
    w = jax.random.normal(k_w, (Cout, Cin, 3, 3), jnp.float32) * 0.1
    gamma = 1.0 + 0.1 * jax.random.normal(k_g, (Cin,), jnp.float32)
    beta = 0.1 * jax.random.normal(k_b, (Cin,), jnp.float32)
    running_mean = 0.1 * jax.random.normal(k_m, (Cin,), jnp.float32)
    running_var = jax.random.uniform(k_v, (Cin,), jnp.float32, 0.5, 1.5)

    # tile_h=8 exercises the H-tile grid axis (grid = (N, 2)).
    out = dense_layer_forward(x, gamma, beta, running_mean, running_var, w,
                              tile_h=8)
    out = jax.block_until_ready(out)
    assert out.shape == (N, Cin + Cout, H, W), out.shape

    # Tight check vs. a reference using the same bf16 operand quantization
    # (f32 accumulation) as the MXU path.
    ref_bf16 = _reference_forward(x, gamma, beta, running_mean, running_var, w,
                                  quantize_bf16=True)
    assert jnp.allclose(out, ref_bf16, atol=2e-3, rtol=2e-3), \
        float(jnp.max(jnp.abs(out - ref_bf16)))

    # Loose sanity check vs. the exact f32 PyTorch-semantics reference.
    # (Intentional deviation: conv operands are bf16-quantized on the MXU.)
    ref_f32 = _reference_forward(x, gamma, beta, running_mean, running_var, w)
    assert jnp.allclose(out, ref_f32, atol=1e-1, rtol=1e-1), \
        float(jnp.max(jnp.abs(out - ref_f32)))

    # Also check the untiled path (single H tile) for coverage.
    out1 = dense_layer_forward(x, gamma, beta, running_mean, running_var, w,
                               tile_h=16)
    out1 = jax.block_until_ready(out1)
    assert jnp.allclose(out1, ref_bf16, atol=2e-3, rtol=2e-3), \
        float(jnp.max(jnp.abs(out1 - ref_bf16)))

    print("KERNEL_OK")
</pallas_src>

<mosaic_0001>
module attributes {stable_mosaic.version = 11 : i64} {
  func.func @_dense_layer_kernel(%arg0: i32, %arg1: i32, %arg2: memref<1x1x160x128xf32, #tpu.memory_space<vmem>>, %arg3: memref<1x128xf32, #tpu.memory_space<vmem>>, %arg4: memref<1x128xf32, #tpu.memory_space<vmem>>, %arg5: memref<3x384x128xbf16, #tpu.memory_space<vmem>>, %arg6: memref<1x1x128x128xf32, #tpu.memory_space<vmem>>, %arg7: memref<192x128xbf16, #tpu.memory_space<vmem>>, %arg8: memref<2x128x384xbf16, #tpu.memory_space<vmem>>) attributes {dimension_semantics = [#tpu.dimension_semantics<parallel>, #tpu.dimension_semantics<parallel>], iteration_bounds = array<i64: 2, 2>, scalar_prefetch = 0 : i64, scratch_operands = 2 : i64, tpu.core_type = #tpu.core_type<tc>, window_params = [{transform_indices = @transform_0, window_bounds = array<i64: 1, 1, 160, 128>}, {pipeline_mode = #tpu.pipeline_mode<synchronous>, transform_indices = @transform_1, window_bounds = array<i64: 1, 128>}, {pipeline_mode = #tpu.pipeline_mode<synchronous>, transform_indices = @transform_2, window_bounds = array<i64: 1, 128>}, {pipeline_mode = #tpu.pipeline_mode<synchronous>, transform_indices = @transform_3, window_bounds = array<i64: 3, 384, 128>}, {transform_indices = @transform_4, window_bounds = array<i64: 1, 1, 128, 128>}]} {
    %c0 = arith.constant 0 : index
    %c0_0 = arith.constant 0 : index
    %c0_1 = arith.constant 0 : index
    %c0_2 = arith.constant 0 : index
    %0 = vector.load %arg2[%c0, %c0_0, %c0_1, %c0_2] : memref<1x1x160x128xf32, #tpu.memory_space<vmem>>, vector<1x1x160x128xf32>
    %1 = vector.shape_cast %0 : vector<1x1x160x128xf32> to vector<160x128xf32>
    %c0_3 = arith.constant 0 : index
    %c0_4 = arith.constant 0 : index
    %2 = vector.load %arg3[%c0_3, %c0_4] : memref<1x128xf32, #tpu.memory_space<vmem>>, vector<1x128xf32>
    %3 = vector.shape_cast %2 : vector<1x128xf32> to vector<128xf32>
    %4 = vector.shape_cast %3 : vector<128xf32> to vector<1x128xf32>
    %5 = vector.broadcast %4 : vector<1x128xf32> to vector<160x128xf32>
    %6 = arith.mulf %1, %5 : vector<160x128xf32>
    %c0_5 = arith.constant 0 : index
    %c0_6 = arith.constant 0 : index
    %7 = vector.load %arg4[%c0_5, %c0_6] : memref<1x128xf32, #tpu.memory_space<vmem>>, vector<1x128xf32>
    %8 = vector.shape_cast %7 : vector<1x128xf32> to vector<128xf32>
    %9 = vector.shape_cast %8 : vector<128xf32> to vector<1x128xf32>
    %10 = vector.broadcast %9 : vector<1x128xf32> to vector<160x128xf32>
    %11 = arith.addf %6, %10 : vector<160x128xf32>
    %cst = arith.constant 0.000000e+00 : f32
    %12 = vector.broadcast %cst : f32 to vector<160x128xf32>
    %13 = arith.maximumf %11, %12 : vector<160x128xf32>
    %14 = arith.truncf %13 : vector<160x128xf32> to vector<160x128xbf16>
    %c16 = arith.constant 16 : index
    %c0_7 = arith.constant 0 : index
    %15 = vector.load %arg7[%c16, %c0_7] : memref<192x128xbf16, #tpu.memory_space<vmem>>, vector<160x128xbf16>
    tpu.vector_store %arg7[%c16, %c0_7], %14 {strides = array<i32>} : memref<192x128xbf16, #tpu.memory_space<vmem>>, vector<160x128xbf16>,
    %cst_8 = arith.constant 0.000000e+00 : bf16
    %16 = vector.broadcast %cst_8 : bf16 to vector<16x128xbf16>
    %c0_i32 = arith.constant 0 : i32
    %17 = arith.cmpi eq, %arg1, %c0_i32 : i32
    %18 = arith.extui %17 : i1 to i32
    %c0_i32_9 = arith.constant 0 : i32
    %19 = arith.cmpi ne, %18, %c0_i32_9 : i32
    scf.if %19 {
      %c16_81 = arith.constant 16 : index
      %c0_82 = arith.constant 0 : index
      %130 = vector.load %arg7[%c16_81, %c0_82] : memref<192x128xbf16, #tpu.memory_space<vmem>>, vector<16x128xbf16>
      tpu.vector_store %arg7[%c16_81, %c0_82], %16 {strides = array<i32>} : memref<192x128xbf16, #tpu.memory_space<vmem>>, vector<16x128xbf16>,
    } else {
    }
    %c1_i32 = arith.constant 1 : i32
    %20 = arith.cmpi eq, %arg1, %c1_i32 : i32
    %21 = arith.extui %20 : i1 to i32
    %c0_i32_10 = arith.constant 0 : i32
    %22 = arith.cmpi ne, %21, %c0_i32_10 : i32
    scf.if %22 {
      %c160 = arith.constant 160 : index
      %c0_81 = arith.constant 0 : index
      %130 = vector.load %arg7[%c160, %c0_81] : memref<192x128xbf16, #tpu.memory_space<vmem>>, vector<16x128xbf16>
      tpu.vector_store %arg7[%c160, %c0_81], %16 {strides = array<i32>} : memref<192x128xbf16, #tpu.memory_space<vmem>>, vector<16x128xbf16>,
    } else {
    }
    %23 = tpu.iota {dimensions = array<i32: 0>} : vector<128x1xi32>
    %c16_i32 = arith.constant 16 : i32
    %c0_i32_11 = arith.constant 0 : i32
    %24 = arith.cmpi eq, %c16_i32, %c0_i32_11 : i32
    %c1_i32_12 = arith.constant 1 : i32
    %25 = arith.select %24, %c1_i32_12, %c16_i32 : i32
    %26 = vector.broadcast %25 : i32 to vector<128x1xi32>
    %27 = arith.remsi %23, %26 : vector<128x1xi32>
    %c0_i32_13 = arith.constant 0 : i32
    %28 = vector.broadcast %c0_i32_13 : i32 to vector<128x1xi32>
    %29 = arith.cmpi ne, %27, %28 : vector<128x1xi32>
    %c0_i32_14 = arith.constant 0 : i32
    %30 = vector.broadcast %c0_i32_14 : i32 to vector<128x1xi32>
    %31 = arith.cmpi slt, %27, %30 : vector<128x1xi32>
    %c0_i32_15 = arith.constant 0 : i32
    %32 = arith.cmpi slt, %25, %c0_i32_15 : i32
    %33 = vector.broadcast %32 : i1 to vector<128x1xi1>
    %34 = vector.broadcast %33 : vector<128x1xi1> to vector<128x1xi1>
    %35 = arith.xori %31, %34 : vector<128x1xi1>
    %36 = arith.andi %35, %29 : vector<128x1xi1>
    %37 = vector.broadcast %25 : i32 to vector<128x1xi32>
    %38 = arith.addi %27, %37 : vector<128x1xi32>
    %39 = arith.select %36, %38, %27 : vector<128x1xi1>, vector<128x1xi32>
    %c1_i32_16 = arith.constant 1 : i32
    %40 = vector.broadcast %c1_i32_16 : i32 to vector<128x1xi32>
    %41 = arith.cmpi sge, %39, %40 : vector<128x1xi32>
    %c15_i32 = arith.constant 15 : i32
    %42 = vector.broadcast %c15_i32 : i32 to vector<128x1xi32>
    %43 = arith.cmpi slt, %39, %42 : vector<128x1xi32>
    %c15 = arith.constant 15 : index
    %c0_17 = arith.constant 0 : index
    %44 = vector.load %arg7[%c15, %c0_17] : memref<192x128xbf16, #tpu.memory_space<vmem>>, vector<128x128xbf16>
    %c0_i32_18 = arith.constant 0 : i32
    %45 = arith.sitofp %c0_i32_18 : i32 to bf16
    %46 = vector.shape_cast %41 : vector<128x1xi1> to vector<128x1xi1>
    %47 = vector.broadcast %46 : vector<128x1xi1> to vector<128x128xi1>
    %48 = vector.broadcast %45 : bf16 to vector<128x128xbf16>
    %49 = arith.select %47, %44, %48 : vector<128x128xi1>, vector<128x128xbf16>
    %c0_19 = arith.constant 0 : index
    %c0_20 = arith.constant 0 : index
    %c0_21 = arith.constant 0 : index
    %50 = vector.load %arg8[%c0_19, %c0_20, %c0_21] : memref<2x128x384xbf16, #tpu.memory_space<vmem>>, vector<1x128x128xbf16>
    %51 = vector.shape_cast %50 : vector<1x128x128xbf16> to vector<128x128xbf16>
    %52 = vector.shape_cast %49 : vector<128x128xbf16> to vector<1x128x128xbf16>
    tpu.vector_store %arg8[%c0_19, %c0_20, %c0_21], %52 {strides = array<i32>} : memref<2x128x384xbf16, #tpu.memory_space<vmem>>, vector<1x128x128xbf16>,
    %c16_22 = arith.constant 16 : index
    %c0_23 = arith.constant 0 : index
    %53 = vector.load %arg7[%c16_22, %c0_23] : memref<192x128xbf16, #tpu.memory_space<vmem>>, vector<128x128xbf16>
    %c0_24 = arith.constant 0 : index
    %c0_25 = arith.constant 0 : index
    %c128 = arith.constant 128 : index
    %54 = vector.load %arg8[%c0_24, %c0_25, %c128] : memref<2x128x384xbf16, #tpu.memory_space<vmem>>, vector<1x128x128xbf16>
    %55 = vector.shape_cast %54 : vector<1x128x128xbf16> to vector<128x128xbf16>
    %56 = vector.shape_cast %53 : vector<128x128xbf16> to vector<1x128x128xbf16>
    tpu.vector_store %arg8[%c0_24, %c0_25, %c128], %56 {strides = array<i32>} : memref<2x128x384xbf16, #tpu.memory_space<vmem>>, vector<1x128x128xbf16>,
    %c17 = arith.constant 17 : index
    %c0_26 = arith.constant 0 : index
    %57 = vector.load %arg7[%c17, %c0_26] : memref<192x128xbf16, #tpu.memory_space<vmem>>, vector<128x128xbf16>
    %c0_i32_27 = arith.constant 0 : i32
    %58 = arith.sitofp %c0_i32_27 : i32 to bf16
    %59 = vector.shape_cast %43 : vector<128x1xi1> to vector<128x1xi1>
    %60 = vector.broadcast %59 : vector<128x1xi1> to vector<128x128xi1>
    %61 = vector.broadcast %58 : bf16 to vector<128x128xbf16>
    %62 = arith.select %60, %57, %61 : vector<128x128xi1>, vector<128x128xbf16>
    %c0_28 = arith.constant 0 : index
    %c0_29 = arith.constant 0 : index
    %c256 = arith.constant 256 : index
    %63 = vector.load %arg8[%c0_28, %c0_29, %c256] : memref<2x128x384xbf16, #tpu.memory_space<vmem>>, vector<1x128x128xbf16>
    %64 = vector.shape_cast %63 : vector<1x128x128xbf16> to vector<128x128xbf16>
    %65 = vector.shape_cast %62 : vector<128x128xbf16> to vector<1x128x128xbf16>
    tpu.vector_store %arg8[%c0_28, %c0_29, %c256], %65 {strides = array<i32>} : memref<2x128x384xbf16, #tpu.memory_space<vmem>>, vector<1x128x128xbf16>,
    %c0_30 = arith.constant 0 : index
    %c0_31 = arith.constant 0 : index
    %c0_32 = arith.constant 0 : index
    %66 = vector.load %arg8[%c0_30, %c0_31, %c0_32] : memref<2x128x384xbf16, #tpu.memory_space<vmem>>, vector<1x128x384xbf16>
    %67 = vector.shape_cast %66 : vector<1x128x384xbf16> to vector<128x384xbf16>
    %c0_33 = arith.constant 0 : index
    %c0_34 = arith.constant 0 : index
    %c0_35 = arith.constant 0 : index
    %68 = vector.load %arg5[%c0_33, %c0_34, %c0_35] : memref<3x384x128xbf16, #tpu.memory_space<vmem>>, vector<1x384x128xbf16>
    %69 = vector.shape_cast %68 : vector<1x384x128xbf16> to vector<384x128xbf16>
    %cst_36 = arith.constant dense<0.000000e+00> : vector<128x128xf32>
    %70 = tpu.matmul %67, %69, %cst_36 {dimension_numbers = #tpu.dot_dimension_numbers<[1], [0], [0], [1], [0, 0, 1, 1], [], []>} : vector<128x384xbf16>, vector<384x128xbf16>, vector<128x128xf32> -> vector<128x128xf32>
    %c31 = arith.constant 31 : index
    %c0_37 = arith.constant 0 : index
    %71 = vector.load %arg7[%c31, %c0_37] : memref<192x128xbf16, #tpu.memory_space<vmem>>, vector<128x128xbf16>
    %c0_i32_38 = arith.constant 0 : i32
    %72 = arith.sitofp %c0_i32_38 : i32 to bf16
    %73 = vector.shape_cast %41 : vector<128x1xi1> to vector<128x1xi1>
    %74 = vector.broadcast %73 : vector<128x1xi1> to vector<128x128xi1>
    %75 = vector.broadcast %72 : bf16 to vector<128x128xbf16>
    %76 = arith.select %74, %71, %75 : vector<128x128xi1>, vector<128x128xbf16>
    %c1 = arith.constant 1 : index
    %c0_39 = arith.constant 0 : index
    %c0_40 = arith.constant 0 : index
    %77 = vector.load %arg8[%c1, %c0_39, %c0_40] : memref<2x128x384xbf16, #tpu.memory_space<vmem>>, vector<1x128x128xbf16>
    %78 = vector.shape_cast %77 : vector<1x128x128xbf16> to vector<128x128xbf16>
    %79 = vector.shape_cast %76 : vector<128x128xbf16> to vector<1x128x128xbf16>
    tpu.vector_store %arg8[%c1, %c0_39, %c0_40], %79 {strides = array<i32>} : memref<2x128x384xbf16, #tpu.memory_space<vmem>>, vector<1x128x128xbf16>,
    %c32 = arith.constant 32 : index
    %c0_41 = arith.constant 0 : index
    %80 = vector.load %arg7[%c32, %c0_41] : memref<192x128xbf16, #tpu.memory_space<vmem>>, vector<128x128xbf16>
    %c1_42 = arith.constant 1 : index
    %c0_43 = arith.constant 0 : index
    %c128_44 = arith.constant 128 : index
    %81 = vector.load %arg8[%c1_42, %c0_43, %c128_44] : memref<2x128x384xbf16, #tpu.memory_space<vmem>>, vector<1x128x128xbf16>
    %82 = vector.shape_cast %81 : vector<1x128x128xbf16> to vector<128x128xbf16>
    %83 = vector.shape_cast %80 : vector<128x128xbf16> to vector<1x128x128xbf16>
    tpu.vector_store %arg8[%c1_42, %c0_43, %c128_44], %83 {strides = array<i32>} : memref<2x128x384xbf16, #tpu.memory_space<vmem>>, vector<1x128x128xbf16>,
    %c33 = arith.constant 33 : index
    %c0_45 = arith.constant 0 : index
    %84 = vector.load %arg7[%c33, %c0_45] : memref<192x128xbf16, #tpu.memory_space<vmem>>, vector<128x128xbf16>
    %c0_i32_46 = arith.constant 0 : i32
    %85 = arith.sitofp %c0_i32_46 : i32 to bf16
    %86 = vector.shape_cast %43 : vector<128x1xi1> to vector<128x1xi1>
    %87 = vector.broadcast %86 : vector<128x1xi1> to vector<128x128xi1>
    %88 = vector.broadcast %85 : bf16 to vector<128x128xbf16>
    %89 = arith.select %87, %84, %88 : vector<128x128xi1>, vector<128x128xbf16>
    %c1_47 = arith.constant 1 : index
    %c0_48 = arith.constant 0 : index
    %c256_49 = arith.constant 256 : index
    %90 = vector.load %arg8[%c1_47, %c0_48, %c256_49] : memref<2x128x384xbf16, #tpu.memory_space<vmem>>, vector<1x128x128xbf16>
    %91 = vector.shape_cast %90 : vector<1x128x128xbf16> to vector<128x128xbf16>
    %92 = vector.shape_cast %89 : vector<128x128xbf16> to vector<1x128x128xbf16>
    tpu.vector_store %arg8[%c1_47, %c0_48, %c256_49], %92 {strides = array<i32>} : memref<2x128x384xbf16, #tpu.memory_space<vmem>>, vector<1x128x128xbf16>,
    %c1_50 = arith.constant 1 : index
    %c0_51 = arith.constant 0 : index
    %c0_52 = arith.constant 0 : index
    %93 = vector.load %arg8[%c1_50, %c0_51, %c0_52] : memref<2x128x384xbf16, #tpu.memory_space<vmem>>, vector<1x128x384xbf16>
    %94 = vector.shape_cast %93 : vector<1x128x384xbf16> to vector<128x384xbf16>
    %c1_53 = arith.constant 1 : index
    %c0_54 = arith.constant 0 : index
    %c0_55 = arith.constant 0 : index
    %95 = vector.load %arg5[%c1_53, %c0_54, %c0_55] : memref<3x384x128xbf16, #tpu.memory_space<vmem>>, vector<1x384x128xbf16>
    %96 = vector.shape_cast %95 : vector<1x384x128xbf16> to vector<384x128xbf16>
    %cst_56 = arith.constant dense<0.000000e+00> : vector<128x128xf32>
    %97 = tpu.matmul %94, %96, %cst_56 {dimension_numbers = #tpu.dot_dimension_numbers<[1], [0], [0], [1], [0, 0, 1, 1], [], []>} : vector<128x384xbf16>, vector<384x128xbf16>, vector<128x128xf32> -> vector<128x128xf32>
    %98 = arith.addf %70, %97 : vector<128x128xf32>
    %c47 = arith.constant 47 : index
    %c0_57 = arith.constant 0 : index
    %99 = vector.load %arg7[%c47, %c0_57] : memref<192x128xbf16, #tpu.memory_space<vmem>>, vector<128x128xbf16>
    %c0_i32_58 = arith.constant 0 : i32
    %100 = arith.sitofp %c0_i32_58 : i32 to bf16
    %101 = vector.shape_cast %41 : vector<128x1xi1> to vector<128x1xi1>
    %102 = vector.broadcast %101 : vector<128x1xi1> to vector<128x128xi1>
    %103 = vector.broadcast %100 : bf16 to vector<128x128xbf16>
    %104 = arith.select %102, %99, %103 : vector<128x128xi1>, vector<128x128xbf16>
    %c0_59 = arith.constant 0 : index
    %c0_60 = arith.constant 0 : index
    %c0_61 = arith.constant 0 : index
    %105 = vector.load %arg8[%c0_59, %c0_60, %c0_61] : memref<2x128x384xbf16, #tpu.memory_space<vmem>>, vector<1x128x128xbf16>
    %106 = vector.shape_cast %105 : vector<1x128x128xbf16> to vector<128x128xbf16>
    %107 = vector.shape_cast %104 : vector<128x128xbf16> to vector<1x128x128xbf16>
    tpu.vector_store %arg8[%c0_59, %c0_60, %c0_61], %107 {strides = array<i32>} : memref<2x128x384xbf16, #tpu.memory_space<vmem>>, vector<1x128x128xbf16>,
    %c48 = arith.constant 48 : index
    %c0_62 = arith.constant 0 : index
    %108 = vector.load %arg7[%c48, %c0_62] : memref<192x128xbf16, #tpu.memory_space<vmem>>, vector<128x128xbf16>
    %c0_63 = arith.constant 0 : index
    %c0_64 = arith.constant 0 : index
    %c128_65 = arith.constant 128 : index
    %109 = vector.load %arg8[%c0_63, %c0_64, %c128_65] : memref<2x128x384xbf16, #tpu.memory_space<vmem>>, vector<1x128x128xbf16>
    %110 = vector.shape_cast %109 : vector<1x128x128xbf16> to vector<128x128xbf16>
    %111 = vector.shape_cast %108 : vector<128x128xbf16> to vector<1x128x128xbf16>
    tpu.vector_store %arg8[%c0_63, %c0_64, %c128_65], %111 {strides = array<i32>} : memref<2x128x384xbf16, #tpu.memory_space<vmem>>, vector<1x128x128xbf16>,
    %c49 = arith.constant 49 : index
    %c0_66 = arith.constant 0 : index
    %112 = vector.load %arg7[%c49, %c0_66] : memref<192x128xbf16, #tpu.memory_space<vmem>>, vector<128x128xbf16>
    %c0_i32_67 = arith.constant 0 : i32
    %113 = arith.sitofp %c0_i32_67 : i32 to bf16
    %114 = vector.shape_cast %43 : vector<128x1xi1> to vector<128x1xi1>
    %115 = vector.broadcast %114 : vector<128x1xi1> to vector<128x128xi1>
    %116 = vector.broadcast %113 : bf16 to vector<128x128xbf16>
    %117 = arith.select %115, %112, %116 : vector<128x128xi1>, vector<128x128xbf16>
    %c0_68 = arith.constant 0 : index
    %c0_69 = arith.constant 0 : index
    %c256_70 = arith.constant 256 : index
    %118 = vector.load %arg8[%c0_68, %c0_69, %c256_70] : memref<2x128x384xbf16, #tpu.memory_space<vmem>>, vector<1x128x128xbf16>
    %119 = vector.shape_cast %118 : vector<1x128x128xbf16> to vector<128x128xbf16>
    %120 = vector.shape_cast %117 : vector<128x128xbf16> to vector<1x128x128xbf16>
    tpu.vector_store %arg8[%c0_68, %c0_69, %c256_70], %120 {strides = array<i32>} : memref<2x128x384xbf16, #tpu.memory_space<vmem>>, vector<1x128x128xbf16>,
    %c0_71 = arith.constant 0 : index
    %c0_72 = arith.constant 0 : index
    %c0_73 = arith.constant 0 : index
    %121 = vector.load %arg8[%c0_71, %c0_72, %c0_73] : memref<2x128x384xbf16, #tpu.memory_space<vmem>>, vector<1x128x384xbf16>
    %122 = vector.shape_cast %121 : vector<1x128x384xbf16> to vector<128x384xbf16>
    %c2 = arith.constant 2 : index
    %c0_74 = arith.constant 0 : index
    %c0_75 = arith.constant 0 : index
    %123 = vector.load %arg5[%c2, %c0_74, %c0_75] : memref<3x384x128xbf16, #tpu.memory_space<vmem>>, vector<1x384x128xbf16>
    %124 = vector.shape_cast %123 : vector<1x384x128xbf16> to vector<384x128xbf16>
    %cst_76 = arith.constant dense<0.000000e+00> : vector<128x128xf32>
    %125 = tpu.matmul %122, %124, %cst_76 {dimension_numbers = #tpu.dot_dimension_numbers<[1], [0], [0], [1], [0, 0, 1, 1], [], []>} : vector<128x384xbf16>, vector<384x128xbf16>, vector<128x128xf32> -> vector<128x128xf32>
    %126 = arith.addf %98, %125 : vector<128x128xf32>
    %c0_77 = arith.constant 0 : index
    %c0_78 = arith.constant 0 : index
    %c0_79 = arith.constant 0 : index
    %c0_80 = arith.constant 0 : index
    %127 = vector.load %arg6[%c0_77, %c0_78, %c0_79, %c0_80] : memref<1x1x128x128xf32, #tpu.memory_space<vmem>>, vector<1x1x128x128xf32>
    %128 = vector.shape_cast %127 : vector<1x1x128x128xf32> to vector<128x128xf32>
    %129 = vector.shape_cast %126 : vector<128x128xf32> to vector<1x1x128x128xf32>
    tpu.vector_store %arg6[%c0_77, %c0_78, %c0_79, %c0_80], %129 {strides = array<i32>} : memref<1x1x128x128xf32, #tpu.memory_space<vmem>>, vector<1x1x128x128xf32>,
    return
  }
  func.func @transform_0(%arg0: i32, %arg1: i32) -> (i32, i32, i32, i32) {
    %c0_i32 = arith.constant 0 : i32
    %c0_i32_0 = arith.constant 0 : i32
    %c0_i32_1 = arith.constant 0 : i32
    return %arg0, %arg1, %c0_i32, %c0_i32_0 : i32, i32, i32, i32
  }
  func.func @transform_1(%arg0: i32, %arg1: i32) -> (i32, i32) {
    %c0_i32 = arith.constant 0 : i32
    %c0_i32_0 = arith.constant 0 : i32
    %c0_i32_1 = arith.constant 0 : i32
    return %c0_i32, %c0_i32_0 : i32, i32
  }
  func.func @transform_2(%arg0: i32, %arg1: i32) -> (i32, i32) {
    %c0_i32 = arith.constant 0 : i32
    %c0_i32_0 = arith.constant 0 : i32
    %c0_i32_1 = arith.constant 0 : i32
    return %c0_i32, %c0_i32_0 : i32, i32
  }
  func.func @transform_3(%arg0: i32, %arg1: i32) -> (i32, i32, i32) {
    %c0_i32 = arith.constant 0 : i32
    %c0_i32_0 = arith.constant 0 : i32
    %c0_i32_1 = arith.constant 0 : i32
    %c0_i32_2 = arith.constant 0 : i32
    return %c0_i32, %c0_i32_0, %c0_i32_1 : i32, i32, i32
  }
  func.func @transform_4(%arg0: i32, %arg1: i32) -> (i32, i32, i32, i32) {
    %c0_i32 = arith.constant 0 : i32
    %c0_i32_0 = arith.constant 0 : i32
    %c0_i32_1 = arith.constant 0 : i32
    return %arg0, %arg1, %c0_i32, %c0_i32_0 : i32, i32, i32, i32
  }
}

</mosaic_0001>

<bundles_post_ra>
// kernel: tpu_custom_call.1
= control target key start
LH: loop header
LB: loop body
LE: loop exit
PB: predicated region body
PF: predicated region fallthrough
CT: control target
= control target key end

     0   :  { %s6923_s0 = inlined_call_operand.hbm [shape: f32[2,2,160,128], index: 0, kind: input, shape index: {}]   ;;  %s6924_s1 = inlined_call_operand.vmem [shape: f32[1,128], index: 1, kind: input, shape index: {}]   ;;  %s6925_s2 = inlined_call_operand.vmem [shape: f32[1,128], index: 2, kind: input, shape index: {}]   ;;  %s6926_s3 = inlined_call_operand.hbm [shape: bf16[3,384,128], index: 3, kind: input, shape index: {}]   ;;  %s6927_s4 = inlined_call_operand.hbm [shape: f32[2,2,128,128], index: 4, kind: output, shape index: {}]  }
   0x1   :  { %6959 = sst [smem:[#allocation35_spill]] %s6926_s3 }
   0x2   :  { %9 = vsyncpa [#allocation5], 0 }
   0x3   :  { %11 = vsyncpa [#allocation5 + $0x1], 0 }
   0x4   :  { %12 = vsyncpa [#allocation8], 0 }
   0x5   :  { %13 = vsyncpa [#allocation6], 0 }
   0x6   :  { %15 = vsyncpa [#allocation6 + $0x1], 0  ;;  %s5445_s15 = smov 0   ;;  %s5447_s16 = smov 0  }
   0x7   :  { %s5449_s17 = smov 0   ;;  %s5451_s18 = smov 0  }
   0x8   :  { %s5453_s19 = smov 0   ;;  %s5455_s20 = smov 0  }
   0x9   :  { %s5457_s21 = smov 0   ;;  %s5459_s22 = smov 0  }
   0xa LB: > { %6960 = sst [smem:[#allocation13_spill]] %s5377_s15  ;;  %s4386_s23 = sadd.s32 4294967295, %s5405_s22   ;;  %s5405_s22 = sphi %s5459_s22, %s21_s22   ;;  %s5401_s21 = sphi %s5457_s21, %s7106_s21   ;;  %s5397_s20 = sphi %s5455_s20, %s7111_s20   ;;  %s5393_s19 = sphi %s5453_s19, %s7104_s19   ;;  %s5389_s18 = sphi %s5451_s18, %s7110_s18   ;;  %s5385_s17 = sphi %s5449_s17, %s7109_s17   ;;  %s5381_s16 = sphi %s5447_s16, %s7108_s16   ;;  %s5377_s15 = sphi %s5445_s15, %s7107_s15  }
   0xb   : > { %6961 = sst [smem:[#allocation14_spill]] %s5401_s21  ;;  %s4387_s24 = sadd.s32 4294967294, %s5405_s22  }
   0xc   : > { %6962 = sst [smem:[#allocation15_spill]] %s5405_s22  ;;  %p55_p0 = scmp.ne.s32.totalorder %s5381_s16, %s5377_s15 }
   0xd   : > { %p5489_p1 = scmp.eq.s32.totalorder %s4386_s23, 0  ;;  %p5493_p2 = scmp.eq.s32.totalorder %s4386_s23, 3 }
   0xe   : > { %p150_p3 = scmp.eq.s32.totalorder %s4387_s24, 3  ;;  %p4388_p5 = scmp.ge.s32.totalorder %s5405_s22, 1 }
   0xf   : > { %p5499_p4 = por %p5489_p1, %p55_p0  ;;  %p157_p7 = scmp.lt.s32.totalorder %s5405_s22, 5 }
  0x10   : > { %p5504_p6 = por %p150_p3, %p55_p0  ;;  %s5407_s30 = smov [#allocation7]  }
  0x11   : > { %s6965_s27 = scalar_select %p5499_p4, 1, 0 }
  0x12   : > { %s6966_s28 = scalar_select %p5504_p6, 1, 0 }
  0x13   : > { %p5509_p8 = pnand %p4388_p5, %p157_p7  ;;  %s175_s5 = sshll.u32 %s5407_s30, 4  ;;  %s176_s5 = int_to_ptr.vmem [resolvable:$true] %s175_s5 }
  0x14   : > { %6967 = sst [smem:[#allocation16_spill]] %s6966_s28  ;;  %s5262_s6 = scalar_lea.vmem %s176_s5, 9216 }
  0x15   : > { %p5000_p9 = pneg %p5509_p8  ;;  %p5263_p12 = scmp.ne.s32.totalorder %s176_s5, %s5262_s6 }
  0x16   : > { %p5270_p3 = scmp.lt.s32.totalorder %s176_s5, %s176_s5  ;;  %p5271_p6 = scmp.lt.s32.totalorder %s5262_s6, %s5262_s6 }
  0x17   : > { %p5001_p10 = pnand %p5000_p9, %p5489_p1 }
  0x18   : > { %p5272_p4 = por %p5271_p6, %p5270_p3 }
  0x19   : > { %p5253_p11 = pneg %p5001_p10 }
  0x1b   : > { %p5265_p13 = pnand %p5263_p12, %p5253_p11 }
  0x1d   : > { %p5266_p0 = pneg %p5265_p13 }
  0x1f   : > { %p5273_p5 = pnand %p5272_p4, %p5266_p0 }
  0x21   : > { %5276 = shalt.err (!%p5273_p5)
}
  0x22   : > { %s5408_s7 = smov 64   ;;  %s5409_s8 = smov 4  }
  0x23   : > { %s6969_s3 = sld [smem:[#allocation35_spill]]  ;;  %s30_s11 = sadd.s32 1, %s5397_s20 }
  0x24   : > { %p31_p4 = scmp.ge.s32.totalorder %s30_s11, 2  ;;  %s33_s12 = sadd.s32 1, %s5401_s21 }
  0x25   : > { %s42_s13 = sadd.s32 1, %s5385_s17  ;;  %p49_p6 = scmp.ne.s32.totalorder %s5385_s17, %s5381_s16 }
  0x26   : > { %s7113_s11 = smov (%p31_p4, %s30_s11), 0  ;;  %s7115_s12 = smov (!%p31_p4, %s33_s12), %s5401_s21 }
  0x27   : > { %6970 = sst [smem:[#allocation17_spill]] %s7113_s11  ;;  %s38_s14 = ssub.s32 %s5397_s20, %s7113_s11 }
  0x28   : > { %p50_p7 = scmp.eq.s32.totalorder %s5405_s22, 0  ;;  %p35_p9 = scmp.ge.s32.totalorder %s7115_s12, 2 }
  0x29   : > { %5003 = dma.hbm_to_vmem [thread:$0]  (!%p5001_p10), %s6969_s3, 9216, %s176_s5, [#allocation8], %s5408_s7, %s5408_s7, %s5409_s8  }
  0x2a   : > { %p5533_p11 = por %p5493_p2, %p49_p6  ;;  %p51_p10 = por %p50_p7, %p49_p6 }
  0x2b   : > { %p5013_p12 = scmp.lt.s32.totalorder %s5405_s22, 4  ;;  %s7117_s12 = smov (%p35_p9, %s7115_s12), 0 }
  0x2c   : > { %6972 = sst [smem:[#allocation18_spill]] %s7117_s12  ;;  %s189_s24 = sand.u32 1, %s5385_s17  }
  0x2d   : > { %s4989_s30 = smul.u32 20, %s5397_s20  ;;  %s37_s5 = ssub.s32 %s5401_s21, %s7117_s12 }
  0x2e   : > { %s39_s6 = sor.u32 %s38_s14, %s37_s5  ;;  %s4988_s7 = smul.u32 160, %s189_s24 }
  0x2f   : > { %p40_p13 = scmp.eq.s32.totalorder %s39_s6, 0  ;;  %s4990_s8 = smul.u32 40, %s5401_s21 }
  0x30   : > { %p5545_p0 = pnand %p5013_p12, %p51_p10  ;;  %s193_s3 = scalar_lea.vmem [#allocation4], %s4988_s7 }
  0x31   : > { %s5550_s26 = scalar_select %p40_p13, %s5385_s17, %s42_s13  }
  0x32   : > { %s199_s10 = sadd.s32 %s4990_s8, %s4989_s30  ;;  %s202_s11 = sshll.u32 %s193_s3, 4  ;;  %s203_s11 = int_to_ptr.vmem [resolvable:$true] %s202_s11 }
  0x33   : > { %s4391_s28 = sshll.u32 %s199_s10, 7  ;;  %s190_s14 = scalar_lea.sflag [#allocation5], %s189_s24 }
  0x34   : > { %s201_s12 = scalar_lea.hbm %s6923_s0, %s4391_s28  ;;  %p5279_p2 = pneg %p5545_p0 }
  0x35   : > { %s5290_s5 = scalar_lea.vmem %s203_s11, 2560  ;;  %s5410_s6 = smov [#allocation4]  }
  0x36   : > { %p5291_p3 = scmp.ne.s32.totalorder %s203_s11, %s5290_s5  ;;  %s5295_s21 = sshll.u32 %s5410_s6, 4  ;;  %s5296_s21 = int_to_ptr.vmem [resolvable:$false] %s5295_s21 }
  0x37   : > { %s5297_s13 = scalar_lea.vmem %s5296_s21, 5120  ;;  %p5298_p6 = scmp.lt.s32.totalorder %s203_s11, %s5296_s21 }
  0x38   : > { %p5293_p5 = pnand %p5291_p3, %p5279_p2  ;;  %p5299_p7 = scmp.lt.s32.totalorder %s5297_s13, %s5290_s5 }
  0x3a   : > { %p5294_p4 = pneg %p5293_p5  ;;  %p5300_p9 = por %p5299_p7, %p5298_p6 }
  0x3c   : > { %p5301_p10 = pnand %p5300_p9, %p5294_p4 }
  0x3e   : > { %5304 = shalt.err (!%p5301_p10)
}
  0x3f   : > { %s5411_s3 = smov 128   ;;  %s5412_s15 = smov 8  }
  0x40   : > { %5007 = dma.hbm_to_vmem [thread:$0]  (!%p5545_p0), %s201_s12, 2560, %s203_s11, %s190_s14, %s5411_s3, %s5411_s3, %s5412_s15  }
  0x41   : > { %214 = sbr.rel (%p5509_p8) target bundleno = 671 (0x29f), region = 36 }
  0x46   : > { %s5562_s22 = sand.u32 1, %s5381_s16   ;;  %p6974_p12 = scmp.ne.s32.totalorder %s6965_s27, 0 }
  0x47   : > { %s4991_s28 = smul.u32 160, %s5562_s22  ;;  %s217_s21 = scalar_lea.sflag [#allocation5], %s5562_s22 }
  0x49   : > { %s5566_s24 = scalar_lea.vmem [#allocation4], %s4991_s28 }
  0x4a   : > { %5364 = dma.done.wait (%p6974_p12), %s217_s21, 2560  }
  0x4b   : > { %5366 = vsyncadd (%p6974_p12), %s217_s21, 4294964736 }
  0x4c   : > { %5368 = dma.done.wait (%p5489_p1), [#allocation8], 9216  }
  0x4d   : > { %5370 = vsyncadd (%p5489_p1), [#allocation8], 4294958080  ;;  %s4394_s29 = sshll.u32 %s5562_s22, 7  ;;  %v252_v0 = vld [vmem:[%s5566_s24] sm:$0xff]  ;;  %v253_v1 = vld [vmem:[%s5566_s24 + $0x8] sm:$0xff]  ;;  %p4417_p1 = scmp.ne.s32.totalorder %s5389_s18, 0 }
  0x4e   : > { %v5582_v2 = vld [vmem:[%s6924_s1] ss:$0 sm:$0xff]  ;;  %v254_v6 = vld [vmem:[%s5566_s24 + $0x10] sm:$0xff]  ;;  %v255_v7 = vld [vmem:[%s5566_s24 + $0x18] sm:$0xff]  ;;  %s5649_s30 = scalar_lea.vmem [#allocation9], %s4394_s29 }
  0x4f   : > { %v279_v3 = vmul.f32 %v5582_v2, %v252_v0  ;;  %v280_v4 = vmul.f32 %v5582_v2, %v253_v1  ;;  %v5589_v5 = vld [vmem:[%s6925_s2] ss:$0 sm:$0xff]  ;;  %v281_v8 = vmul.f32 %v5582_v2, %v254_v6  ;;  %v282_v9 = vmul.f32 %v5582_v2, %v255_v7  ;;  %v257_v11 = vld [vmem:[%s5566_s24 + $0x28] sm:$0xff]  ;;  %v258_v12 = vld [vmem:[%s5566_s24 + $0x30] sm:$0xff] }
  0x50   : > { %v256_v10 = vld [vmem:[%s5566_s24 + $0x20] sm:$0xff]  ;;  %v284_v16 = vmul.f32 %v5582_v2, %v257_v11  ;;  %v259_v17 = vld [vmem:[%s5566_s24 + $0x38] sm:$0xff]  ;;  %v285_v20 = vmul.f32 %v5582_v2, %v258_v12  ;;  %v261_v27 = vld [vmem:[%s5566_s24 + $0x48] sm:$0xff] }
  0x51   : > { %v306_v13 = vadd.f32 %v5589_v5, %v279_v3  ;;  %v307_v14 = vadd.f32 %v5589_v5, %v280_v4  ;;  %v283_v15 = vmul.f32 %v5582_v2, %v256_v10  ;;  %v308_v18 = vadd.f32 %v5589_v5, %v281_v8  ;;  %v260_v22 = vld [vmem:[%s5566_s24 + $0x40] sm:$0xff]  ;;  %v262_v32 = vld [vmem:[%s5566_s24 + $0x50] sm:$0xff]  ;;  %v263_v33 = vld [vmem:[%s5566_s24 + $0x58] sm:$0xff] }
  0x52   : > { %v309_v19 = vadd.f32 %v5589_v5, %v282_v9  ;;  %v286_v21 = vmul.f32 %v5582_v2, %v259_v17  ;;  %v311_v26 = vadd.f32 %v5589_v5, %v284_v16  ;;  %v312_v30 = vadd.f32 %v5589_v5, %v285_v20  ;;  %v264_v38 = vld [vmem:[%s5566_s24 + $0x60] sm:$0xff]  ;;  %v265_v39 = vld [vmem:[%s5566_s24 + $0x68] sm:$0xff]  ;;  %v266_v44 = vld [vmem:[%s5566_s24 + $0x70] sm:$0xff] }
  0x53   : > { %v326_v23 = vmax.f32 %v306_v13, 0.0  ;;  %v327_v24 = vmax.f32 %v307_v14, 0.0  ;;  %v310_v25 = vadd.f32 %v5589_v5, %v283_v15  ;;  %v328_v28 = vmax.f32 %v308_v18, 0.0  ;;  %v267_v49 = vld [vmem:[%s5566_s24 + $0x78] sm:$0xff]  ;;  %v268_v54 = vld [vmem:[%s5566_s24 + $0x80] sm:$0xff]  ;;  %v269_v63 = vld [vmem:[%s5566_s24 + $0x88] sm:$0xff] }
  0x54   : > { %v329_v29 = vmax.f32 %v309_v19, 0.0  ;;  %v313_v31 = vadd.f32 %v5589_v5, %v286_v21  ;;  %v331_v36 = vmax.f32 %v311_v26, 0.0  ;;  %v287_v37 = vmul.f32 %v5582_v2, %v260_v22  ;;  %v270_v6 = vld [vmem:[%s5566_s24 + $0x90] sm:$0xff]  ;;  %v271_v7 = vld [vmem:[%s5566_s24 + $0x98] sm:$0xff] }
  0x55   : > { %v4595_v34 = vpack.c.bf16 %v327_v24, %v326_v23  ;;  %v330_v35 = vmax.f32 %v310_v25, 0.0  ;;  %v332_v41 = vmax.f32 %v312_v30, 0.0  ;;  %v288_v43 = vmul.f32 %v5582_v2, %v261_v27 }
  0x56   : > { %v4600_v40 = vpack.c.bf16 %v329_v29, %v328_v28  ;;  %v333_v42 = vmax.f32 %v313_v31, 0.0  ;;  %v314_v46 = vadd.f32 %v5589_v5, %v287_v37  ;;  %v289_v47 = vmul.f32 %v5582_v2, %v262_v32 }
  0x57   : > { %4642 = vst [vmem:[#allocation2 + $0x8] sm:$0xff] %v4595_v34   ;;  %v4605_v45 = vpack.c.bf16 %v331_v36, %v330_v35  ;;  %v290_v48 = vmul.f32 %v5582_v2, %v263_v33  ;;  %v315_v51 = vadd.f32 %v5589_v5, %v288_v43  ;;  %v291_v52 = vmul.f32 %v5582_v2, %v264_v38 }
  0x58   : > { %4643 = vst [vmem:[#allocation2 + $0x10] sm:$0xff] %v4600_v40   ;;  %v4610_v50 = vpack.c.bf16 %v333_v42, %v332_v41  ;;  %v292_v53 = vmul.f32 %v5582_v2, %v265_v39  ;;  %v334_v55 = vmax.f32 %v314_v46, 0.0  ;;  %v316_v56 = vadd.f32 %v5589_v5, %v289_v47 }
  0x59   : > { %4644 = vst [vmem:[#allocation2 + $0x18] sm:$0xff] %v4605_v45   ;;  %v317_v57 = vadd.f32 %v5589_v5, %v290_v48  ;;  %v293_v58 = vmul.f32 %v5582_v2, %v266_v44  ;;  %v335_v59 = vmax.f32 %v315_v51, 0.0  ;;  %v318_v60 = vadd.f32 %v5589_v5, %v291_v52 }
  0x5a   : > { %4645 = vst [vmem:[#allocation2 + $0x20] sm:$0xff] %v4610_v50   ;;  %v319_v61 = vadd.f32 %v5589_v5, %v292_v53  ;;  %v294_v62 = vmul.f32 %v5582_v2, %v267_v49  ;;  %v336_v0 = vmax.f32 %v316_v56, 0.0  ;;  %v295_v4 = vmul.f32 %v5582_v2, %v268_v54 }
  0x5b   : > { %v337_v1 = vmax.f32 %v317_v57, 0.0  ;;  %v320_v3 = vadd.f32 %v5589_v5, %v293_v58  ;;  %v4615_v8 = vpack.c.bf16 %v335_v59, %v334_v55  ;;  %v338_v9 = vmax.f32 %v318_v60, 0.0 }
  0x5c   : > { %v339_v10 = vmax.f32 %v319_v61, 0.0  ;;  %v321_v11 = vadd.f32 %v5589_v5, %v294_v62  ;;  %v296_v14 = vmul.f32 %v5582_v2, %v269_v63  ;;  %v322_v15 = vadd.f32 %v5589_v5, %v295_v4 }
  0x5d   : > { %v4620_v12 = vpack.c.bf16 %v337_v1, %v336_v0  ;;  %v340_v13 = vmax.f32 %v320_v3, 0.0  ;;  %4646 = vst [vmem:[#allocation2 + $0x28] sm:$0xff] %v4615_v8   ;;  %v297_v18 = vmul.f32 %v5582_v2, %v270_v6  ;;  %v298_v19 = vmul.f32 %v5582_v2, %v271_v7 }
  0x5e   : > { %v4625_v16 = vpack.c.bf16 %v339_v10, %v338_v9  ;;  %v341_v17 = vmax.f32 %v321_v11, 0.0  ;;  %v323_v20 = vadd.f32 %v5589_v5, %v296_v14  ;;  %v342_v21 = vmax.f32 %v322_v15, 0.0 }
  0x5f   : > { %4647 = vst [vmem:[#allocation2 + $0x30] sm:$0xff] %v4620_v12   ;;  %v324_v23 = vadd.f32 %v5589_v5, %v297_v18  ;;  %v325_v24 = vadd.f32 %v5589_v5, %v298_v19 }
  0x60   : > { %4648 = vst [vmem:[#allocation2 + $0x38] sm:$0xff] %v4625_v16   ;;  %v4630_v22 = vpack.c.bf16 %v341_v17, %v340_v13  ;;  %v343_v25 = vmax.f32 %v323_v20, 0.0 }
  0x61   : > { %v344_v26 = vmax.f32 %v324_v23, 0.0  ;;  %v345_v27 = vmax.f32 %v325_v24, 0.0  ;;  %449 = sbr.rel (%p4417_p1) target bundleno = 104 (0x68), region = 48 }
  0x62   : > { %4649 = vst [vmem:[#allocation2 + $0x40] sm:$0xff] %v4630_v22   ;;  %v4635_v28 = vpack.c.bf16 %v343_v25, %v342_v21 }
  0x63   : > { %v4640_v29 = vpack.c.bf16 %v345_v27, %v344_v26 }
  0x64   : > { %4650 = vst [vmem:[#allocation2 + $0x48] sm:$0xff] %v4635_v28  }
  0x65   : > { %4651 = vst [vmem:[#allocation2 + $0x50] sm:$0xff] %v4640_v29  }
  0x66   : > { %v5413_v2 = vmov 0  }
  0x67   : > { %450 = vst [vmem:[#allocation2 + $0x8] sm:$0xf] %v5413_v2  ;;  %451 = vst [vmem:[#allocation2 + $0xc] sm:$0xf] %v5413_v2 }
  0x68 PF: > { %p4418_p8 = scmp.ne.s32.totalorder %s5389_s18, 1 }
  0x6a   : > { %455 = sbr.rel (%p4418_p8) target bundleno = 113 (0x71), region = 52 }
  0x6f   : > { %v5414_v5 = vmov 0  }
  0x70   : > { %456 = vst [vmem:[#allocation2 + $0x50] sm:$0xf] %v5414_v5  ;;  %457 = vst [vmem:[#allocation2 + $0x54] sm:$0xf] %v5414_v5 }
  0x71 PF: > { %v5091_v30 = vld [vmem:[#allocation7 + $0x138] sm:$0xff]   ;;  %v5094_v33 = vld [vmem:[#allocation7 + $0x130] sm:$0xff]   ;;  %v458_v36 = vlaneseq  ;;  %v5097_v37 = vld [vmem:[#allocation7 + $0x128] sm:$0xff]   ;;  %vm780_vm5 = vsmask.f32 3328  ;;  %vm5415_vm6 = vmmov 1  }
  0x72   : > { %v5092_v31 = vld [vmem:[#allocation7 + $0xf8] sm:$0xff]   ;;  %4652 = vmatprep.subr.bf16.mxu0 %v5091_v30  ;;  %v5095_v34 = vld [vmem:[#allocation7 + $0xf0] sm:$0xff]   ;;  %v5098_v38 = vld [vmem:[#allocation7 + $0xe8] sm:$0xff]   ;;  %v6955_v10 = vmov 0   ;;  %vm781_vm8 = vsmask.f32 7440 }
  0x73   : > { %v5093_v32 = vld [vmem:[#allocation7 + $0x178] sm:$0xff]   ;;  %4653 = vmatpush3.bf16.msra.mxu0 %v5092_v31  ;;  %v5096_v35 = vld [vmem:[#allocation7 + $0x170] sm:$0xff]   ;;  %v5099_v39 = vld [vmem:[#allocation7 + $0x168] sm:$0xff]   ;;  %v5653_v41 = vshrl.u32 %v458_v36, 7  ;;  %vm976_vm9 = vsmask.f32 256 }
  0x74   : > { %4892 = vmatprep.subr.bf16.mxu1 %v5093_v32  ;;  %4654 = vmatprep.subr.bf16.mxu0 %v5094_v33  ;;  %v5100_v40 = vld [vmem:[#allocation7 + $0x120] sm:$0xff]   ;;  %v5103_v44 = vld [vmem:[#allocation7 + $0x118] sm:$0xff]   ;;  %v5106_v51 = vld [vmem:[#allocation7 + $0x110] sm:$0xff]   ;;  %vm977_vm11 = vsmask.f32 4368  ;;  %s4567_s7 = sshll.u32 %s5389_s18, 4 }
  0x75   : > { %4893 = vmatpush3.bf16.msra.mxu1 %v5093_v32  ;;  %v5101_v42 = vld [vmem:[#allocation7 + $0xe0] sm:$0xff]   ;;  %v461_v45 = vadd.s32 16, %v5653_v41  ;;  %v479_v46 = vand.u32 15, %v5653_v41  ;;  %v460_v47 = vadd.s32 8, %v5653_v41  ;;  %v5105_v48 = vld [vmem:[#allocation7 + $0x158] sm:$0xff]   ;;  %v462_v49 = vadd.s32 24, %v5653_v41  ;;  %vm749_vm7 = vmpackc.low %vm5415_vm6, %vm5415_vm6 }
  0x76   : > { %4894 = vmatprep.subr.bf16.mxu1 %v5096_v35  ;;  %v5102_v43 = vld [vmem:[#allocation7 + $0x160] sm:$0xff]   ;;  %v5104_v50 = vld [vmem:[#allocation7 + $0xd8] sm:$0xff]   ;;  %v5108_v55 = vld [vmem:[#allocation7 + $0x150] sm:$0xff]   ;;  %v5664_v58 = vadd.s32 32, %v5653_v41  ;;  %v5667_v60 = vadd.s32 40, %v5653_v41  ;;  %v5674_v62 = vadd.s32 56, %v5653_v41 }
  0x77   : > { %4655 = vmatpush3.bf16.msra.mxu0 %v5095_v34  ;;  %v493_v52 = vand.u32 15, %v461_v45  ;;  %vm5659_vm0 = vcmp.ge.s32.totalorder %v479_v46, 1  ;;  %v486_v54 = vand.u32 15, %v460_v47  ;;  %v500_v56 = vand.u32 15, %v462_v49  ;;  %v5107_v57 = vld [vmem:[#allocation7 + $0xd0] sm:$0xff]   ;;  %v5109_v59 = vld [vmem:[#allocation7 + $0x108] sm:$0xff]   ;;  %vm5712_vm14 = vmor %vm780_vm5, %vm781_vm8 }
  0x78   : > { %4656 = vmatprep.subr.bf16.mxu0 %v5097_v37  ;;  %v5111_v63 = vld [vmem:[#allocation7 + $0x148] sm:$0xff]   ;;  %v5112_v4 = vld [vmem:[#allocation7 + $0x100] sm:$0xff]   ;;  %vm748_vm4 = vmpackc.low %vm5659_vm0, %vm5659_vm0  ;;  %v507_v6 = vand.u32 15, %v5664_v58  ;;  %v514_v7 = vand.u32 15, %v5667_v60  ;;  %v5690_v8 = vadd.s32 48, %v5653_v41  ;;  %v528_v12 = vand.u32 15, %v5674_v62 }
  0x79   : > { %4895 = vmatpush3.bf16.msra.mxu1 %v5096_v35  ;;  %vm5669_vm1 = vcmp.ge.s32.totalorder %v493_v52, 1  ;;  %vm5676_vm2 = vcmp.lt.s32.totalorder %v486_v54, 15  ;;  %v5110_v1 = vld [vmem:[#allocation7 + $0xc8] sm:$0xff]   ;;  %vm5680_vm3 = vcmp.lt.s32.totalorder %v500_v56, 15  ;;  %v5113_v9 = vld [vmem:[#allocation7 + $0xc0] sm:$0xff]   ;;  %v764_v11 = vsel %vm748_vm4, 65537, %v6955_v10 }
  0x7a   : > { %4896 = vmatprep.subr.bf16.mxu1 %v5099_v39  ;;  %v5114_v13 = vld [vmem:[#allocation7 + $0x140] sm:$0xff]   ;;  %vm750_vm10 = vmpackc.low %vm5669_vm1, %vm5669_vm1  ;;  %v765_v14 = vsel %vm749_vm7, 65537, %v6955_v10  ;;  %v784_v15 = vshll.u32 %v764_v11, 16  ;;  %v787_v16 = vshrl.u32 %v764_v11, 16  ;;  %v1725_v20 = vld [vmem:[#allocation2 + $0xc] sm:$0x8] }
  0x7b   : > { %4657 = vmatpush3.bf16.msra.mxu0 %v5098_v38  ;;  %v766_v17 = vsel %vm750_vm10, 65537, %v6955_v10  ;;  %v793_v18 = vshll.u32 %v765_v14, 16  ;;  %v797_v19 = vshrl.u32 %v765_v14, 16  ;;  %v5699_v21 = vld [vmem:[#allocation7 + $0xb8] sm:$0xff]   ;;  %v1940_v26 = vld [vmem:[#allocation2 + $0x10] sm:$0xf]  ;;  %vm1241_vm12 = vmpackc.low %vm5676_vm2, %vm5676_vm2 }
  0x7c   : > { %4658 = vmatprep.subr.bf16.mxu0 %v5100_v40  ;;  %v5701_v22 = vrot.slane %v784_v15, 5  ;;  %v789_v23 = vrot.slane %v787_v16, 4  ;;  %v803_v24 = vshll.u32 %v766_v17, 16  ;;  %v807_v25 = vshrl.u32 %v766_v17, 16  ;;  %v1941_v29 = vld [vmem:[#allocation2 + $0x14] sm:$0xf]  ;;  %vm1243_vm0 = vmpackc.low %vm5680_vm3, %vm5680_vm3 }
  0x7d   : > { %4897 = vmatpush3.bf16.msra.mxu1 %v5099_v39  ;;  %v5703_v27 = vrot.slane %v793_v18, 5  ;;  %v799_v28 = vrot.slane %v797_v19, 4  ;;  %1956 = vst [vmem:[#allocation3 + $0xc4] sm:$0xf] %v1940_v26  ;;  %1957 = vst [vmem:[#allocation3 + $0xd0] sm:$0xf] %v1941_v29 }
  0x7e   : > { %4898 = vmatprep.subr.bf16.mxu1 %v5102_v43  ;;  %v790_v2 = vor.u32 %v789_v23, %v5701_v22  ;;  %v805_v5 = vrot.slane %v803_v24, 5  ;;  %v809_v30 = vrot.slane %v807_v25, 4  ;;  %vm6941_vm13 = vcmp.ne.s16.totalorder %v5701_v22, 0  ;;  %v5121_v31 = vld [vmem:[#allocation7 + $0x78] sm:$0xff]   ;;  %v1726_v40 = vld [vmem:[#allocation2 + $0x10] sm:$0xf]  ;;  %vm5748_vm2 = vmor %vm976_vm9, %vm977_vm11 }
  0x7f   : > { %4659 = vmatpush3.bf16.msra.mxu0 %v5101_v42  ;;  %v800_v33 = vor.u32 %v799_v28, %v5703_v27  ;;  %v1742_v34 = vsel %vm6941_vm13, %v1725_v20, 0  ;;  %v1257_v35 = vsel %vm1241_vm12, 65537, %v6955_v10  ;;  %v1275_v36 = vrot.slane %v797_v19, 7  ;;  %v1727_v45 = vld [vmem:[#allocation2 + $0x14] sm:$0xf]  ;;  %v5137_v25 = vld [vmem:[#allocation7 + $0xa8] sm:$0xff]  }
  0x80   : > { %4660 = vmatprep.subr.bf16.mxu0 %v5103_v44  ;;  %vm5720_vm15 = vcmp.ge.s32.totalorder %v507_v6, 1  ;;  %v791_v38 = vrot.slane %v790_v2, 4  ;;  %v810_v39 = vor.u32 %v809_v30, %v805_v5  ;;  %v1760_v42 = vshrl.u32 %v1742_v34, 16  ;;  %v1972_v53 = vld [vmem:[#allocation2 + $0x10] sm:$0xf]  ;;  %s4568_s8 = sshll.u32 %s5393_s19, 5 }
  0x81   : > { %4899 = vmatpush3.bf16.msra.mxu1 %v5102_v43  ;;  %v1281_v43 = vshrl.u32 %v1257_v35, 16  ;;  %v5728_v44 = vrot.slane %v800_v33, 4  ;;  %v5730_v46 = vor.u32 %v1275_v36, %v793_v18  ;;  %v5732_v47 = vrot.slane %v1275_v36, 4  ;;  %v1974_v58 = vld [vmem:[#allocation2 + $0x18] sm:$0xf]  ;;  %vm752_vm8 = vmpackc.low %vm5720_vm15, %vm5720_vm15  ;;  %s4283_s9 = sadd.s32 %s4568_s8, %s4567_s7  ;;  %s4286_s10 = sshll.u32 %s5649_s30, 4  ;;  %s6863_s10 = int_to_ptr.vmem [resolvable:$true] %s4286_s10 }
  0x82   : > { %4900 = vmatprep.subr.bf16.mxu1 %v5105_v48  ;;  %v796_v49 = vsel %vm5712_vm14, %v791_v38, %v5703_v27  ;;  %vm5790_vm7 = vcmp.lt.s32.totalorder %v514_v7, 15  ;;  %v1942_v36 = vld [vmem:[#allocation2 + $0x18] sm:$0xf]  ;;  %v3443_v32 = vld [vmem:[#allocation2 + $0x50] sm:$0xf]  ;;  %s4569_s14 = sshll.u32 %s4283_s9, 7 }
  0x83   : > { %4661 = vmatpush3.bf16.msra.mxu0 %v5104_v50  ;;  %v5737_v50 = vrot.slane %v810_v39, 4  ;;  %v1283_v52 = vrot.slane %v1281_v43, 7  ;;  %v806_v54 = vsel %vm5712_vm14, %v5728_v44, %v805_v5  ;;  %vm5742_vm1 = vcmp.ne.s16.totalorder %v796_v49, 0  ;;  %v1728_v43 = vld [vmem:[#allocation2 + $0x18] sm:$0xf]  ;;  %vm1245_vm15 = vmpackc.low %vm5790_vm7, %vm5790_vm7  ;;  %s6869_s5 = scalar_lea.hbm %s6927_s4, %s4569_s14  ;;  %s4271_s6 = scalar_lea.sflag [#allocation6], %s5562_s22 }
  0x84   : > { %4662 = vmatprep.subr.bf16.mxu0 %v5106_v51  ;;  %v4420_v51 = vrot.slane %v1760_v42, 11  ;;  %vm6940_vm4 = vcmp.ne.s16.totalorder %v5730_v46, 0  ;;  %vm5759_vm5 = vcmp.ne.s16.totalorder %v806_v54, 0  ;;  %1958 = vst [vmem:[#allocation3 + $0xdc] sm:$0xf] %v1942_v36  ;;  %s5305_s13 = scalar_lea.vmem %s6863_s10, 2048 }
  0x85   : > { %4901 = vmatpush3.bf16.msra.mxu1 %v5105_v48  ;;  %v1284_v48 = vshll.u32 %v1257_v35, 16  ;;  %v1989_v11 = vsel %vm6940_vm4, %v1972_v53, 0  ;;  %p5306_p13 = scmp.ne.s32.totalorder %s6863_s10, %s5305_s13  ;;  %s5417_s3 = smov [#allocation9]  }
  0x86   : > { %4902 = vmatprep.subr.bf16.mxu1 %v5108_v55  ;;  %v2007_v18 = vshrl.u32 %v1989_v11, 16  ;;  %v2010_v24 = vshll.u32 %v1989_v11, 16  ;;  %s5309_s15 = sshll.u32 %s5417_s3, 4  ;;  %s5310_s15 = int_to_ptr.vmem [resolvable:$false] %s5309_s15 }
  0x87   : > { %4663 = vmatpush3.bf16.msra.mxu0 %v5107_v57  ;;  %v1973_v57 = vld [vmem:[#allocation2 + $0x14] sm:$0xf]  ;;  %v1286_v0 = vor.u32 %v1284_v48, %v1283_v52  ;;  %p5307_p0 = pnand %p5306_p13, %p5533_p11  ;;  %s5311_s28 = scalar_lea.vmem %s5310_s15, 4096 }
  0x88   : > { %4664 = vmatprep.subr.bf16.mxu0 %v5109_v59  ;;  %v1259_v59 = vsel %vm1243_vm0, 65537, %v6955_v10  ;;  %v2009_v29 = vrot.slane %v2007_v18, 4  ;;  %v2012_v30 = vrot.slane %v2010_v24, 5  ;;  %vm690_vm0 = vcmp.lt.s32.totalorder %v528_v12, 15  ;;  %p5312_p3 = scmp.lt.s32.totalorder %s6863_s10, %s5310_s15  ;;  %p5313_p5 = scmp.lt.s32.totalorder %s5311_s28, %s5305_s13 }
  0x89   : > { %4903 = vmatpush3.bf16.msra.mxu1 %v5108_v55  ;;  %v1287_v14 = vsel %vm5748_vm2, %v5732_v47, %v1286_v0  ;;  %v1299_v35 = vshrl.u32 %v1259_v59, 16  ;;  %vm1247_vm7 = vmpackc.low %vm690_vm0, %vm690_vm0  ;;  %p5308_p2 = pneg %p5307_p0 }
  0x8a   : > { %4904 = vmatprep.subr.bf16.mxu1 %v5111_v63  ;;  %vm5777_vm3 = vcmp.ne.s16.totalorder %v1287_v14, 0  ;;  %v2013_v39 = vor.u32 %v2012_v30, %v2009_v29  ;;  %p5314_p4 = por %p5313_p5, %p5312_p3 }
  0x8b   : > { %4665 = vmatpush3.bf16.msra.mxu0 %v5110_v1  ;;  %v1288_v1 = vrot.slane %v1283_v52, 4  ;;  %v1990_v20 = vsel %vm5777_vm3, %v1973_v57, 0  ;;  %v1301_v49 = vrot.slane %v1299_v35, 7  ;;  %v1302_v52 = vshll.u32 %v1259_v59, 16 }
  0x8c   : > { %4666 = vmatprep.subr.bf16.mxu0 %v5112_v4  ;;  %v1744_v4 = vsel %vm5759_vm5, %v1727_v45, 0  ;;  %v2016_v2 = vshll.u32 %v1990_v20, 16  ;;  %v1943_v45 = vld [vmem:[#allocation2 + $0x1c] sm:$0xf]  ;;  %v2014_v53 = vrot.slane %v2013_v39, 4  ;;  %v816_v57 = vsel %vm5712_vm14, %v5737_v50, %v5703_v27  ;;  %p5315_p6 = pnand %p5314_p4, %p5308_p2 }
  0x8d   : > { %4905 = vmatpush3.bf16.msra.mxu1 %v5111_v63  ;;  %v1743_v63 = vsel %vm5742_vm1, %v1726_v40, 0  ;;  %v1774_v3 = vshrl.u32 %v1744_v4, 16  ;;  %v5775_v15 = vsel %vm5748_vm2, %v1288_v1, %v5730_v46  ;;  %1959 = vst [vmem:[#allocation3 + $0xe8] sm:$0xf] %v1943_v45  ;;  %v1304_v59 = vor.u32 %v1302_v52, %v1301_v49  ;;  %v1975_v1 = vld [vmem:[#allocation2 + $0x1c] sm:$0xf] }
  0x8e   : > { %4906 = vmatprep.subr.bf16.mxu1 %v5114_v13  ;;  %v1765_v6 = vshrl.u32 %v1743_v63, 16  ;;  %vm6939_vm6 = vcmp.ne.s16.totalorder %v5775_v15, 0  ;;  %v2018_v7 = vrot.slane %v2016_v2, 5  ;;  %v1306_v0 = vrot.slane %v1301_v49, 4 }
  0x8f   : > { %4667 = vmatpush3.bf16.msra.mxu0 %v5113_v9  ;;  %v1768_v9 = vshll.u32 %v1743_v63, 16  ;;  %v5782_v19 = vrot.slane %v1774_v3, 7  ;;  %v1991_v23 = vsel %vm6939_vm6, %v1974_v58, 0  ;;  %vm5820_vm9 = vcmp.ne.s16.totalorder %v816_v57, 0 }
  0x90   : > { %4924 = vmatprep.subr.bf16.mxu0 %v5699_v21  ;;  %v1767_v16 = vrot.slane %v1765_v6, 7  ;;  %v2026_v33 = vshll.u32 %v1991_v23, 16  ;;  %v2030_v34 = vshrl.u32 %v1991_v23, 16  ;;  %v2019_v37 = vsel %vm5712_vm14, %v2014_v53, %v2018_v7 }
  0x91   : > { %4907 = vmatpush3.bf16.msra.mxu1 %v5114_v13  ;;  %v1777_v13 = vshll.u32 %v1744_v4, 16  ;;  %2186 = vst [vmem:[#allocation3 + $0xc8] sm:$0xf] %v2019_v37  ;;  %v5830_v14 = vsel %vm5748_vm2, %v1306_v0, %v5730_v46  ;;  %v1745_v18 = vsel %vm5820_vm9, %v1728_v43, 0  ;;  %v1781_v2 = vrot.slane %v5782_v19, 4 }
  0x92   : > { %4732 = vmatprep.subr.bf16.mxu1 %v5121_v31  ;;  %v1770_v26 = vor.u32 %v1768_v9, %v1767_v16  ;;  %v1772_v28 = vrot.slane %v1767_v16, 4  ;;  %v2020_v31 = vshrl.u32 %v1990_v20, 16  ;;  %v2028_v42 = vrot.slane %v2026_v33, 5  ;;  %v1976_v9 = vld [vmem:[#allocation2 + $0x20] sm:$0xf] }
  0x93   : > { %v1779_v5 = vor.u32 %v1777_v13, %v5782_v19  ;;  %v2032_v48 = vrot.slane %v2030_v34, 4  ;;  %v1305_v13 = vsel %vm5748_vm2, %v5732_v47, %v1304_v59  ;;  %v1729_v16 = vld [vmem:[#allocation2 + $0x1c] sm:$0xf]  ;;  %vm6937_vm11 = vcmp.ne.s16.totalorder %v5830_v14, 0 }
  0x94   : > { %v1771_v60 = vsel %vm5748_vm2, %v4420_v51, %v1770_v26  ;;  %v2022_v40 = vrot.slane %v2020_v31, 4  ;;  %v5808_v51 = vsel %vm752_vm8, 65537, %v6955_v10  ;;  %vm5836_vm10 = vcmp.ne.s16.totalorder %v1305_v13, 0  ;;  %v5117_v31 = vld [vmem:[#allocation3 + $0xc4] ss:$12 sps:$4 sm:$0xff]  }
  0x95   : > { %v1780_v38 = vsel %vm5748_vm2, %v1772_v28, %v1779_v5  ;;  %1924 = vst [vmem:[#allocation3 + $0xc0] sm:$0xf] %v1771_v60  ;;  %v823_v58 = vshll.u32 %v5808_v51, 16  ;;  %v2033_v63 = vor.u32 %v2032_v48, %v2028_v42  ;;  %v827_v4 = vshrl.u32 %v5808_v51, 16  ;;  %v5127_v5 = vld [vmem:[#allocation7 + $0xb0] sm:$0xff]   ;;  %2587 = vmatprep.mubr.bf16.mxu0 %v5117_v31 }
  0x96   : > { %1925 = vst [vmem:[#allocation3 + $0xcc] sm:$0xf] %v1780_v38  ;;  %v2023_v54 = vor.u32 %v2022_v40, %v2018_v7  ;;  %v1992_v26 = vsel %vm5836_vm10, %v1975_v1, 0  ;;  %v1993_v28 = vsel %vm6937_vm11, %v1976_v9, 0  ;;  %v1783_v38 = vshrl.u32 %v1745_v18, 16 }
  0x97   : > { %v5818_v11 = vrot.slane %v823_v58, 5  ;;  %v2034_v50 = vrot.slane %v2033_v63, 4  ;;  %v2036_v33 = vshll.u32 %v1992_v26, 16  ;;  %v2040_v60 = vshrl.u32 %v1992_v26, 16  ;;  %v1978_v9 = vld [vmem:[#allocation2 + $0x28] sm:$0xf] }
  0x98   : > { %v2024_v6 = vrot.slane %v2023_v54, 4  ;;  %v2046_v7 = vshll.u32 %v1993_v28, 16  ;;  %v2050_v34 = vshrl.u32 %v1993_v28, 16  ;;  %v1786_v39 = vshll.u32 %v1745_v18, 16  ;;  %v1945_v26 = vld [vmem:[#allocation2 + $0x24] sm:$0xf] }
  0x99   : > { %v826_v24 = vsel %vm5712_vm14, %v5728_v44, %v5818_v11  ;;  %v2038_v36 = vrot.slane %v2036_v33, 5  ;;  %v2042_v19 = vrot.slane %v2040_v60, 4  ;;  %v1261_v45 = vsel %vm1245_vm15, 65537, %v6955_v10  ;;  %1961 = vst [vmem:[#allocation3 + $0x100] sm:$0xf] %v1945_v26 }
  0x9a   : > { %v2029_v20 = vsel %vm5712_vm14, %v2024_v6, %v2028_v42  ;;  %vm5849_vm12 = vcmp.ne.s16.totalorder %v826_v24, 0  ;;  %v2048_v42 = vrot.slane %v2046_v7, 5  ;;  %v1785_v49 = vrot.slane %v1783_v38, 7  ;;  %v1977_v6 = vld [vmem:[#allocation2 + $0x24] sm:$0xf] }
  0x9b   : > { %2187 = vst [vmem:[#allocation3 + $0xd4] sm:$0xf] %v2029_v20  ;;  %v1746_v35 = vsel %vm5849_vm12, %v1729_v16, 0  ;;  %v2039_v48 = vsel %vm5712_vm14, %v2034_v50, %v2038_v36  ;;  %v1317_v53 = vshrl.u32 %v1261_v45, 16  ;;  %v2043_v54 = vor.u32 %v2042_v19, %v2038_v36  ;;  %v1944_v24 = vld [vmem:[#allocation2 + $0x20] sm:$0xf] }
  0x9c   : > { %v1792_v40 = vshrl.u32 %v1746_v35, 16  ;;  %v1795_v43 = vshll.u32 %v1746_v35, 16  ;;  %2188 = vst [vmem:[#allocation3 + $0xe0] sm:$0xf] %v2039_v48  ;;  %v1320_v57 = vshll.u32 %v1261_v45, 16  ;;  %v2052_v58 = vrot.slane %v2050_v34, 4 }
  0x9d   : > { %v5115_v30 = vld [vmem:[#allocation3 + $0xc0] ss:$12 sps:$4 sm:$0xff]   ;;  %v1788_v59 = vor.u32 %v1786_v39, %v1785_v49  ;;  %v1790_v0 = vrot.slane %v1785_v49, 4  ;;  %v1319_v1 = vrot.slane %v1317_v53, 7  ;;  %v2044_v37 = vrot.slane %v2043_v54, 4 }
  0x9e   : > { %2588 = vmatmul.mubr.bf16.vlgmr.msra.gmra.mxu0 %v5115_v30  ;;  %v5868_v52 = vrot.slane %v1792_v40, 7  ;;  %v2053_v50 = vor.u32 %v2052_v58, %v2048_v42  ;;  %v1263_v13 = vsel %vm1247_vm7, 65537, %v6955_v10  ;;  %v521_v16 = vand.u32 15, %v5690_v8  ;;  %1960 = vst [vmem:[#allocation3 + $0xf4] sm:$0xf] %v1944_v24  ;;  %v5147_v8 = vld [vmem:[#allocation7 + $0xa0] sm:$0xff]  }
  0x9f   : > { %4925 = vmatpush3.bf16.msra.mxu0 %v5699_v21  ;;  %v1789_v62 = vsel %vm5748_vm2, %v1781_v2, %v1788_v59  ;;  %v1322_v18 = vor.u32 %v1320_v57, %v1319_v1  ;;  %v1324_v20 = vrot.slane %v1319_v1, 4  ;;  %v2049_v28 = vsel %vm5712_vm14, %v2044_v37, %v2048_v42  ;;  %v5157_v42 = vld [vmem:[#allocation7 + $0x98] sm:$0xff]   ;;  %v1979_v49 = vld [vmem:[#allocation2 + $0x2c] sm:$0xf]  ;;  %v1980_v53 = vld [vmem:[#allocation2 + $0x30] sm:$0xf] }
  0xa0   : > { %4926 = vmatprep.subr.bf16.mxu0 %v5127_v5  ;;  %v1797_v21 = vor.u32 %v1795_v43, %v5868_v52  ;;  %1926 = vst [vmem:[#allocation3 + $0xd8] sm:$0xf] %v1789_v62  ;;  %v1335_v30 = vshrl.u32 %v1263_v13, 16  ;;  %v1338_v31 = vshll.u32 %v1263_v13, 16  ;;  %2189 = vst [vmem:[#allocation3 + $0xec] sm:$0xf] %v2049_v28 }
  0xa1   : > { %v1323_v2 = vsel %vm5748_vm2, %v5732_v47, %v1322_v18  ;;  %vm673_vm8 = vcmp.ge.s32.totalorder %v521_v16, 1  ;;  %v829_v33 = vrot.slane %v827_v4, 4  ;;  %v7003_v60 = vmov 0  ;;  %v5122_v43 = vld [vmem:[#allocation7 + $0x38] sm:$0xff]   ;;  %v5123_v58 = vld [vmem:[#allocation7 + $0x70] sm:$0xff]  }
  0xa2   : > { %v5119_v63 = vld [vmem:[#allocation3 + $0xc8] ss:$12 sps:$4 sm:$0xff]   ;;  %v1798_v12 = vsel %vm5748_vm2, %v1790_v0, %v1797_v21  ;;  %vm5891_vm15 = vcmp.ne.s16.totalorder %v1323_v2, 0  ;;  %v2054_v7 = vrot.slane %v2053_v50, 4  ;;  %v1337_v34 = vrot.slane %v1335_v30, 7  ;;  %vm754_vm7 = vmpackc.low %vm673_vm8, %vm673_vm8 }
  0xa3   : > { %4908 = vmatprep.mubr.bf16.mxu1 %v5119_v63  ;;  %4927 = vmatpush3.bf16.msra.mxu0 %v5127_v5  ;;  %1927 = vst [vmem:[#allocation3 + $0xe4] sm:$0xf] %v1798_v12  ;;  %v5887_v5 = vsel %vm5748_vm2, %v1324_v20, %v5730_v46  ;;  %v7004_v60 = vsel %vm5891_vm15, 4294967295, %v7003_v60  ;;  %v1994_v35 = vsel %vm5891_vm15, %v1977_v6, 0  ;;  %v5901_v38 = vsel %vm754_vm7, 65537, %v6955_v10  ;;  %v5126_v24 = vld [vmem:[#allocation7 + $0x30] sm:$0xff]  }
  0xa4   : > { %4928 = vmatprep.subr.bf16.mxu0 %v5137_v25  ;;  %vm6936_vm0 = vcmp.ne.s16.totalorder %v5887_v5, 0  ;;  %v830_v51 = vor.u32 %v829_v33, %v5818_v11  ;;  %v2056_v4 = vshll.u32 %v1994_v35, 16  ;;  %v2060_v39 = vshrl.u32 %v1994_v35, 16  ;;  %v5124_v21 = vld [vmem:[#allocation3 + $0xdc] ss:$12 sps:$4 sm:$0xff]  }
  0xa5   : > { %v1995_v36 = vsel %vm6936_vm0, %v1978_v9, 0  ;;  %v1340_v45 = vor.u32 %v1338_v31, %v1337_v34  ;;  %v1342_v48 = vrot.slane %v1337_v34, 4  ;;  %v843_v57 = vshll.u32 %v5901_v38, 16  ;;  %v1730_v20 = vld [vmem:[#allocation2 + $0x20] sm:$0xf]  ;;  %2595 = vmatprep.mubr.bf16.mxu0 %v5124_v21  ;;  %v5131_v34 = vld [vmem:[#allocation7 + $0x68] sm:$0xff]  }
  0xa6   : > { %v2066_v40 = vshll.u32 %v1995_v36, 16  ;;  %v2070_v19 = vshrl.u32 %v1995_v36, 16  ;;  %v831_v54 = vrot.slane %v830_v51, 4  ;;  %v2058_v63 = vrot.slane %v2056_v4, 5  ;;  %v1731_v31 = vld [vmem:[#allocation2 + $0x24] sm:$0xf] }
  0xa7   : > { %4929 = vmatpush3.bf16.msra.mxu0 %v5137_v25  ;;  %v2062_v59 = vrot.slane %v2060_v39, 4  ;;  %v5163_v25 = vld [vmem:[#allocation7 + $0x90] sm:$0xff]   ;;  %v1341_v1 = vsel %vm5748_vm2, %v5732_v47, %v1340_v45  ;;  %v5911_v37 = vsel %vm5748_vm2, %v1342_v48, %v5730_v46  ;;  %v5913_v6 = vrot.slane %v843_v57, 5  ;;  %v5120_v50 = vld [vmem:[#allocation3 + $0xe0] ss:$12 sps:$4 sm:$0xff]  }
  0xa8   : > { %4930 = vmatprep.subr.bf16.mxu0 %v5147_v8  ;;  %v2068_v0 = vrot.slane %v2066_v40, 5  ;;  %v2072_v11 = vrot.slane %v2070_v19, 4  ;;  %v1799_v9 = vrot.slane %v5868_v52, 4  ;;  %v2059_v16 = vsel %vm5712_vm14, %v2054_v7, %v2058_v63  ;;  %4909 = vmatmul.mubr.bf16.vlgmr.msra.gmra.mxu1 %v5120_v50  ;;  %v5175_v50 = vld [vmem:[#allocation7 + $0x80] sm:$0xff]   ;;  %v1981_v52 = vld [vmem:[#allocation2 + $0x34] sm:$0xf] }
  0xa9   : > { %v2063_v62 = vor.u32 %v2062_v59, %v2058_v63  ;;  %v836_v18 = vsel %vm5712_vm14, %v831_v54, %v5703_v27  ;;  %2190 = vst [vmem:[#allocation3 + $0xf8] sm:$0xf] %v2059_v16  ;;  %vm5921_vm8 = vcmp.ne.s16.totalorder %v1341_v1, 0  ;;  %v7005_v26 = vmov 0  ;;  %4733 = vmatpush3.bf16.msra.mxu1 %v5122_v43  ;;  %v5169_v43 = vld [vmem:[#allocation7 + $0x88] sm:$0xff]  }
  0xaa   : > { %v5128_v13 = vld [vmem:[#allocation3 + $0xd8] ss:$12 sps:$4 sm:$0xff]   ;;  %v2073_v12 = vor.u32 %v2072_v11, %v2068_v0  ;;  %v7006_v26 = vsel %vm5921_vm8, 4294967295, %v7005_v26  ;;  %vm6938_vm7 = vcmp.ne.s16.totalorder %v5911_v37, 0  ;;  %v846_v28 = vsel %vm5712_vm14, %v5728_v44, %v5913_v6  ;;  %4734 = vmatprep.subr.bf16.mxu1 %v5123_v58 }
  0xab   : > { %4931 = vmatpush3.bf16.msra.mxu0 %v5147_v8  ;;  %v847_v30 = vshrl.u32 %v5901_v38, 16  ;;  %v2064_v8 = vrot.slane %v2063_v62, 4  ;;  %v1996_v2 = vsel %vm5921_vm8, %v1979_v49, 0  ;;  %v1997_v33 = vsel %vm6938_vm7, %v1980_v53, 0  ;;  %v5132_v49 = vld [vmem:[#allocation7 + $0x28] sm:$0xff]   ;;  %v5133_v11 = vld [vmem:[#allocation7 + $0x60] sm:$0xff]  }
  0xac   : > { %4932 = vmatprep.subr.bf16.mxu0 %v5157_v42  ;;  %2596 = vmatmul.mubr.bf16.gmra.mxu0 %v5128_v13  ;;  %v2074_v7 = vrot.slane %v2073_v12, 4  ;;  %v2076_v35 = vshll.u32 %v1996_v2, 16  ;;  %v2080_v36 = vshrl.u32 %v1996_v2, 16  ;;  %v2086_v51 = vshll.u32 %v1997_v33, 16 }
  0xad   : > { %v2090_v4 = vshrl.u32 %v1997_v33, 16  ;;  %v2069_v38 = vsel %vm5712_vm14, %v2064_v8, %v2068_v0  ;;  %vm5937_vm0 = vcmp.ne.s16.totalorder %v836_v18, 0  ;;  %vm5941_vm11 = vcmp.ne.s16.totalorder %v846_v28, 0  ;;  %4735 = vmatpush3.bf16.msra.mxu1 %v5126_v24  ;;  %v1946_v33 = vld [vmem:[#allocation2 + $0x28] sm:$0xf] }
  0xae   : > { %v468_v19 = vadd.s32 72, %v5653_v41  ;;  %2191 = vst [vmem:[#allocation3 + $0x104] sm:$0xf] %v2069_v38  ;;  %v2078_v45 = vrot.slane %v2076_v35, 5  ;;  %v2082_v48 = vrot.slane %v2080_v36, 4  ;;  %v1747_v53 = vsel %vm5937_vm0, %v1730_v20, 0  ;;  %4736 = vmatprep.subr.bf16.mxu1 %v5131_v34 }
  0xaf   : > { %4933 = vmatpush3.bf16.msra.mxu0 %v5157_v42  ;;  %v2088_v42 = vrot.slane %v2086_v51, 5  ;;  %v1748_v54 = vsel %vm5941_vm11, %v1731_v31, 0  ;;  %v1801_v57 = vshrl.u32 %v1747_v53, 16  ;;  %v1804_v58 = vshll.u32 %v1747_v53, 16  ;;  %v5136_v20 = vld [vmem:[#allocation7 + $0x20] sm:$0xff]   ;;  %v5180_v53 = vld [vmem:[#allocation7 + $0x1f8] sm:$0xff]  }
  0xb0   : > { %4934 = vmatprep.subr.bf16.mxu0 %v5163_v25  ;;  %v542_v63 = vand.u32 15, %v468_v19  ;;  %v2079_v59 = vsel %vm5712_vm14, %v2074_v7, %v2078_v45  ;;  %v2083_v0 = vor.u32 %v2082_v48, %v2078_v45  ;;  %v1810_v21 = vshrl.u32 %v1748_v54, 16  ;;  %v1947_v7 = vld [vmem:[#allocation2 + $0x2c] sm:$0xf]  ;;  %1962 = vst [vmem:[#allocation3 + $0x10c] sm:$0xf] %v1946_v33 }
  0xb1   : > { %v1813_v1 = vshll.u32 %v1748_v54, 16  ;;  %2192 = vst [vmem:[#allocation3 + $0x110] sm:$0xf] %v2079_v59  ;;  %v1803_v13 = vrot.slane %v1801_v57, 7  ;;  %v2092_v16 = vrot.slane %v2090_v4, 4  ;;  %v470_v62 = vadd.s32 88, %v5653_v41  ;;  %4737 = vmatpush3.bf16.msra.mxu1 %v5132_v49 }
  0xb2   : > { %vm692_vm7 = vcmp.lt.s32.totalorder %v542_v63, 15  ;;  %v2084_v12 = vrot.slane %v2083_v0, 4  ;;  %v5953_v18 = vrot.slane %v1810_v21, 7  ;;  %v467_v24 = vadd.s32 64, %v5653_v41  ;;  %1963 = vst [vmem:[#allocation3 + $0x118] sm:$0xf] %v1947_v7  ;;  %4738 = vmatprep.subr.bf16.mxu1 %v5133_v11 }
  0xb3   : > { %4935 = vmatpush3.bf16.msra.mxu0 %v5163_v25  ;;  %vm1249_vm6 = vmpackc.low %vm692_vm7, %vm692_vm7  ;;  %v849_v28 = vrot.slane %v847_v30, 4  ;;  %v1806_v31 = vor.u32 %v1804_v58, %v1803_v13  ;;  %v1808_v8 = vrot.slane %v1803_v13, 4  ;;  %v2093_v2 = vor.u32 %v2092_v16, %v2088_v42  ;;  %v5141_v19 = vld [vmem:[#allocation7 + $0x58] sm:$0xff]  }
  0xb4   : > { %4936 = vmatprep.subr.bf16.mxu0 %v5169_v43  ;;  %v1265_v25 = vsel %vm1249_vm6, 65537, %v6955_v10  ;;  %v2089_v34 = vsel %vm5712_vm14, %v2084_v12, %v2088_v42  ;;  %v1815_v35 = vor.u32 %v1813_v1, %v5953_v18  ;;  %v556_v38 = vand.u32 15, %v470_v62  ;;  %v5142_v63 = vld [vmem:[#allocation7 + $0x18] sm:$0xff]   ;;  %v5143_v1 = vld [vmem:[#allocation7 + $0x50] sm:$0xff]  }
  0xb5   : > { %v1353_v36 = vshrl.u32 %v1265_v25, 16  ;;  %v1356_v51 = vshll.u32 %v1265_v25, 16  ;;  %v5129_v4 = vld [vmem:[#allocation3 + $0xf8] ss:$12 sps:$4 sm:$0xff]   ;;  %2193 = vst [vmem:[#allocation3 + $0x11c] sm:$0xf] %v2089_v34  ;;  %v1807_v30 = vsel %vm5748_vm2, %v1799_v9, %v1806_v31  ;;  %v850_v45 = vor.u32 %v849_v28, %v5913_v6  ;;  %4739 = vmatpush3.bf16.msra.mxu1 %v5136_v20 }
  0xb6   : > { %v1816_v48 = vsel %vm5748_vm2, %v1808_v8, %v1815_v35  ;;  %1928 = vst [vmem:[#allocation3 + $0xf0] sm:$0xf] %v1807_v30  ;;  %v5967_v49 = vrot.slane %v2093_v2, 4  ;;  %4912 = vmatprep.mubr.bf16.mxu1 %v5129_v4  ;;  %vm694_vm6 = vcmp.lt.s32.totalorder %v556_v38, 15  ;;  %v5970_v9 = vadd.s32 104, %v5653_v41  ;;  %4740 = vmatprep.subr.bf16.mxu1 %v5141_v19  ;;  %v5146_v28 = vld [vmem:[#allocation7 + $0x10] sm:$0xff]  }
  0xb7   : > { %4937 = vmatpush3.bf16.msra.mxu0 %v5169_v43  ;;  %v1355_v42 = vrot.slane %v1353_v36, 7  ;;  %v535_v43 = vand.u32 15, %v467_v24  ;;  %1929 = vst [vmem:[#allocation3 + $0xfc] sm:$0xf] %v1816_v48  ;;  %v851_v54 = vrot.slane %v850_v45, 4  ;;  %v5973_v6 = vadd.s32 120, %v5653_v41  ;;  %vm1251_vm7 = vmpackc.low %vm694_vm6, %vm694_vm6 }
  0xb8   : > { %4938 = vmatprep.subr.bf16.mxu0 %v5175_v50  ;;  %v1817_v0 = vrot.slane %v5953_v18, 4  ;;  %v1982_v11 = vld [vmem:[#allocation2 + $0x38] sm:$0xf]  ;;  %v1267_v21 = vsel %vm1251_vm7, 65537, %v6955_v10  ;;  %v570_v16 = vand.u32 15, %v5970_v9  ;;  %v7013_v31 = vmov 0 }
  0xb9   : > { %v1358_v57 = vor.u32 %v1356_v51, %v1355_v42  ;;  %v1360_v58 = vrot.slane %v1355_v42, 4  ;;  %vm5975_vm4 = vcmp.ge.s32.totalorder %v535_v43, 1  ;;  %v856_v13 = vsel %vm5712_vm14, %v851_v54, %v5703_v27  ;;  %4741 = vmatpush3.bf16.msra.mxu1 %v5142_v63  ;;  %v1732_v34 = vld [vmem:[#allocation2 + $0x28] sm:$0xf]  ;;  %v5134_v38 = vld [vmem:[#allocation3 + $0xf4] ss:$12 sps:$4 sm:$0xff]  }
  0xba   : > { %vm756_vm13 = vmpackc.low %vm5975_vm4, %vm5975_vm4  ;;  %v584_v62 = vand.u32 15, %v5973_v6  ;;  %v1371_v20 = vshrl.u32 %v1267_v21, 16  ;;  %v1374_v24 = vshll.u32 %v1267_v21, 16  ;;  %vm6005_vm7 = vcmp.ne.s16.totalorder %v856_v13, 0  ;;  %4742 = vmatprep.subr.bf16.mxu1 %v5143_v1  ;;  %v5151_v30 = vld [vmem:[#allocation7 + $0x48] sm:$0xff]   ;;  %2603 = vmatprep.mubr.bf16.mxu0 %v5134_v38 }
  0xbb   : > { %4939 = vmatpush3.bf16.msra.mxu0 %v5175_v50  ;;  %v1359_v50 = vsel %vm5748_vm2, %v5732_v47, %v1358_v57  ;;  %v5995_v12 = vsel %vm5748_vm2, %v1360_v58, %v5730_v46  ;;  %v6003_v8 = vsel %vm756_vm13, 65537, %v6955_v10  ;;  %v1948_v38 = vld [vmem:[#allocation2 + $0x30] sm:$0xf]  ;;  %v1191_v25 = vld [vmem:[#allocation2 + $0x8] sm:$0xf] }
  0xbc   : > { %4812 = vmatprep.subr.bf16.mxu0 %v5180_v53  ;;  %vm5997_vm4 = vcmp.ne.s16.totalorder %v1359_v50, 0  ;;  %vm6942_vm6 = vcmp.ne.s16.totalorder %v5995_v12, 0  ;;  %v5130_v2 = vld [vmem:[#allocation3 + $0x110] ss:$12 sps:$4 sm:$0xff]   ;;  %v1373_v45 = vrot.slane %v1371_v20, 7  ;;  %v863_v63 = vshll.u32 %v6003_v8, 16 }
  0xbd   : > { %v7014_v31 = vsel %vm5997_vm4, 4294967295, %v7013_v31  ;;  %v1998_v33 = vsel %vm5997_vm4, %v1981_v52, 0  ;;  %v1999_v7 = vsel %vm6942_vm6, %v1982_v11, 0  ;;  %4913 = vmatmul.mubr.bf16.gmra.mxu1 %v5130_v2  ;;  %v1983_v53 = vld [vmem:[#allocation2 + $0x3c] sm:$0xf]  ;;  %v867_v59 = vshrl.u32 %v6003_v8, 16 }
  0xbe   : > { %v2096_v35 = vshll.u32 %v1998_v33, 16  ;;  %v2100_v36 = vshrl.u32 %v1998_v33, 16  ;;  %v2106_v51 = vshll.u32 %v1999_v7, 16  ;;  %v2110_v4 = vshrl.u32 %v1999_v7, 16  ;;  %v5138_v19 = vld [vmem:[#allocation3 + $0xf0] ss:$12 sps:$4 sm:$0xff]   ;;  %4743 = vmatpush3.bf16.msra.mxu1 %v5146_v28 }
  0xbf   : > { %v1984_v52 = vld [vmem:[#allocation2 + $0x40] sm:$0xf]  ;;  %v1376_v57 = vor.u32 %v1374_v24, %v1373_v45  ;;  %v1378_v58 = vrot.slane %v1373_v45, 4  ;;  %v5152_v11 = vld [vmem:[#allocation7 + $0x8] sm:$0xff]   ;;  %2604 = vmatmul.mubr.bf16.gmra.mxu0 %v5138_v19  ;;  %v1749_v50 = vsel %vm6005_vm7, %v1732_v34, 0  ;;  %4744 = vmatprep.subr.bf16.mxu1 %v5151_v30  ;;  %v6028_v2 = vrot.slane %v863_v63, 5 }
  0xc0   : > { %v2098_v48 = vrot.slane %v2096_v35, 5  ;;  %v2102_v42 = vrot.slane %v2100_v36, 4  ;;  %v2108_v43 = vrot.slane %v2106_v51, 5  ;;  %v2112_v54 = vrot.slane %v2110_v4, 4  ;;  %v5153_v20 = vld [vmem:[#allocation7 + $0x40] sm:$0xff]  }
  0xc1   : > { %v1377_v24 = vsel %vm5748_vm2, %v5732_v47, %v1376_v57  ;;  %v6026_v28 = vsel %vm5748_vm2, %v1378_v58, %v5730_v46  ;;  %v7017_v7 = vmov 0  ;;  %v1733_v35 = vld [vmem:[#allocation2 + $0x2c] sm:$0xf]  ;;  %v866_v4 = vsel %vm5712_vm14, %v5728_v44, %v6028_v2  ;;  %v5156_v19 = vld [vmem:[#allocation7] sm:$0xff]   ;;  %1964 = vst [vmem:[#allocation3 + $0x124] sm:$0xf] %v1948_v38 }
  0xc2   : > { %v2099_v21 = vsel %vm5712_vm14, %v5967_v49, %v2098_v48  ;;  %v2103_v1 = vor.u32 %v2102_v42, %v2098_v48  ;;  %v2113_v13 = vor.u32 %v2112_v54, %v2108_v43  ;;  %v1819_v49 = vshrl.u32 %v1749_v50, 16  ;;  %4745 = vmatpush3.bf16.msra.mxu1 %v5152_v11  ;;  %v6045_v57 = vld [vmem:[#allocation7 + $0x238] sm:$0xff]  }
  0xc3   : > { %2194 = vst [vmem:[#allocation3 + $0x128] sm:$0xf] %v2099_v21  ;;  %vm6030_vm13 = vcmp.ne.s16.totalorder %v1377_v24, 0  ;;  %vm6943_vm6 = vcmp.ne.s16.totalorder %v6026_v28, 0  ;;  %4746 = vmatprep.subr.bf16.mxu1 %v5153_v20  ;;  %v1822_v63 = vshll.u32 %v1749_v50, 16  ;;  %vm698_vm8 = vcmp.lt.s32.totalorder %v584_v62, 15 }
  0xc4   : > { %v2104_v33 = vrot.slane %v2103_v1, 4  ;;  %v7018_v7 = vsel %vm6030_vm13, 4294967295, %v7017_v7  ;;  %v2114_v34 = vrot.slane %v2113_v13, 4  ;;  %v2000_v36 = vsel %vm6030_vm13, %v1983_v53, 0  ;;  %v1949_v53 = vld [vmem:[#allocation2 + $0x34] sm:$0xf]  ;;  %vm1255_vm15 = vmpackc.low %vm698_vm8, %vm698_vm8 }
  0xc5   : > { %v2001_v51 = vsel %vm6943_vm6, %v1984_v52, 0  ;;  %v1821_v30 = vrot.slane %v1819_v49, 7  ;;  %v2116_v48 = vshll.u32 %v2000_v36, 16  ;;  %v2120_v42 = vshrl.u32 %v2000_v36, 16  ;;  %1965 = vst [vmem:[#allocation3 + $0x130] sm:$0xf] %v1949_v53 }
  0xc6   : > { %v2109_v45 = vsel %vm5712_vm14, %v2104_v33, %v2108_v43  ;;  %v2126_v54 = vshll.u32 %v2001_v51, 16  ;;  %v2130_v52 = vshrl.u32 %v2001_v51, 16  ;;  %vm6047_vm6 = vcmp.ne.s16.totalorder %v866_v4, 0  ;;  %4747 = vmatpush3.bf16.msra.mxu1 %v5156_v19  ;;  %v699_v19 = vld [vmem:[#allocation2 + $0x4] sm:$0x8] }
  0xc7   : > { %2195 = vst [vmem:[#allocation3 + $0x134] sm:$0xf] %v2109_v45  ;;  %v1826_v11 = vrot.slane %v1821_v30, 4  ;;  %v2118_v21 = vrot.slane %v2116_v48, 5  ;;  %v2122_v1 = vrot.slane %v2120_v42, 4  ;;  %v1750_v13 = vsel %vm6047_vm6, %v1733_v35, 0  ;;  %4956 = vmatprep.subr.bf16.mxu1 %v6045_v57 }
  0xc8   : > { %v2128_v43 = vrot.slane %v2126_v54, 5  ;;  %v1824_v20 = vor.u32 %v1822_v63, %v1821_v30  ;;  %v1828_v24 = vshrl.u32 %v1750_v13, 16  ;;  %v1831_v49 = vshll.u32 %v1750_v13, 16  ;;  %v1985_v53 = vld [vmem:[#allocation2 + $0x44] sm:$0xf] }
  0xc9   : > { %vm696_vm13 = vcmp.lt.s32.totalorder %v570_v16, 15  ;;  %v2119_v33 = vsel %vm5712_vm14, %v2114_v34, %v2118_v21  ;;  %v2123_v36 = vor.u32 %v2122_v1, %v2118_v21  ;;  %v2132_v50 = vrot.slane %v2130_v52, 4  ;;  %v1159_v21 = vld [vmem:[#allocation2 + $0x8] sm:$0xf] }
  0xca   : > { %vm1253_vm4 = vmpackc.low %vm696_vm13, %vm696_vm13  ;;  %2196 = vst [vmem:[#allocation3 + $0x140] sm:$0xf] %v2119_v33  ;;  %v1825_v35 = vsel %vm5748_vm2, %v1817_v0, %v1824_v20  ;;  %v6064_v9 = vrot.slane %v1828_v24, 7  ;;  %v469_v34 = vadd.s32 80, %v5653_v41  ;;  %v1271_v38 = vsel %vm1255_vm15, 65537, %v6955_v10 }
  0xcb   : > { %v1269_v16 = vsel %vm1253_vm4, 65537, %v6955_v10  ;;  %v2124_v51 = vrot.slane %v2123_v36, 4  ;;  %1930 = vst [vmem:[#allocation3 + $0x108] sm:$0xf] %v1825_v35  ;;  %v2133_v62 = vor.u32 %v2132_v50, %v2128_v43  ;;  %v869_v0 = vrot.slane %v867_v59, 4 }
  0xcc   : > { %v1389_v4 = vshrl.u32 %v1269_v16, 16  ;;  %v1392_v6 = vshll.u32 %v1269_v16, 16  ;;  %v1833_v30 = vor.u32 %v1831_v49, %v6064_v9  ;;  %v549_v18 = vand.u32 15, %v469_v34  ;;  %v1986_v59 = vld [vmem:[#allocation2 + $0x48] sm:$0xf] }
  0xcd   : > { %v2129_v48 = vsel %vm5712_vm14, %v2124_v51, %v2128_v43  ;;  %v1407_v52 = vshrl.u32 %v1271_v38, 16  ;;  %v1410_v63 = vshll.u32 %v1271_v38, 16  ;;  %v2134_v13 = vrot.slane %v2133_v62, 4  ;;  %v1160_v43 = vld [vmem:[#allocation2 + $0xc] sm:$0xf] }
  0xce   : > { %v5139_v45 = vld [vmem:[#allocation3 + $0x128] ss:$12 sps:$4 sm:$0xff]   ;;  %v1391_v42 = vrot.slane %v1389_v4, 7  ;;  %2197 = vst [vmem:[#allocation3 + $0x14c] sm:$0xf] %v2129_v48  ;;  %v1834_v54 = vsel %vm5748_vm2, %v1826_v11, %v1833_v30  ;;  %vm677_vm8 = vcmp.ge.s32.totalorder %v549_v18, 1  ;;  %v870_v20 = vor.u32 %v869_v0, %v6028_v2 }
  0xcf   : > { %4916 = vmatprep.mubr.bf16.mxu1 %v5139_v45  ;;  %1931 = vst [vmem:[#allocation3 + $0x114] sm:$0xf] %v1834_v54  ;;  %vm758_vm15 = vmpackc.low %vm677_vm8, %vm677_vm8  ;;  %v1409_v24 = vrot.slane %v1407_v52, 7  ;;  %v1835_v11 = vrot.slane %v6064_v9, 4  ;;  %v700_v33 = vld [vmem:[#allocation2 + $0x8] sm:$0xf] }
  0xd0   : > { %v1394_v1 = vor.u32 %v1392_v6, %v1391_v42  ;;  %v1396_v8 = vrot.slane %v1391_v42, 4  ;;  %1175 = vst [vmem:[#allocation3 + $0x4] sm:$0xf] %v1159_v21  ;;  %v6078_v49 = vsel %vm758_vm15, 65537, %v6955_v10  ;;  %vm7021_vm4 = vcmp.ne.s16.totalorder %v5701_v22, 0 }
  0xd1   : > { %v6083_v36 = vsel %vm7021_vm4, %v699_v19, 0  ;;  %1176 = vst [vmem:[#allocation3 + $0x10] sm:$0xf] %v1160_v43  ;;  %v871_v35 = vrot.slane %v870_v20, 4  ;;  %v883_v16 = vshll.u32 %v6078_v49, 16  ;;  %v1412_v51 = vor.u32 %v1410_v63, %v1409_v24 }
  0xd2   : > { %v1395_v50 = vsel %vm5748_vm2, %v5732_v47, %v1394_v1  ;;  %v6091_v2 = vsel %vm5748_vm2, %v1396_v8, %v5730_v46  ;;  %v1414_v4 = vrot.slane %v1409_v24, 4  ;;  %v1987_v30 = vld [vmem:[#allocation2 + $0x4c] sm:$0xf]  ;;  %v6107_v18 = vsel %vm5742_vm1, %v700_v33, 0  ;;  %v1988_v42 = vld [vmem:[#allocation2 + $0x50] sm:$0x1] }
  0xd3   : > { %vm6094_vm13 = vcmp.ne.s16.totalorder %v1395_v50, 0  ;;  %vm6952_vm8 = vcmp.ne.s16.totalorder %v6091_v2, 0  ;;  %v6103_v38 = vrot.slane %v883_v16, 5  ;;  %v7024_v52 = vmov 0  ;;  %v1734_v21 = vld [vmem:[#allocation2 + $0x30] sm:$0xf] }
  0xd4   : > { %v2002_v6 = vsel %vm6094_vm13, %v1985_v53, 0  ;;  %v2003_v62 = vsel %vm6952_vm8, %v1986_v59, 0  ;;  %v1413_v53 = vsel %vm5748_vm2, %v5732_v47, %v1412_v51  ;;  %vm6112_vm15 = vcmp.ne.s16.totalorder %v1414_v4, 0  ;;  %v5144_v1 = vld [vmem:[#allocation3 + $0x10c] ss:$12 sps:$4 sm:$0xff]  }
  0xd5   : > { %v2136_v0 = vshll.u32 %v2002_v6, 16  ;;  %v2140_v19 = vshrl.u32 %v2002_v6, 16  ;;  %v2146_v45 = vshll.u32 %v2003_v62, 16  ;;  %v2150_v48 = vshrl.u32 %v2003_v62, 16  ;;  %v5140_v54 = vld [vmem:[#allocation3 + $0x140] ss:$12 sps:$4 sm:$0xff]   ;;  %2611 = vmatprep.mubr.bf16.mxu0 %v5144_v1 }
  0xd6   : > { %v7025_v52 = vsel %vm6112_vm15, 4294967295, %v7024_v52  ;;  %v887_v63 = vshrl.u32 %v6078_v49, 16  ;;  %v5148_v8 = vld [vmem:[#allocation3 + $0x108] ss:$12 sps:$4 sm:$0xff]   ;;  %v876_v20 = vsel %vm5712_vm14, %v871_v35, %v5703_v27  ;;  %v886_v43 = vsel %vm5712_vm14, %v5728_v44, %v6103_v38  ;;  %4917 = vmatmul.mubr.bf16.gmra.mxu1 %v5140_v54  ;;  %v701_v62 = vld [vmem:[#allocation2 + $0xc] sm:$0xf] }
  0xd7   : > { %v2138_v59 = vrot.slane %v2136_v0, 5  ;;  %v2142_v47 = vrot.slane %v2140_v19, 4  ;;  %v2148_v24 = vrot.slane %v2146_v45, 5  ;;  %vm6124_vm4 = vcmp.ne.s16.totalorder %v1413_v53, 0  ;;  %v1735_v16 = vld [vmem:[#allocation2 + $0x34] sm:$0xf]  ;;  %2612 = vmatmul.mubr.bf16.gmra.mxu0 %v5148_v8 }
  0xd8   : > { %v7026_v33 = vmov 0  ;;  %v2005_v50 = vsel %vm6112_vm15, %v1988_v42, 0  ;;  %v2004_v51 = vsel %vm6124_vm4, %v1987_v30, 0  ;;  %v2152_v4 = vrot.slane %v2150_v48, 4  ;;  %v1950_v0 = vld [vmem:[#allocation2 + $0x38] sm:$0xf] }
  0xd9   : > { %v7027_v33 = vsel %vm6124_vm4, 4294967295, %v7026_v33  ;;  %v2139_v35 = vsel %vm5712_vm14, %v2134_v13, %v2138_v59  ;;  %v2166_v6 = vshll.u32 %v2005_v50, 16  ;;  %v2143_v19 = vor.u32 %v2142_v47, %v2138_v59  ;;  %v1951_v42 = vld [vmem:[#allocation2 + $0x3c] sm:$0xf]  ;;  %1966 = vst [vmem:[#allocation3 + $0x13c] sm:$0xf] %v1950_v0 }
  0xda   : > { %2198 = vst [vmem:[#allocation3 + $0x158] sm:$0xf] %v2139_v35  ;;  %v2156_v45 = vshll.u32 %v2004_v51, 16  ;;  %v2160_v54 = vshrl.u32 %v2004_v51, 16  ;;  %vm6134_vm8 = vcmp.ne.s16.totalorder %v876_v20, 0  ;;  %v2153_v1 = vor.u32 %v2152_v4, %v2148_v24 }
  0xdb   : > { %v2168_v13 = vrot.slane %v2166_v6, 5  ;;  %vm6138_vm15 = vcmp.ne.s16.totalorder %v886_v43, 0  ;;  %v1751_v30 = vsel %vm6134_vm8, %v1734_v21, 0  ;;  %1967 = vst [vmem:[#allocation3 + $0x148] sm:$0xf] %v1951_v42  ;;  %v2144_v48 = vrot.slane %v2143_v19, 4 }
  0xdc   : > { %v2158_v8 = vrot.slane %v2156_v45, 5  ;;  %v2162_v59 = vrot.slane %v2160_v54, 4  ;;  %v1752_v20 = vsel %vm6138_vm15, %v1735_v16, 0  ;;  %v2154_v47 = vrot.slane %v2153_v1, 4  ;;  %v3215_v21 = vld [vmem:[#allocation2 + $0x14] sm:$0x8] }
  0xdd   : > { %v1837_v50 = vshrl.u32 %v1751_v30, 16  ;;  %v1840_v35 = vshll.u32 %v1751_v30, 16  ;;  %v1846_v51 = vshrl.u32 %v1752_v20, 16  ;;  %v2149_v43 = vsel %vm5712_vm14, %v2144_v48, %v2148_v24  ;;  %v1161_v42 = vld [vmem:[#allocation2 + $0x10] sm:$0xf] }
  0xde   : > { %v2163_v4 = vor.u32 %v2162_v59, %v2158_v8  ;;  %v1849_v6 = vshll.u32 %v1752_v20, 16  ;;  %v961_v0 = vsel %vm5759_vm5, %v701_v62, 0  ;;  %2199 = vst [vmem:[#allocation3 + $0x164] sm:$0xf] %v2149_v43  ;;  %v2159_v19 = vsel %vm5712_vm14, %v2154_v47, %v2158_v8  ;;  %v1162_v1 = vld [vmem:[#allocation2 + $0x14] sm:$0xf] }
  0xdf   : > { %v1839_v45 = vrot.slane %v1837_v50, 7  ;;  %v6152_v16 = vrot.slane %v1846_v51, 7  ;;  %v980_v54 = vshrl.u32 %v6083_v36, 16  ;;  %1177 = vst [vmem:[#allocation3 + $0x1c] sm:$0xf] %v1161_v42  ;;  %v985_v24 = vshrl.u32 %v6107_v18, 16 }
  0xe0   : > { %v2164_v30 = vrot.slane %v2163_v4, 4  ;;  %2200 = vst [vmem:[#allocation3 + $0x170] sm:$0xf] %v2159_v19  ;;  %v988_v48 = vshll.u32 %v6107_v18, 16  ;;  %v994_v62 = vshrl.u32 %v961_v0, 16  ;;  %v997_v4 = vshll.u32 %v961_v0, 16 }
  0xe1   : > { %v3216_v59 = vld [vmem:[#allocation2 + $0x18] sm:$0xf]  ;;  %1178 = vst [vmem:[#allocation3 + $0x28] sm:$0xf] %v1162_v1  ;;  %v1842_v20 = vor.u32 %v1840_v35, %v1839_v45  ;;  %v1844_v43 = vrot.slane %v1839_v45, 4  ;;  %v1851_v8 = vor.u32 %v1849_v6, %v6152_v16  ;;  %v4419_v47 = vrot.slane %v980_v54, 11 }
  0xe2   : > { %v3217_v50 = vld [vmem:[#allocation2 + $0x1c] sm:$0xf]  ;;  %v2169_v36 = vsel %vm5712_vm14, %v2164_v30, %v2168_v13  ;;  %v987_v51 = vrot.slane %v985_v24, 7  ;;  %v6160_v42 = vrot.slane %v994_v62, 7  ;;  %vm7032_vm4 = vcmp.ne.s16.totalorder %v5701_v22, 0 }
  0xe3   : > { %2201 = vst [vmem:[#allocation3 + $0x17c] sm:$0xf] %v2169_v36  ;;  %v1843_v18 = vsel %vm5748_vm2, %v1835_v11, %v1842_v20  ;;  %v1852_v35 = vsel %vm5748_vm2, %v1844_v43, %v1851_v8  ;;  %v3232_v6 = vsel %vm7032_vm4, %v3215_v21, 0  ;;  %v3233_v19 = vsel %vm5742_vm1, %v3216_v59, 0  ;;  %v702_v13 = vld [vmem:[#allocation2 + $0x10] sm:$0xf] }
  0xe4   : > { %1932 = vst [vmem:[#allocation3 + $0x120] sm:$0xf] %v1843_v18  ;;  %1933 = vst [vmem:[#allocation3 + $0x12c] sm:$0xf] %v1852_v35  ;;  %v990_v45 = vor.u32 %v988_v48, %v987_v51  ;;  %v992_v0 = vrot.slane %v987_v51, 4  ;;  %v999_v54 = vor.u32 %v997_v4, %v6160_v42  ;;  %v3234_v9 = vsel %vm5759_vm5, %v3217_v50, 0 }
  0xe5   : > { %v703_v11 = vld [vmem:[#allocation2 + $0x14] sm:$0xf]  ;;  %v1952_v1 = vld [vmem:[#allocation2 + $0x40] sm:$0xf]  ;;  %v3250_v30 = vshrl.u32 %v3232_v6, 16  ;;  %v3255_v24 = vshrl.u32 %v3233_v19, 16 }
  0xe6   : > { %v3258_v62 = vshll.u32 %v3233_v19, 16  ;;  %v3264_v22 = vshrl.u32 %v3234_v9, 16  ;;  %v1953_v21 = vld [vmem:[#allocation2 + $0x44] sm:$0xf]  ;;  %1968 = vst [vmem:[#allocation3 + $0x154] sm:$0xf] %v1952_v1  ;;  %v991_v59 = vsel %vm5748_vm2, %v4419_v47, %v990_v45  ;;  %v1000_v48 = vsel %vm5748_vm2, %v992_v0, %v999_v54 }
  0xe7   : > { %v5149_v55 = vld [vmem:[#allocation3 + $0x158] ss:$12 sps:$4 sm:$0xff]   ;;  %v3267_v20 = vshll.u32 %v3234_v9, 16  ;;  %v471_v43 = vadd.s32 96, %v5653_v41  ;;  %1969 = vst [vmem:[#allocation3 + $0x160] sm:$0xf] %v1953_v21 }
  0xe8   : > { %1143 = vst [vmem:[#allocation3] sm:$0xf] %v991_v59  ;;  %1144 = vst [vmem:[#allocation3 + $0xc] sm:$0xf] %v1000_v48  ;;  %v4517_v61 = vrot.slane %v3250_v30, 11  ;;  %v3257_v8 = vrot.slane %v3255_v24, 7  ;;  %4920 = vmatprep.mubr.bf16.mxu1 %v5149_v55 }
  0xe9   : > { %v6180_v50 = vrot.slane %v3264_v22, 7  ;;  %v889_v36 = vrot.slane %v887_v63, 4  ;;  %v3218_v51 = vld [vmem:[#allocation2 + $0x20] sm:$0xf]  ;;  %v563_v4 = vand.u32 15, %v471_v43  ;;  %v1853_v47 = vrot.slane %v6152_v16, 4 }
  0xea   : > { %v962_v18 = vsel %vm5820_vm9, %v702_v13, 0  ;;  %v963_v35 = vsel %vm5849_vm12, %v703_v11, 0  ;;  %v3260_v6 = vor.u32 %v3258_v62, %v3257_v8  ;;  %v3262_v19 = vrot.slane %v3257_v8, 4  ;;  %v3219_v54 = vld [vmem:[#allocation2 + $0x24] sm:$0xf] }
  0xeb   : > { %v3269_v45 = vor.u32 %v3267_v20, %v6180_v50  ;;  %v890_v0 = vor.u32 %v889_v36, %v6103_v38  ;;  %v5150_v49 = vld [vmem:[#allocation3 + $0x170] ss:$12 sps:$4 sm:$0xff]   ;;  %v3429_v63 = vld [vmem:[#allocation2 + $0x18] sm:$0xf]  ;;  %vm6191_vm1 = vcmp.ge.s32.totalorder %v563_v4, 1  ;;  %v1001_v30 = vrot.slane %v6160_v42, 4 }
  0xec   : > { %v3430_v9 = vld [vmem:[#allocation2 + $0x1c] sm:$0xf]  ;;  %v5154_v13 = vld [vmem:[#allocation3 + $0x124] ss:$12 sps:$4 sm:$0xff]   ;;  %v3261_v11 = vsel %vm5748_vm2, %v4517_v61, %v3260_v6  ;;  %v1003_v22 = vshrl.u32 %v962_v18, 16  ;;  %4921 = vmatmul.mubr.bf16.gmra.mxu1 %v5150_v49  ;;  %vm760_vm5 = vmpackc.low %vm6191_vm1, %vm6191_vm1  ;;  %v1006_v21 = vshll.u32 %v962_v18, 16 }
  0xed   : > { %v3270_v24 = vsel %vm5748_vm2, %v3262_v19, %v3269_v45  ;;  %v891_v62 = vrot.slane %v890_v0, 4  ;;  %v5158_v38 = vld [vmem:[#allocation3 + $0x120] ss:$12 sps:$4 sm:$0xff]   ;;  %v1012_v55 = vshrl.u32 %v963_v35, 16  ;;  %v1015_v59 = vshll.u32 %v963_v35, 16  ;;  %2619 = vmatprep.mubr.bf16.mxu0 %v5154_v13 }
  0xee   : > { %v3235_v42 = vsel %vm5820_vm9, %v3218_v51, 0  ;;  %v7035_v48 = vmov 0   ;;  %v1736_v61 = vld [vmem:[#allocation2 + $0x38] sm:$0xf]  ;;  %v1005_v8 = vrot.slane %v1003_v22, 7  ;;  %v3236_v36 = vsel %vm5849_vm12, %v3219_v54, 0  ;;  %2620 = vmatmul.mubr.bf16.gmra.mxu0 %v5158_v38 }
  0xef   : > { %v6206_v20 = vsel %vm760_vm5, 65537, %v7035_v48  ;;  %v896_v43 = vsel %vm5712_vm14, %v891_v62, %v5703_v27  ;;  %v1645_v4 = vld [vmem:[#allocation3] sm:$0xff]  ;;  %v1647_v18 = vld [vmem:[#allocation3 + $0xc] sm:$0xff]  ;;  %v1163_v0 = vld [vmem:[#allocation2 + $0x18] sm:$0xf]  ;;  %v6223_v13 = vrot.slane %v1012_v55, 7 }
  0xf0   : > { %v5159_v35 = vld [vmem:[#allocation3 + $0x4] ss:$12 sps:$4 sm:$0xff]   ;;  %v903_v3 = vshll.u32 %v6206_v20, 16  ;;  %v907_v51 = vshrl.u32 %v6206_v20, 16  ;;  %3413 = vst [vmem:[#allocation3] sm:$0xf] %v3261_v11  ;;  %v4469_v6 = vcombine.low %v1645_v4, %v1647_v18  ;;  %v1008_v45 = vor.u32 %v1006_v21, %v1005_v8 }
  0xf1   : > { %3414 = vst [vmem:[#allocation3 + $0xc] sm:$0xf] %v3270_v24  ;;  %3445 = vst [vmem:[#allocation3 + $0x4] sm:$0xf] %v3429_v63  ;;  %vm6215_vm9 = vcmp.ne.s16.totalorder %v896_v43, 0  ;;  %v1010_v29 = vrot.slane %v1005_v8, 4  ;;  %3053 = vmatprep.mubr.bf16.mxu1 %v5159_v35  ;;  %v1017_v21 = vor.u32 %v1015_v59, %v6223_v13 }
  0xf2   : > { %3446 = vst [vmem:[#allocation3 + $0x10] sm:$0xf] %v3430_v9  ;;  %v1164_v54 = vld [vmem:[#allocation2 + $0x1c] sm:$0xf]  ;;  %v6219_v49 = vrot.slane %v903_v3, 5  ;;  %v1753_v1 = vsel %vm6215_vm9, %v1736_v61, 0  ;;  %v1009_v62 = vsel %vm5748_vm2, %v1001_v30, %v1008_v45 }
  0xf3   : > { %v3271_v63 = vrot.slane %v6180_v50, 4  ;;  %1179 = vst [vmem:[#allocation3 + $0x34] sm:$0xf] %v1163_v0  ;;  %1180 = vst [vmem:[#allocation3 + $0x40] sm:$0xf] %v1164_v54  ;;  %v1855_v11 = vshrl.u32 %v1753_v1, 16  ;;  %v1018_v35 = vsel %vm5748_vm2, %v1010_v29, %v1017_v21 }
  0xf4   : > { %v1737_v9 = vld [vmem:[#allocation2 + $0x3c] sm:$0xf]  ;;  %v1858_v24 = vshll.u32 %v1753_v1, 16  ;;  %v3273_v22 = vshrl.u32 %v3235_v42, 16  ;;  %v906_v38 = vsel %vm5712_vm14, %v5728_v44, %v6219_v49  ;;  %1145 = vst [vmem:[#allocation3 + $0x18] sm:$0xf] %v1009_v62  ;;  %3054 = vmatmul.mubr.bf16.vlgmr.msra.gmra.mxu1 %v4469_v6 }
  0xf5   : > { %v3276_v55 = vshll.u32 %v3235_v42, 16  ;;  %v3282_v20 = vshrl.u32 %v3236_v36, 16  ;;  %v5188_v50 = vld [vmem:[#allocation7 + $0x230] sm:$0xff]   ;;  %vm6233_vm12 = vcmp.ne.s16.totalorder %v906_v38, 0  ;;  %v1857_v61 = vrot.slane %v1855_v11, 7  ;;  %4957 = vmatpush3.bf16.msra.mxu1 %v6045_v57 }
  0xf6   : > { %v3275_v8 = vrot.slane %v3273_v22, 7  ;;  %v3285_v4 = vshll.u32 %v3236_v36, 16  ;;  %v704_v30 = vld [vmem:[#allocation2 + $0x18] sm:$0xf]  ;;  %v1754_v18 = vsel %vm6233_vm12, %v1737_v9, 0  ;;  %v473_v42 = vadd.s32 112, %v5653_v41  ;;  %4958 = vmatprep.subr.bf16.mxu1 %v5188_v50 }
  0xf7   : > { %v6241_v59 = vrot.slane %v3282_v20, 7  ;;  %v705_v3 = vld [vmem:[#allocation2 + $0x1c] sm:$0xf]  ;;  %v1860_v45 = vor.u32 %v1858_v24, %v1857_v61  ;;  %v1862_v0 = vrot.slane %v1857_v61, 4  ;;  %v1864_v54 = vshrl.u32 %v1754_v18, 16  ;;  %v5195_v36 = vld [vmem:[#allocation7 + $0x228] sm:$0xff]  }
  0xf8   : > { %v1867_v1 = vshll.u32 %v1754_v18, 16  ;;  %1146 = vst [vmem:[#allocation3 + $0x24] sm:$0xf] %v1018_v35  ;;  %v1954_v11 = vld [vmem:[#allocation2 + $0x48] sm:$0xf]  ;;  %v3278_v6 = vor.u32 %v3276_v55, %v3275_v8  ;;  %v3280_v62 = vrot.slane %v3275_v8, 4 }
  0xf9   : > { %v3287_v9 = vor.u32 %v3285_v4, %v6241_v59  ;;  %v577_v22 = vand.u32 15, %v473_v42  ;;  %v1955_v29 = vld [vmem:[#allocation2 + $0x4c] sm:$0xf]  ;;  %1970 = vst [vmem:[#allocation3 + $0x16c] sm:$0xf] %v1954_v11  ;;  %v1861_v41 = vsel %vm5748_vm2, %v1853_v47, %v1860_v45  ;;  %v6250_v24 = vrot.slane %v1864_v54, 7  ;;  %4959 = vmatpush3.bf16.msra.mxu1 %v5188_v50 }
  0xfa   : > { %v909_v38 = vrot.slane %v907_v51, 4  ;;  %v964_v57 = vsel %vm5937_vm0, %v704_v30, 0  ;;  %1971 = vst [vmem:[#allocation3 + $0x178] sm:$0xf] %v1955_v29  ;;  %1934 = vst [vmem:[#allocation3 + $0x138] sm:$0xf] %v1861_v41  ;;  %v3279_v21 = vsel %vm5748_vm2, %v3271_v63, %v3278_v6  ;;  %4960 = vmatprep.subr.bf16.mxu1 %v5195_v36 }
  0xfb   : > { %v3288_v55 = vsel %vm5748_vm2, %v3280_v62, %v3287_v9  ;;  %v3431_v20 = vld [vmem:[#allocation2 + $0x20] sm:$0xf]  ;;  %v3432_v61 = vld [vmem:[#allocation2 + $0x24] sm:$0xf]  ;;  %vm681_vm4 = vcmp.ge.s32.totalorder %v577_v22, 1  ;;  %v965_v16 = vsel %vm5941_vm11, %v705_v3, 0  ;;  %v1869_v51 = vor.u32 %v1867_v1, %v6250_v24 }
  0xfc   : > { %v3220_v47 = vld [vmem:[#allocation2 + $0x28] sm:$0xf]  ;;  %v5198_v8 = vld [vmem:[#allocation7 + $0x220] sm:$0xff]   ;;  %v1649_v4 = vld [vmem:[#allocation3 + $0x18] sm:$0xff]  ;;  %v910_v30 = vor.u32 %v909_v38, %v6219_v49  ;;  %v1871_v18 = vrot.slane %v6250_v24, 4  ;;  %v1019_v63 = vrot.slane %v6223_v13, 4 }
  0xfd   : > { %vm762_vm1 = vmpackc.low %vm681_vm4, %vm681_vm4  ;;  %v1165_v35 = vld [vmem:[#allocation2 + $0x20] sm:$0xf]  ;;  %v1021_v54 = vshrl.u32 %v964_v57, 16  ;;  %v1024_v3 = vshll.u32 %v964_v57, 16  ;;  %v1030_v11 = vshrl.u32 %v965_v16, 16  ;;  %v1870_v1 = vsel %vm5748_vm2, %v1862_v0, %v1869_v51  ;;  %4961 = vmatpush3.bf16.msra.mxu1 %v5195_v36 }
  0xfe   : > { %v6265_v42 = vsel %vm762_vm1, 65537, %v7035_v48  ;;  %v1738_v45 = vld [vmem:[#allocation2 + $0x40] sm:$0xf]  ;;  %v1166_v6 = vld [vmem:[#allocation2 + $0x24] sm:$0xf]  ;;  %v911_v49 = vrot.slane %v910_v30, 4  ;;  %4962 = vmatprep.subr.bf16.mxu1 %v5198_v8 }
  0xff   : > { %1181 = vst [vmem:[#allocation3 + $0x4c] sm:$0xf] %v1165_v35  ;;  %v923_v62 = vshll.u32 %v6265_v42, 16  ;;  %v927_v13 = vshrl.u32 %v6265_v42, 16  ;;  %v3221_v9 = vld [vmem:[#allocation2 + $0x2c] sm:$0xf] }
 0x100   : > { %1182 = vst [vmem:[#allocation3 + $0x58] sm:$0xf] %v1166_v6  ;;  %1935 = vst [vmem:[#allocation3 + $0x144] sm:$0xf] %v1870_v1  ;;  %v1651_v48 = vld [vmem:[#allocation3 + $0x24] sm:$0xff]  ;;  %v1023_v22 = vrot.slane %v1021_v54, 7  ;;  %v916_v0 = vsel %vm5712_vm14, %v911_v49, %v5703_v27 }
 0x101   : > { %v5165_v50 = vld [vmem:[#allocation3 + $0x1c] ss:$12 sps:$4 sm:$0xff]   ;;  %v6271_v29 = vrot.slane %v1030_v11, 7  ;;  %v1033_v41 = vshll.u32 %v965_v16, 16  ;;  %3415 = vst [vmem:[#allocation3 + $0x18] sm:$0xf] %v3279_v21  ;;  %v4472_v38 = vcombine.low %v1649_v4, %v1651_v48  ;;  %4963 = vmatpush3.bf16.msra.mxu1 %v5198_v8 }
 0x102   : > { %3416 = vst [vmem:[#allocation3 + $0x24] sm:$0xf] %v3288_v55  ;;  %3447 = vst [vmem:[#allocation3 + $0x1c] sm:$0xf] %v3431_v20  ;;  %v6276_v57 = vrot.slane %v923_v62, 5  ;;  %v3237_v51 = vsel %vm5937_vm0, %v3220_v47, 0  ;;  %3061 = vmatprep.mubr.bf16.mxu1 %v5165_v50  ;;  %v1026_v55 = vor.u32 %v1024_v3, %v1023_v22 }
 0x103   : > { %3448 = vst [vmem:[#allocation3 + $0x28] sm:$0xf] %v3432_v61  ;;  %vm6280_vm5 = vcmp.ne.s16.totalorder %v916_v0, 0  ;;  %v1739_v21 = vld [vmem:[#allocation2 + $0x44] sm:$0xf]  ;;  %v1028_v20 = vrot.slane %v1023_v22, 4  ;;  %v1035_v61 = vor.u32 %v1033_v41, %v6271_v29  ;;  %3062 = vmatmul.mubr.bf16.gmra.mxu1 %v4472_v38 }
 0x104   : > { %v5205_v16 = vld [vmem:[#allocation7 + $0x218] sm:$0xff]   ;;  %v926_v39 = vsel %vm5712_vm14, %v5728_v44, %v6276_v57  ;;  %v1755_v36 = vsel %vm6280_vm5, %v1738_v45, 0  ;;  %v3238_v47 = vsel %vm5941_vm11, %v3221_v9, 0  ;;  %v3289_v4 = vrot.slane %v6241_v59, 4  ;;  %v1741_v9 = vld [vmem:[#allocation2 + $0x4c] sm:$0xf] }
 0x105   : > { %vm6294_vm0 = vcmp.ne.s16.totalorder %v926_v39, 0  ;;  %v1873_v42 = vshrl.u32 %v1755_v36, 16  ;;  %v1876_v54 = vshll.u32 %v1755_v36, 16  ;;  %v1027_v3 = vsel %vm5748_vm2, %v1019_v63, %v1026_v55  ;;  %4964 = vmatprep.subr.bf16.mxu1 %v5205_v16  ;;  %v5208_v48 = vld [vmem:[#allocation7 + $0x210] sm:$0xff]   ;;  %v5161_v50 = vld [vmem:[#allocation3 + $0x13c] ss:$12 sps:$4 sm:$0xff]  }
 0x106   : > { %v1756_v11 = vsel %vm6294_vm0, %v1739_v21, 0  ;;  %v1036_v45 = vsel %vm5748_vm2, %v1028_v20, %v1035_v61  ;;  %1147 = vst [vmem:[#allocation3 + $0x30] sm:$0xf] %v1027_v3  ;;  %v3291_v40 = vshrl.u32 %v3237_v51, 16  ;;  %v3294_v6 = vshll.u32 %v3237_v51, 16  ;;  %2627 = vmatprep.mubr.bf16.mxu0 %v5161_v50  ;;  %4965 = vmatpush3.bf16.msra.mxu1 %v5205_v16 }
 0x107   : > { %v1875_v59 = vrot.slane %v1873_v42, 7  ;;  %v1882_v1 = vshrl.u32 %v1756_v11, 16  ;;  %v1885_v49 = vshll.u32 %v1756_v11, 16  ;;  %1148 = vst [vmem:[#allocation3 + $0x3c] sm:$0xf] %v1036_v45  ;;  %v3300_v62 = vshrl.u32 %v3238_v47, 16  ;;  %4966 = vmatprep.subr.bf16.mxu1 %v5208_v48 }
 0x108   : > { %v5164_v63 = vld [vmem:[#allocation3 + $0x138] ss:$12 sps:$4 sm:$0xff]   ;;  %v3293_v22 = vrot.slane %v3291_v40, 7  ;;  %v706_v55 = vld [vmem:[#allocation2 + $0x20] sm:$0xf]  ;;  %v3303_v20 = vshll.u32 %v3238_v47, 16 }
 0x109   : > { %v1878_v41 = vor.u32 %v1876_v54, %v1875_v59  ;;  %v1880_v38 = vrot.slane %v1875_v59, 4  ;;  %v6304_v0 = vrot.slane %v1882_v1, 7  ;;  %v6306_v21 = vrot.slane %v3300_v62, 7  ;;  %v3433_v61 = vld [vmem:[#allocation2 + $0x28] sm:$0xf]  ;;  %2628 = vmatmul.mubr.bf16.gmra.mxu0 %v5164_v63  ;;  %v5218_v62 = vld [vmem:[#allocation7 + $0x200] sm:$0xff]  }
 0x10a   : > { %v3296_v8 = vor.u32 %v3294_v6, %v3293_v22  ;;  %v3298_v51 = vrot.slane %v3293_v22, 4  ;;  %v3434_v39 = vld [vmem:[#allocation2 + $0x2c] sm:$0xf]  ;;  %v929_v36 = vrot.slane %v927_v13, 4  ;;  %vm958_vm11 = vcmp.ne.s16.totalorder %v5728_v44, 0  ;;  %4967 = vmatpush3.bf16.msra.mxu1 %v5208_v48 }
 0x10b   : > { %v1879_v42 = vsel %vm5748_vm2, %v1871_v18, %v1878_v41  ;;  %v1887_v54 = vor.u32 %v1885_v49, %v6304_v0  ;;  %v707_v3 = vld [vmem:[#allocation2 + $0x24] sm:$0xf]  ;;  %v5215_v11 = vld [vmem:[#allocation7 + $0x208] sm:$0xff]   ;;  %v3305_v13 = vor.u32 %v3303_v20, %v6306_v21  ;;  %v1758_v24 = vsel %vm958_vm11, %v1741_v9, 0  ;;  %v3222_v45 = vld [vmem:[#allocation2 + $0x30] sm:$0xf] }
 0x10c   : > { %1936 = vst [vmem:[#allocation3 + $0x150] sm:$0xf] %v1879_v42  ;;  %v3297_v47 = vsel %vm5748_vm2, %v3289_v4, %v3296_v8  ;;  %v930_v16 = vor.u32 %v929_v36, %v6276_v57  ;;  %v3223_v18 = vld [vmem:[#allocation2 + $0x34] sm:$0xf]  ;;  %v1740_v59 = vld [vmem:[#allocation2 + $0x48] sm:$0xf]  ;;  %4968 = vmatprep.subr.bf16.mxu1 %v5215_v11 }
 0x10d   : > { %v1888_v40 = vsel %vm5748_vm2, %v1880_v38, %v1887_v54  ;;  %v1653_v6 = vld [vmem:[#allocation3 + $0x30] sm:$0xff]  ;;  %v1889_v1 = vrot.slane %v6304_v0, 4  ;;  %v1900_v49 = vshrl.u32 %v1758_v24, 16  ;;  %v966_v4 = vsel %vm6005_vm7, %v706_v55, 0 }
 0x10e   : > { %1937 = vst [vmem:[#allocation3 + $0x15c] sm:$0xf] %v1888_v40  ;;  %v1655_v50 = vld [vmem:[#allocation3 + $0x3c] sm:$0xff]  ;;  %v3306_v9 = vsel %vm5748_vm2, %v3298_v51, %v3305_v13  ;;  %v931_v63 = vrot.slane %v930_v16, 4  ;;  %v1903_v22 = vshll.u32 %v1758_v24, 16  ;;  %v967_v41 = vsel %vm6047_vm6, %v707_v3, 0  ;;  %4969 = vmatpush3.bf16.msra.mxu1 %v5215_v11 }
 0x10f   : > { %v5171_v57 = vld [vmem:[#allocation3 + $0x34] ss:$12 sps:$4 sm:$0xff]   ;;  %3417 = vst [vmem:[#allocation3 + $0x30] sm:$0xf] %v3297_v47  ;;  %3418 = vst [vmem:[#allocation3 + $0x3c] sm:$0xf] %v3306_v9  ;;  %v4475_v38 = vcombine.low %v1653_v6, %v1655_v50  ;;  %4970 = vmatprep.subr.bf16.mxu1 %v5218_v62 }
 0x110   : > { %3449 = vst [vmem:[#allocation3 + $0x34] sm:$0xf] %v3433_v61  ;;  %3450 = vst [vmem:[#allocation3 + $0x40] sm:$0xf] %v3434_v39  ;;  %v1037_v55 = vrot.slane %v6271_v29, 4  ;;  %v1039_v8 = vshrl.u32 %v966_v4, 16  ;;  %3069 = vmatprep.mubr.bf16.mxu1 %v5171_v57  ;;  %v936_v51 = vsel %vm5712_vm14, %v931_v63, %v5703_v27 }
 0x111   : > { %v1042_v20 = vshll.u32 %v966_v4, 16  ;;  %v1048_v36 = vshrl.u32 %v967_v41, 16  ;;  %v1051_v42 = vshll.u32 %v967_v41, 16  ;;  %v3239_v48 = vsel %vm6005_vm7, %v3222_v45, 0  ;;  %3070 = vmatmul.mubr.bf16.gmra.mxu1 %v4475_v38  ;;  %v1192_v6 = vld [vmem:[#allocation2 + $0xc] sm:$0xf] }
 0x112   : > { %vm6335_vm4 = vcmp.ne.s16.totalorder %v936_v51, 0  ;;  %v1902_v39 = vrot.slane %v1900_v49, 7  ;;  %v1041_v29 = vrot.slane %v1039_v8, 7  ;;  %v3240_v54 = vsel %vm6047_vm6, %v3223_v18, 0  ;;  %v1193_v49 = vld [vmem:[#allocation2 + $0x10] sm:$0xf]  ;;  %4971 = vmatpush3.bf16.msra.mxu1 %v5218_v62 }
 0x113   : > { %v1757_v3 = vsel %vm6335_vm4, %v1740_v59, 0  ;;  %v6343_v47 = vrot.slane %v1048_v36, 7  ;;  %v3307_v27 = vrot.slane %v6306_v21, 4  ;;  %v3309_v13 = vshrl.u32 %v3239_v48, 16  ;;  %v1167_v4 = vld [vmem:[#allocation2 + $0x28] sm:$0xf] }
 0x114   : > { %v1891_v16 = vshrl.u32 %v1757_v3, 16  ;;  %v1894_v24 = vshll.u32 %v1757_v3, 16  ;;  %v1044_v45 = vor.u32 %v1042_v20, %v1041_v29  ;;  %v1046_v40 = vrot.slane %v1041_v29, 4  ;;  %v1168_v57 = vld [vmem:[#allocation2 + $0x2c] sm:$0xf] }
 0x115   : > { %v1053_v58 = vor.u32 %v1051_v42, %v6343_v47  ;;  %v3311_v18 = vrot.slane %v3309_v13, 7  ;;  %v3312_v50 = vshll.u32 %v3239_v48, 16  ;;  %v3318_v59 = vshrl.u32 %v3240_v54, 16  ;;  %1183 = vst [vmem:[#allocation3 + $0x64] sm:$0xf] %v1167_v4 }
 0x116   : > { %v5167_v9 = vld [vmem:[#allocation3 + $0x154] ss:$12 sps:$4 sm:$0xff]   ;;  %v5170_v21 = vld [vmem:[#allocation3 + $0x150] ss:$12 sps:$4 sm:$0xff]   ;;  %v1893_v63 = vrot.slane %v1891_v16, 7  ;;  %v1905_v41 = vor.u32 %v1903_v22, %v1902_v39  ;;  %v1045_v11 = vsel %vm5748_vm2, %v1037_v55, %v1044_v45  ;;  %v3321_v29 = vshll.u32 %v3240_v54, 16 }
 0x117   : > { %1184 = vst [vmem:[#allocation3 + $0x70] sm:$0xf] %v1168_v57  ;;  %v1054_v38 = vsel %vm5748_vm2, %v1046_v40, %v1053_v58  ;;  %1149 = vst [vmem:[#allocation3 + $0x48] sm:$0xf] %v1045_v11  ;;  %v3314_v8 = vor.u32 %v3312_v50, %v3311_v18  ;;  %v3316_v20 = vrot.slane %v3311_v18, 4  ;;  %v6351_v51 = vrot.slane %v3318_v59, 7  ;;  %2635 = vmatprep.mubr.bf16.mxu0 %v5167_v9 }
 0x118   : > { %v3461_v36 = vld [vmem:[#allocation2 + $0x18] sm:$0xf]  ;;  %v1896_v42 = vor.u32 %v1894_v24, %v1893_v63  ;;  %v1898_v48 = vrot.slane %v1893_v63, 4  ;;  %1150 = vst [vmem:[#allocation3 + $0x54] sm:$0xf] %v1054_v38  ;;  %vm7046_vm6 = vcmp.ne.s16.totalorder %v5730_v46, 0  ;;  %2636 = vmatmul.mubr.bf16.gmra.mxu0 %v5170_v21 }
 0x119   : > { %v1432_v22 = vsel %vm7046_vm6, %v1191_v25, 0  ;;  %v3462_v55 = vld [vmem:[#allocation2 + $0x1c] sm:$0xf]  ;;  %v3315_v39 = vsel %vm5748_vm2, %v3307_v27, %v3314_v8  ;;  %v1433_v3 = vsel %vm5777_vm3, %v1192_v6, 0  ;;  %vm7047_vm7 = vcmp.ne.s16.totalorder %v5775_v15, 0  ;;  %vm7048_vm1 = vmmov %vm7046_vm6 }
 0x11a   : > { %v1434_v13 = vsel %vm7047_vm7, %v1193_v49, 0  ;;  %v1450_v62 = vshrl.u32 %v1432_v22, 16  ;;  %v3463_v16 = vld [vmem:[#allocation2 + $0x20] sm:$0xf]  ;;  %v1897_v54 = vsel %vm5748_vm2, %v1889_v1, %v1896_v42  ;;  %v1906_v25 = vsel %vm5748_vm2, %v1898_v48, %v1905_v41  ;;  %v3435_v27 = vld [vmem:[#allocation2 + $0x30] sm:$0xf]  ;;  %vm7049_vm6 = vmmov %vm7047_vm7 }
 0x11b   : > { %v3323_v24 = vor.u32 %v3321_v29, %v6351_v51  ;;  %v1453_v45 = vshll.u32 %v1432_v22, 16  ;;  %1938 = vst [vmem:[#allocation3 + $0x168] sm:$0xf] %v1897_v54  ;;  %1939 = vst [vmem:[#allocation3 + $0x174] sm:$0xf] %v1906_v25  ;;  %v1459_v4 = vshll.u32 %v1433_v3, 16 }
 0x11c   : > { %v3436_v40 = vld [vmem:[#allocation2 + $0x34] sm:$0xf]  ;;  %v1452_v6 = vrot.slane %v1450_v62, 4  ;;  %v1463_v49 = vshrl.u32 %v1433_v3, 16  ;;  %v1469_v58 = vshll.u32 %v1434_v13, 16  ;;  %v1473_v50 = vshrl.u32 %v1434_v13, 16 }
 0x11d   : > { %v3324_v0 = vsel %vm5748_vm2, %v3316_v20, %v3323_v24  ;;  %v1455_v18 = vrot.slane %v1453_v45, 5  ;;  %v3478_v1 = vsel %vm7048_vm1, %v3461_v36, 0  ;;  %v1461_v59 = vrot.slane %v1459_v4, 5  ;;  %v5177_v20 = vld [vmem:[#allocation3 + $0x4c] ss:$12 sps:$4 sm:$0xff]  }
 0x11e   : > { %v1465_v57 = vrot.slane %v1463_v49, 4  ;;  %v1471_v9 = vrot.slane %v1469_v58, 5  ;;  %v3479_v21 = vsel %vm5777_vm3, %v3462_v55, 0  ;;  %v1657_v63 = vld [vmem:[#allocation3 + $0x48] sm:$0xff]  ;;  %v1475_v11 = vrot.slane %v1473_v50, 4  ;;  %3077 = vmatprep.mubr.bf16.mxu1 %v5177_v20 }
 0x11f   : > { %v1456_v41 = vor.u32 %v1455_v18, %v1452_v6  ;;  %v3480_v38 = vsel %vm7049_vm6, %v3463_v16, 0  ;;  %v3496_v8 = vshrl.u32 %v3478_v1, 16  ;;  %v1659_v42 = vld [vmem:[#allocation3 + $0x54] sm:$0xff]  ;;  %v3499_v29 = vshll.u32 %v3478_v1, 16  ;;  %3419 = vst [vmem:[#allocation3 + $0x48] sm:$0xf] %v3315_v39 }
 0x120   : > { %v1466_v48 = vor.u32 %v1465_v57, %v1461_v59  ;;  %v3505_v22 = vshll.u32 %v3479_v21, 16  ;;  %v3509_v46 = vshrl.u32 %v3479_v21, 16  ;;  %v1194_v36 = vld [vmem:[#allocation2 + $0x14] sm:$0xf]  ;;  %v1195_v3 = vld [vmem:[#allocation2 + $0x18] sm:$0xf]  ;;  %v4478_v17 = vcombine.low %v1657_v63, %v1659_v42 }
 0x121   : > { %3420 = vst [vmem:[#allocation3 + $0x54] sm:$0xf] %v3324_v0  ;;  %3451 = vst [vmem:[#allocation3 + $0x4c] sm:$0xf] %v3435_v27  ;;  %v1457_v55 = vrot.slane %v1456_v41, 4  ;;  %v1476_v13 = vor.u32 %v1475_v11, %v1471_v9  ;;  %v3498_v62 = vrot.slane %v3496_v8, 4  ;;  %vm7055_vm1 = vnez %v7006_v26 }
 0x122   : > { %3452 = vst [vmem:[#allocation3 + $0x58] sm:$0xf] %v3436_v40  ;;  %v1467_v15 = vrot.slane %v1466_v48, 4  ;;  %v3501_v16 = vrot.slane %v3499_v29, 5  ;;  %v3507_v54 = vrot.slane %v3505_v22, 5  ;;  %v3511_v25 = vrot.slane %v3509_v46, 4  ;;  %3078 = vmatmul.mubr.bf16.gmra.mxu1 %v4478_v17 }
 0x123   : > { %v3464_v24 = vld [vmem:[#allocation2 + $0x24] sm:$0xf]  ;;  %v5173_v45 = vld [vmem:[#allocation3 + $0x16c] ss:$12 sps:$4 sm:$0xff]   ;;  %v1462_v6 = vsel %vm5712_vm14, %v1457_v55, %v1461_v59  ;;  %v1477_v4 = vrot.slane %v1476_v13, 4  ;;  %v3515_v39 = vshll.u32 %v3480_v38, 16 }
 0x124   : > { %v5176_v49 = vld [vmem:[#allocation3 + $0x168] ss:$12 sps:$4 sm:$0xff]   ;;  %v1472_v27 = vsel %vm5712_vm14, %v1467_v15, %v1471_v9  ;;  %1629 = vst [vmem:[#allocation3 + $0x8] sm:$0xf] %v1462_v6  ;;  %v3502_v40 = vor.u32 %v3501_v16, %v3498_v62  ;;  %v3512_v58 = vor.u32 %v3511_v25, %v3507_v54  ;;  %v3519_v0 = vshrl.u32 %v3480_v38, 16  ;;  %2643 = vmatprep.mubr.bf16.mxu0 %v5173_v45 }
 0x125   : > { %v3465_v18 = vld [vmem:[#allocation2 + $0x28] sm:$0xf]  ;;  %1630 = vst [vmem:[#allocation3 + $0x14] sm:$0xf] %v1472_v27  ;;  %v3517_v50 = vrot.slane %v3515_v39, 5  ;;  %v1435_v1 = vsel %vm5836_vm10, %v1194_v36, 0  ;;  %2644 = vmatmul.mubr.bf16.gmra.mxu0 %v5176_v49 }
 0x126   : > { %vm7050_vm3 = vcmp.ne.s16.totalorder %v5830_v14, 0  ;;  %v3481_v57 = vsel %vm5836_vm10, %v3464_v24, 0  ;;  %v3503_v9 = vrot.slane %v3502_v40, 4  ;;  %v3513_v21 = vrot.slane %v3512_v58, 4  ;;  %v708_v11 = vld [vmem:[#allocation2 + $0x28] sm:$0xf] }
 0x127   : > { %v6384_v59 = vsel %vm7050_vm3, %v1195_v3, 0  ;;  %v3521_v63 = vrot.slane %v3519_v0, 4  ;;  %v1479_v41 = vshll.u32 %v1435_v1, 16  ;;  %v1483_v38 = vshrl.u32 %v1435_v1, 16  ;;  %vm7051_vm7 = vmmov %vm7050_vm3  ;;  %v709_v46 = vld [vmem:[#allocation2 + $0x2c] sm:$0xf] }
 0x128   : > { %v1489_v8 = vshll.u32 %v6384_v59, 16  ;;  %v6391_v42 = vsel %vm7051_vm7, %v3465_v18, 0  ;;  %v3525_v20 = vshll.u32 %v3481_v57, 16  ;;  %v3508_v48 = vsel %vm5712_vm14, %v3503_v9, %v3507_v54  ;;  %v3224_v13 = vld [vmem:[#allocation2 + $0x38] sm:$0xf] }
 0x129   : > { %v3518_v23 = vsel %vm5712_vm14, %v3513_v21, %v3517_v50  ;;  %v3522_v29 = vor.u32 %v3521_v63, %v3517_v50  ;;  %v1481_v22 = vrot.slane %v1479_v41, 5  ;;  %v1485_v36 = vrot.slane %v1483_v38, 4  ;;  %v3225_v54 = vld [vmem:[#allocation2 + $0x3c] sm:$0xf]  ;;  %v1197_v1 = vld [vmem:[#allocation2 + $0x20] sm:$0xf] }
 0x12a   : > { %v6397_v3 = vrot.slane %v1489_v8, 5  ;;  %v6399_v17 = vrot.slane %v3525_v20, 5  ;;  %v3529_v55 = vshrl.u32 %v3481_v57, 16  ;;  %v3535_v15 = vshll.u32 %v6391_v42, 16  ;;  %v1196_v50 = vld [vmem:[#allocation2 + $0x1c] sm:$0xf] }
 0x12b   : > { %v6401_v14 = vrot.slane %v3522_v29, 4  ;;  %v1482_v62 = vsel %vm5712_vm14, %v1477_v4, %v1481_v22  ;;  %v968_v16 = vsel %vm6134_vm8, %v708_v11, 0  ;;  %v1486_v25 = vor.u32 %v1485_v36, %v1481_v22  ;;  %v1169_v36 = vld [vmem:[#allocation2 + $0x30] sm:$0xf] }
 0x12c   : > { %1631 = vst [vmem:[#allocation3 + $0x20] sm:$0xf] %v1482_v62  ;;  %v3531_v24 = vrot.slane %v3529_v55, 4  ;;  %v969_v45 = vsel %vm6138_vm15, %v709_v46, 0  ;;  %v1055_v6 = vrot.slane %v6343_v47, 4  ;;  %v6415_v49 = vrot.slane %v3535_v15, 5 }
 0x12d   : > { %v5179_v39 = vld [vmem:[#allocation3 + $0x8] ss:$12 sps:$4 sm:$0xff]   ;;  %v3528_v4 = vsel %vm5712_vm14, %v6401_v14, %v6399_v17  ;;  %v1057_v27 = vshrl.u32 %v968_v16, 16  ;;  %v1487_v40 = vrot.slane %v1486_v25, 4  ;;  %v1060_v0 = vshll.u32 %v968_v16, 16 }
 0x12e   : > { %3675 = vst [vmem:[#allocation3 + $0x8] sm:$0xf] %v3508_v48  ;;  %3676 = vst [vmem:[#allocation3 + $0x14] sm:$0xf] %v3518_v23  ;;  %v3532_v58 = vor.u32 %v3531_v24, %v6399_v17  ;;  %v1066_v18 = vshrl.u32 %v969_v45, 16  ;;  %4940 = vmatprep.mubr.bf16.mxu0 %v5179_v39  ;;  %v1069_v57 = vshll.u32 %v969_v45, 16  ;;  %vm7052_vm10 = vnez %v7004_v60 }
 0x12f   : > { %v1059_v47 = vrot.slane %v1057_v27, 7  ;;  %v3241_v9 = vsel %vm6134_vm8, %v3224_v13, 0  ;;  %v3242_v21 = vsel %vm6138_vm15, %v3225_v54, 0  ;;  %v1492_v63 = vsel %vm5712_vm14, %v1487_v40, %v6397_v3  ;;  %v3466_v46 = vld [vmem:[#allocation2 + $0x2c] sm:$0xf]  ;;  %v5187_v17 = vld [vmem:[#allocation7 + $0x1b0] sm:$0xff]  }
 0x130   : > { %v3533_v41 = vrot.slane %v3532_v58, 4  ;;  %v6425_v11 = vrot.slane %v1066_v18, 7  ;;  %v3325_v38 = vrot.slane %v6351_v51, 4  ;;  %1632 = vst [vmem:[#allocation3 + $0x2c] sm:$0xf] %v1492_v63  ;;  %v3327_v48 = vshrl.u32 %v3241_v9, 16 }
 0x131   : > { %v1062_v8 = vor.u32 %v1060_v0, %v1059_v47  ;;  %v1064_v20 = vrot.slane %v1059_v47, 4  ;;  %v3330_v23 = vshll.u32 %v3241_v9, 16  ;;  %v3336_v29 = vshrl.u32 %v3242_v21, 16  ;;  %1185 = vst [vmem:[#allocation3 + $0x7c] sm:$0xf] %v1169_v36  ;;  %v5182_v58 = vld [vmem:[#allocation7 + $0x1b8] sm:$0xff]  }
 0x132   : > { %v3538_v53 = vsel %vm5712_vm14, %v3533_v41, %v6415_v49  ;;  %v1071_v10 = vor.u32 %v1069_v57, %v6425_v11  ;;  %v3339_v22 = vshll.u32 %v3242_v21, 16  ;;  %v3329_v13 = vrot.slane %v3327_v48, 7  ;;  %v1170_v24 = vld [vmem:[#allocation2 + $0x34] sm:$0xf]  ;;  %v3467_v40 = vld [vmem:[#allocation2 + $0x30] sm:$0xf] }
 0x133   : > { %v1063_v55 = vsel %vm5748_vm2, %v1055_v6, %v1062_v8  ;;  %v1437_v51 = vsel %vm7052_vm10, %v1196_v50, 0  ;;  %vm7053_vm8 = vcmp.ne.s16.totalorder %v5887_v5, 0  ;;  %v6440_v16 = vrot.slane %v3336_v29, 7  ;;  %1186 = vst [vmem:[#allocation3 + $0x88] sm:$0xf] %v1170_v24  ;;  %v5186_v57 = vld [vmem:[#allocation7 + $0x1f0] sm:$0xff]  }
 0x134   : > { %v1438_v62 = vsel %vm7053_vm8, %v1197_v1, 0  ;;  %v1072_v15 = vsel %vm5748_vm2, %v1064_v20, %v1071_v10  ;;  %1151 = vst [vmem:[#allocation3 + $0x60] sm:$0xf] %v1063_v55  ;;  %v1493_v54 = vshrl.u32 %v6384_v59, 16  ;;  %v1499_v25 = vshll.u32 %v1437_v51, 16  ;;  %vm7054_vm15 = vmmov %vm7053_vm8 }
 0x135   : > { %1152 = vst [vmem:[#allocation3 + $0x6c] sm:$0xf] %v1072_v15  ;;  %v3332_v45 = vor.u32 %v3330_v23, %v3329_v13  ;;  %v3334_v6 = vrot.slane %v3329_v13, 4  ;;  %v1503_v39 = vshrl.u32 %v1437_v51, 16  ;;  %v1509_v27 = vshll.u32 %v1438_v62, 16 }
 0x136   : > { %v3341_v0 = vor.u32 %v3339_v22, %v6440_v16  ;;  %v1495_v18 = vrot.slane %v1493_v54, 4  ;;  %v1501_v50 = vrot.slane %v1499_v25, 5  ;;  %v1513_v1 = vshrl.u32 %v1438_v62, 16  ;;  %v1198_v63 = vld [vmem:[#allocation2 + $0x24] sm:$0xf] }
 0x137   : > { %v3333_v47 = vsel %vm5748_vm2, %v3325_v38, %v3332_v45  ;;  %v1505_v59 = vrot.slane %v1503_v39, 4  ;;  %v6446_v9 = vrot.slane %v1509_v27, 5  ;;  %v3483_v21 = vsel %vm7052_vm10, %v3466_v46, 0  ;;  %v5181_v41 = vld [vmem:[#allocation3 + $0x20] ss:$12 sps:$4 sm:$0xff]  }
 0x138   : > { %v3342_v8 = vsel %vm5748_vm2, %v3334_v6, %v3341_v0  ;;  %v3437_v20 = vld [vmem:[#allocation2 + $0x38] sm:$0xf]  ;;  %v3438_v48 = vld [vmem:[#allocation2 + $0x3c] sm:$0xf]  ;;  %v1496_v23 = vor.u32 %v1495_v18, %v6397_v3  ;;  %v6455_v10 = vsel %vm7054_vm15, %v3467_v40, 0  ;;  %v3539_v38 = vshrl.u32 %v6391_v42, 16  ;;  %4941 = vmatmul.mubr.bf16.vlgmr.msra.gmra.mxu0 %v5181_v41 }
 0x139   : > { %3677 = vst [vmem:[#allocation3 + $0x20] sm:$0xf] %v3528_v4  ;;  %3678 = vst [vmem:[#allocation3 + $0x2c] sm:$0xf] %v3538_v53  ;;  %v1506_v60 = vor.u32 %v1505_v59, %v1501_v50  ;;  %v3545_v29 = vshll.u32 %v3483_v21, 16  ;;  %v3549_v22 = vshrl.u32 %v3483_v21, 16  ;;  %4813 = vmatpush3.bf16.msra.mxu0 %v5182_v58  ;;  %vm7061_vm10 = vnez %v7018_v7 }
 0x13a   : > { %v3555_v46 = vshll.u32 %v6455_v10, 16  ;;  %v1199_v36 = vld [vmem:[#allocation2 + $0x28] sm:$0xf]  ;;  %v1497_v3 = vrot.slane %v1496_v23, 4  ;;  %v3541_v5 = vrot.slane %v3539_v38, 4  ;;  %v3559_v55 = vshrl.u32 %v6455_v10, 16  ;;  %4814 = vmatprep.subr.bf16.mxu0 %v5186_v57 }
 0x13b   : > { %v1439_v42 = vsel %vm7055_vm1, %v1198_v63, 0  ;;  %v3468_v13 = vld [vmem:[#allocation2 + $0x34] sm:$0xf]  ;;  %v1661_v51 = vld [vmem:[#allocation3 + $0x60] sm:$0xff]  ;;  %v1507_v14 = vrot.slane %v1506_v60, 4  ;;  %v6467_v4 = vrot.slane %v3545_v29, 5 }
 0x13c   : > { %v3551_v53 = vrot.slane %v3549_v22, 4  ;;  %v6469_v62 = vrot.slane %v3555_v46, 5  ;;  %v1663_v15 = vld [vmem:[#allocation3 + $0x6c] sm:$0xff]  ;;  %v1502_v25 = vsel %vm5712_vm14, %v1497_v3, %v1501_v50  ;;  %v3542_v24 = vor.u32 %v3541_v5, %v6415_v49  ;;  %v3469_v27 = vld [vmem:[#allocation2 + $0x38] sm:$0xf]  ;;  %v5196_v38 = vld [vmem:[#allocation7 + $0x1e0] sm:$0xff]  }
 0x13d   : > { %v5183_v54 = vld [vmem:[#allocation3 + $0x64] ss:$12 sps:$4 sm:$0xff]   ;;  %v5190_v45 = vld [vmem:[#allocation7 + $0x1e8] sm:$0xff]   ;;  %vm7056_vm6 = vcmp.ne.s16.totalorder %v5911_v37, 0  ;;  %v1515_v39 = vrot.slane %v1513_v1, 4  ;;  %v4481_v40 = vcombine.low %v1661_v51, %v1663_v15  ;;  %v1512_v58 = vsel %vm5712_vm14, %v1507_v14, %v6446_v9  ;;  %4815 = vmatpush3.bf16.msra.mxu0 %v5187_v17 }
 0x13e   : > { %v6476_v6 = vsel %vm7056_vm6, %v1199_v36, 0  ;;  %3421 = vst [vmem:[#allocation3 + $0x60] sm:$0xf] %v3333_v47  ;;  %3422 = vst [vmem:[#allocation3 + $0x6c] sm:$0xf] %v3342_v8  ;;  %v3552_v0 = vor.u32 %v3551_v53, %v6467_v4  ;;  %v1519_v49 = vshll.u32 %v1439_v42, 16  ;;  %3085 = vmatprep.mubr.bf16.mxu1 %v5183_v54  ;;  %4816 = vmatprep.subr.bf16.mxu0 %v5190_v45 }
 0x13f   : > { %3453 = vst [vmem:[#allocation3 + $0x64] sm:$0xf] %v3437_v20  ;;  %3454 = vst [vmem:[#allocation3 + $0x70] sm:$0xf] %v3438_v48  ;;  %v3543_v18 = vrot.slane %v3542_v24, 4  ;;  %v1516_v50 = vor.u32 %v1515_v39, %v6446_v9  ;;  %v1523_v1 = vshrl.u32 %v1439_v42, 16  ;;  %3086 = vmatmul.mubr.bf16.gmra.mxu1 %v4481_v40 }
 0x140   : > { %1633 = vst [vmem:[#allocation3 + $0x38] sm:$0xf] %v1502_v25  ;;  %1634 = vst [vmem:[#allocation3 + $0x44] sm:$0xf] %v1512_v58  ;;  %v1529_v47 = vshll.u32 %v6476_v6, 16  ;;  %v5192_v57 = vld [vmem:[#allocation7 + $0x1a8] sm:$0xff]  }
 0x141   : > { %v710_v59 = vld [vmem:[#allocation2 + $0x30] sm:$0xf]  ;;  %v3553_v21 = vrot.slane %v3552_v0, 4  ;;  %v1521_v63 = vrot.slane %v1519_v49, 5  ;;  %v1533_v41 = vshrl.u32 %v6476_v6, 16  ;;  %v3485_v8 = vsel %vm7055_vm1, %v3468_v13, 0  ;;  %vm7057_vm3 = vmmov %vm7056_vm6  ;;  %4817 = vmatpush3.bf16.msra.mxu0 %v5192_v57 }
 0x142   : > { %v711_v20 = vld [vmem:[#allocation2 + $0x34] sm:$0xf]  ;;  %v3548_v48 = vsel %vm5712_vm14, %v3543_v18, %v6467_v4  ;;  %v1517_v9 = vrot.slane %v1516_v50, 4  ;;  %v1525_v23 = vrot.slane %v1523_v1, 4  ;;  %v6490_v10 = vrot.slane %v1529_v47, 5  ;;  %v5197_v46 = vld [vmem:[#allocation7 + $0x1a0] sm:$0xff]   ;;  %4818 = vmatprep.subr.bf16.mxu0 %v5196_v38 }
 0x143   : > { %v3558_v60 = vsel %vm5712_vm14, %v3553_v21, %v6469_v62  ;;  %v6497_v29 = vsel %vm7057_vm3, %v3469_v27, 0  ;;  %v3561_v26 = vrot.slane %v3559_v55, 4  ;;  %v3565_v22 = vshll.u32 %v3485_v8, 16  ;;  %v3226_v13 = vld [vmem:[#allocation2 + $0x40] sm:$0xf]  ;;  %v5200_v4 = vld [vmem:[#allocation7 + $0x1d8] sm:$0xff]  }
 0x144   : > { %v1522_v36 = vsel %vm5712_vm14, %v1517_v9, %v1521_v63  ;;  %v1526_v3 = vor.u32 %v1525_v23, %v1521_v63  ;;  %v3569_v5 = vshrl.u32 %v3485_v8, 16  ;;  %v3575_v42 = vshll.u32 %v6497_v29, 16  ;;  %v3227_v14 = vld [vmem:[#allocation2 + $0x44] sm:$0xf]  ;;  %v1200_v0 = vld [vmem:[#allocation2 + $0x2c] sm:$0xf] }
 0x145   : > { %1635 = vst [vmem:[#allocation3 + $0x50] sm:$0xf] %v1522_v36  ;;  %v3562_v51 = vor.u32 %v3561_v26, %v6469_v62  ;;  %v6503_v17 = vrot.slane %v3565_v22, 5  ;;  %v3579_v37 = vshrl.u32 %v6497_v29, 16  ;;  %v970_v55 = vsel %vm6215_vm9, %v710_v59, 0  ;;  %v5202_v49 = vld [vmem:[#allocation7 + $0x198] sm:$0xff]   ;;  %4819 = vmatpush3.bf16.msra.mxu0 %v5197_v46 }
 0x146   : > { %v1527_v53 = vrot.slane %v1526_v3, 4  ;;  %v3571_v15 = vrot.slane %v3569_v5, 4  ;;  %v6508_v54 = vrot.slane %v3575_v42, 5  ;;  %v971_v25 = vsel %vm6233_vm12, %v711_v20, 0  ;;  %v5206_v18 = vld [vmem:[#allocation7 + $0x1d0] sm:$0xff]   ;;  %4820 = vmatprep.subr.bf16.mxu0 %v5200_v4 }
 0x147   : > { %v5189_v24 = vld [vmem:[#allocation3 + $0x38] ss:$12 sps:$4 sm:$0xff]   ;;  %v3563_v62 = vrot.slane %v3562_v51, 4  ;;  %v1073_v45 = vrot.slane %v6425_v11, 4  ;;  %v1075_v40 = vshrl.u32 %v970_v55, 16  ;;  %v1078_v58 = vshll.u32 %v970_v55, 16 }
 0x148   : > { %3679 = vst [vmem:[#allocation3 + $0x38] sm:$0xf] %v3548_v48  ;;  %3680 = vst [vmem:[#allocation3 + $0x44] sm:$0xf] %v3558_v60  ;;  %v1532_v39 = vsel %vm5712_vm14, %v1527_v53, %v6490_v10  ;;  %v3572_v27 = vor.u32 %v3571_v15, %v6503_v17  ;;  %4944 = vmatprep.mubr.bf16.mxu0 %v5189_v24  ;;  %v1084_v11 = vshrl.u32 %v971_v25, 16  ;;  %v1087_v1 = vshll.u32 %v971_v25, 16 }
 0x149   : > { %1636 = vst [vmem:[#allocation3 + $0x5c] sm:$0xf] %v1532_v39  ;;  %v3568_v50 = vsel %vm5712_vm14, %v3563_v62, %v6503_v17  ;;  %v3243_v47 = vsel %vm6215_vm9, %v3226_v13, 0  ;;  %v1077_v59 = vrot.slane %v1075_v40, 7  ;;  %v3244_v21 = vsel %vm6233_vm12, %v3227_v14, 0  ;;  %v5207_v22 = vld [vmem:[#allocation7 + $0x190] sm:$0xff]   ;;  %4821 = vmatpush3.bf16.msra.mxu0 %v5202_v49 }
 0x14a   : > { %v3573_v57 = vrot.slane %v3572_v27, 4  ;;  %v3343_v63 = vrot.slane %v6440_v16, 4  ;;  %v6525_v8 = vrot.slane %v1084_v11, 7  ;;  %v3345_v20 = vshrl.u32 %v3243_v47, 16  ;;  %v1201_v23 = vld [vmem:[#allocation2 + $0x30] sm:$0xf]  ;;  %4822 = vmatprep.subr.bf16.mxu0 %v5206_v18 }
 0x14b   : > { %v3348_v48 = vshll.u32 %v3243_v47, 16  ;;  %v3354_v9 = vshrl.u32 %v3244_v21, 16  ;;  %v1080_v38 = vor.u32 %v1078_v58, %v1077_v59  ;;  %v1082_v60 = vrot.slane %v1077_v59, 4  ;;  %v3470_v3 = vld [vmem:[#allocation2 + $0x3c] sm:$0xf]  ;;  %v5210_v55 = vld [vmem:[#allocation7 + $0x1c8] sm:$0xff]  }
 0x14c   : > { %v3578_v19 = vsel %vm5712_vm14, %v3573_v57, %v6508_v54  ;;  %v3357_v26 = vshll.u32 %v3244_v21, 16  ;;  %v1089_v43 = vor.u32 %v1087_v1, %v6525_v8  ;;  %v3347_v46 = vrot.slane %v3345_v20, 7  ;;  %v3471_v17 = vld [vmem:[#allocation2 + $0x40] sm:$0xf]  ;;  %v5212_v25 = vld [vmem:[#allocation7 + $0x188] sm:$0xff]  }
 0x14d   : > { %v6531_v36 = vrot.slane %v3354_v9, 7  ;;  %vm7058_vm9 = vnez %v7014_v31  ;;  %v1081_v5 = vsel %vm5748_vm2, %v1073_v45, %v1080_v38  ;;  %vm7059_vm12 = vcmp.ne.s16.totalorder %v5995_v12, 0  ;;  %v1203_v49 = vld [vmem:[#allocation2 + $0x38] sm:$0xf]  ;;  %4823 = vmatpush3.bf16.msra.mxu0 %v5207_v22  ;;  %v3439_v20 = vld [vmem:[#allocation2 + $0x40] sm:$0xf] }
 0x14e   : > { %v1441_v16 = vsel %vm7058_vm9, %v1200_v0, 0  ;;  %v1442_v42 = vsel %vm7059_vm12, %v1201_v23, 0  ;;  %v1535_v13 = vrot.slane %v1533_v41, 4  ;;  %v1090_v14 = vsel %vm5748_vm2, %v1082_v60, %v1089_v43  ;;  %1153 = vst [vmem:[#allocation3 + $0x78] sm:$0xf] %v1081_v5  ;;  %v5216_v41 = vld [vmem:[#allocation7 + $0x1c0] sm:$0xff]   ;;  %vm7060_vm7 = vmmov %vm7059_vm12  ;;  %4824 = vmatprep.subr.bf16.mxu0 %v5210_v55 }
 0x14f   : > { %v1539_v51 = vshll.u32 %v1441_v16, 16  ;;  %v3350_v4 = vor.u32 %v3348_v48, %v3347_v46  ;;  %v3352_v53 = vrot.slane %v3347_v46, 4  ;;  %v3359_v15 = vor.u32 %v3357_v26, %v6531_v36  ;;  %1154 = vst [vmem:[#allocation3 + $0x84] sm:$0xf] %v1090_v14  ;;  %v1202_v0 = vld [vmem:[#allocation2 + $0x34] sm:$0xf] }
 0x150   : > { %v5191_v24 = vld [vmem:[#allocation3 + $0x50] ss:$12 sps:$4 sm:$0xff]   ;;  %v1536_v62 = vor.u32 %v1535_v13, %v6490_v10  ;;  %v1543_v6 = vshrl.u32 %v1441_v16, 16  ;;  %v1549_v40 = vshll.u32 %v1442_v42, 16  ;;  %v1553_v58 = vshrl.u32 %v1442_v42, 16  ;;  %v5217_v26 = vld [vmem:[#allocation7 + $0x180] sm:$0xff]  }
 0x151   : > { %v1541_v45 = vrot.slane %v1539_v51, 5  ;;  %3681 = vst [vmem:[#allocation3 + $0x50] sm:$0xf] %v3568_v50  ;;  %3682 = vst [vmem:[#allocation3 + $0x5c] sm:$0xf] %v3578_v19  ;;  %v3351_v39 = vsel %vm5748_vm2, %v3343_v63, %v3350_v4  ;;  %v3360_v27 = vsel %vm5748_vm2, %v3352_v53, %v3359_v15  ;;  %4945 = vmatmul.mubr.bf16.gmra.mxu0 %v5191_v24  ;;  %v3487_v10 = vsel %vm7058_vm9, %v3470_v3, 0 }
 0x152   : > { %v1537_v18 = vrot.slane %v1536_v62, 4  ;;  %v1545_v11 = vrot.slane %v1543_v6, 4  ;;  %v3488_v50 = vsel %vm7060_vm7, %v3471_v17, 0  ;;  %v1171_v1 = vld [vmem:[#allocation2 + $0x38] sm:$0xf]  ;;  %v1551_v47 = vrot.slane %v1549_v40, 5  ;;  %4825 = vmatpush3.bf16.msra.mxu0 %v5212_v25 }
 0x153   : > { %v3581_v57 = vrot.slane %v3579_v37, 4  ;;  %v3585_v59 = vshll.u32 %v3487_v10, 16  ;;  %v3589_v21 = vshrl.u32 %v3487_v10, 16  ;;  %v1172_v63 = vld [vmem:[#allocation2 + $0x3c] sm:$0xf]  ;;  %v3595_v23 = vshll.u32 %v3488_v50, 16  ;;  %4826 = vmatprep.subr.bf16.mxu0 %v5216_v41 }
 0x154   : > { %1187 = vst [vmem:[#allocation3 + $0x94] sm:$0xf] %v1171_v1  ;;  %v3440_v48 = vld [vmem:[#allocation2 + $0x44] sm:$0xf]  ;;  %v1542_v9 = vsel %vm5712_vm14, %v1537_v18, %v1541_v45  ;;  %v1546_v31 = vor.u32 %v1545_v11, %v1541_v45  ;;  %v3599_v19 = vshrl.u32 %v3488_v50, 16  ;;  %v1443_v37 = vsel %vm7061_vm10, %v1202_v0, 0 }
 0x155   : > { %1188 = vst [vmem:[#allocation3 + $0xa0] sm:$0xf] %v1172_v63  ;;  %1637 = vst [vmem:[#allocation3 + $0x68] sm:$0xf] %v1542_v9  ;;  %v3582_v12 = vor.u32 %v3581_v57, %v6508_v54  ;;  %v6558_v38 = vrot.slane %v3585_v59, 5  ;;  %v3591_v29 = vrot.slane %v3589_v21, 4  ;;  %vm7067_vm1 = vnez %v7025_v52 }
 0x156   : > { %v3472_v60 = vld [vmem:[#allocation2 + $0x44] sm:$0xf]  ;;  %v1665_v22 = vld [vmem:[#allocation3 + $0x78] sm:$0xff]  ;;  %v1547_v43 = vrot.slane %v1546_v31, 4  ;;  %v3597_v46 = vrot.slane %v3595_v23, 5  ;;  %vm7062_vm8 = vcmp.ne.s16.totalorder %v6026_v28, 0  ;;  %4827 = vmatpush3.bf16.msra.mxu0 %v5217_v26 }
 0x157   : > { %v6564_v16 = vsel %vm7062_vm8, %v1203_v49, 0  ;;  %v1555_v3 = vrot.slane %v1553_v58, 4  ;;  %v3473_v5 = vld [vmem:[#allocation2 + $0x48] sm:$0xf]  ;;  %v3583_v13 = vrot.slane %v3582_v12, 4  ;;  %v3592_v51 = vor.u32 %v3591_v29, %v6558_v38  ;;  %vm7063_vm15 = vmmov %vm7062_vm8 }
 0x158   : > { %v1667_v54 = vld [vmem:[#allocation3 + $0x84] sm:$0xff]  ;;  %v1559_v17 = vshll.u32 %v1443_v37, 16  ;;  %v1563_v55 = vshrl.u32 %v1443_v37, 16  ;;  %3423 = vst [vmem:[#allocation3 + $0x78] sm:$0xf] %v3351_v39  ;;  %v1552_v4 = vsel %vm5712_vm14, %v1547_v43, %v1551_v47  ;;  %v1569_v15 = vshll.u32 %v6564_v16, 16 }
 0x159   : > { %v5193_v42 = vld [vmem:[#allocation3 + $0x7c] ss:$12 sps:$4 sm:$0xff]   ;;  %3424 = vst [vmem:[#allocation3 + $0x84] sm:$0xf] %v3360_v27  ;;  %v4484_v14 = vcombine.low %v1665_v22, %v1667_v54  ;;  %v1556_v53 = vor.u32 %v1555_v3, %v1551_v47  ;;  %v712_v25 = vld [vmem:[#allocation2 + $0x38] sm:$0xf]  ;;  %v3588_v24 = vsel %vm5712_vm14, %v3583_v13, %v6558_v38 }
 0x15a   : > { %3455 = vst [vmem:[#allocation3 + $0x7c] sm:$0xf] %v3439_v20  ;;  %3456 = vst [vmem:[#allocation3 + $0x88] sm:$0xf] %v3440_v48  ;;  %3093 = vmatprep.mubr.bf16.mxu1 %v5193_v42  ;;  %v3593_v62 = vrot.slane %v3592_v51, 4  ;;  %v1561_v45 = vrot.slane %v1559_v17, 5 }
 0x15b   : > { %1638 = vst [vmem:[#allocation3 + $0x74] sm:$0xf] %v1552_v4  ;;  %v1565_v6 = vrot.slane %v1563_v55, 4  ;;  %v713_v41 = vld [vmem:[#allocation2 + $0x3c] sm:$0xf]  ;;  %3094 = vmatmul.mubr.bf16.gmra.mxu1 %v4484_v14  ;;  %v1557_v39 = vrot.slane %v1556_v53, 4 }
 0x15c   : > { %v6573_v27 = vrot.slane %v1569_v15, 5  ;;  %v1573_v40 = vshrl.u32 %v6564_v16, 16  ;;  %v3489_v58 = vsel %vm7061_vm10, %v3472_v60, 0  ;;  %v3598_v0 = vsel %vm5712_vm14, %v3593_v62, %v3597_v46  ;;  %v3228_v57 = vld [vmem:[#allocation2 + $0x48] sm:$0xf] }
 0x15d   : > { %v1566_v49 = vor.u32 %v1565_v6, %v1561_v45  ;;  %v6582_v18 = vsel %vm7063_vm15, %v3473_v5, 0  ;;  %v3601_v11 = vrot.slane %v3599_v19, 4  ;;  %v1562_v10 = vsel %vm5712_vm14, %v1557_v39, %v1561_v45  ;;  %v3229_v28 = vld [vmem:[#allocation2 + $0x4c] sm:$0xf]  ;;  %v1204_v3 = vld [vmem:[#allocation2 + $0x3c] sm:$0xf] }
 0x15e   : > { %v3605_v50 = vshll.u32 %v3489_v58, 16  ;;  %v3609_v1 = vshrl.u32 %v3489_v58, 16  ;;  %v3615_v47 = vshll.u32 %v6582_v18, 16  ;;  %1639 = vst [vmem:[#allocation3 + $0x80] sm:$0xf] %v1562_v10  ;;  %v3619_v21 = vshrl.u32 %v6582_v18, 16 }
 0x15f   : > { %v1567_v59 = vrot.slane %v1566_v49, 4  ;;  %v3602_v7 = vor.u32 %v3601_v11, %v3597_v46  ;;  %v972_v63 = vsel %vm6280_vm5, %v712_v25, 0  ;;  %v973_v31 = vsel %vm6294_vm0, %v713_v41, 0  ;;  %v1205_v13 = vld [vmem:[#allocation2 + $0x40] sm:$0xf] }
 0x160   : > { %v3607_v20 = vrot.slane %v3605_v50, 5  ;;  %v3611_v48 = vrot.slane %v3609_v1, 4  ;;  %v6590_v9 = vrot.slane %v3615_v47, 5  ;;  %v1091_v12 = vrot.slane %v6525_v8, 4  ;;  %v3474_v25 = vld [vmem:[#allocation2 + $0x4c] sm:$0xf] }
 0x161   : > { %v1572_v23 = vsel %vm5712_vm14, %v1567_v59, %v6573_v27  ;;  %v3603_v19 = vrot.slane %v3602_v7, 4  ;;  %v1093_v38 = vshrl.u32 %v972_v63, 16  ;;  %v1096_v60 = vshll.u32 %v972_v63, 16  ;;  %v3475_v45 = vld [vmem:[#allocation2 + $0x50] sm:$0xf] }
 0x162   : > { %v5199_v29 = vld [vmem:[#allocation3 + $0x68] ss:$12 sps:$4 sm:$0xff]   ;;  %1640 = vst [vmem:[#allocation3 + $0x8c] sm:$0xf] %v1572_v23  ;;  %v3612_v37 = vor.u32 %v3611_v48, %v3607_v20  ;;  %v1102_v26 = vshrl.u32 %v973_v31, 16  ;;  %v1105_v46 = vshll.u32 %v973_v31, 16 }
 0x163   : > { %3683 = vst [vmem:[#allocation3 + $0x68] sm:$0xf] %v3588_v24  ;;  %3684 = vst [vmem:[#allocation3 + $0x74] sm:$0xf] %v3598_v0  ;;  %v3608_v22 = vsel %vm5712_vm14, %v3603_v19, %v3607_v20  ;;  %v1095_v43 = vrot.slane %v1093_v38, 7  ;;  %v3245_v16 = vsel %vm6280_vm5, %v3228_v57, 0  ;;  %4948 = vmatprep.mubr.bf16.mxu0 %v5199_v29  ;;  %v4668_v0 = vpop.f32.mrf.mxu0 }
 0x164   : > { %v3613_v5 = vrot.slane %v3612_v37, 4  ;;  %v6602_v8 = vrot.slane %v1102_v26, 7  ;;  %v3246_v54 = vsel %vm6294_vm0, %v3229_v28, 0  ;;  %v3361_v42 = vrot.slane %v6531_v36, 4  ;;  %v1206_v20 = vld [vmem:[#allocation2 + $0x44] sm:$0xf] }
 0x165   : > { %v1098_v51 = vor.u32 %v1096_v60, %v1095_v43  ;;  %v1100_v17 = vrot.slane %v1095_v43, 4  ;;  %v3363_v55 = vshrl.u32 %v3245_v16, 16  ;;  %v3366_v14 = vshll.u32 %v3245_v16, 16  ;;  %v3441_v31 = vld [vmem:[#allocation2 + $0x48] sm:$0xf]  ;;  %v4669_v29 = vpop.f32.mrf.mxu0 }
 0x166   : > { %v3618_v30 = vsel %vm5712_vm14, %v3613_v5, %v6590_v9  ;;  %v1107_v4 = vor.u32 %v1105_v46, %v6602_v8  ;;  %v3372_v53 = vshrl.u32 %v3246_v54, 16  ;;  %v3375_v15 = vshll.u32 %v3246_v54, 16  ;;  %v3442_v23 = vld [vmem:[#allocation2 + $0x4c] sm:$0xf]  ;;  %v1207_v38 = vld [vmem:[#allocation2 + $0x48] sm:$0x1] }
 0x167   : > { %v1099_v35 = vsel %vm5748_vm2, %v1091_v12, %v1098_v51  ;;  %v3365_v24 = vrot.slane %v3363_v55, 7  ;;  %v1445_v36 = vsel %vm6094_vm13, %v1204_v3, 0  ;;  %vm7064_vm5 = vcmp.ne.s16.totalorder %v6091_v2, 0  ;;  %v3476_v3 = vld [vmem:[#allocation2 + $0x54] sm:$0xf] }
 0x168   : > { %v1446_v62 = vsel %vm7064_vm5, %v1205_v13, 0  ;;  %v1108_v6 = vsel %vm5748_vm2, %v1100_v17, %v1107_v4  ;;  %1155 = vst [vmem:[#allocation3 + $0x90] sm:$0xf] %v1099_v35  ;;  %v6619_v41 = vrot.slane %v3372_v53, 7  ;;  %v1575_v39 = vrot.slane %v1573_v40, 4  ;;  %vm7065_vm0 = vmmov %vm7064_vm5  ;;  %v4671_v4 = vpop.f32.mrf.mxu0 }
 0x169   : > { %v1579_v58 = vshll.u32 %v1445_v36, 16  ;;  %v5201_v49 = vld [vmem:[#allocation3 + $0x80] ss:$12 sps:$4 sm:$0xff]   ;;  %1156 = vst [vmem:[#allocation3 + $0x9c] sm:$0xf] %v1108_v6  ;;  %v3368_v11 = vor.u32 %v3366_v14, %v3365_v24  ;;  %v3370_v10 = vrot.slane %v3365_v24, 4 }
 0x16a   : > { %v1583_v50 = vshrl.u32 %v1445_v36, 16  ;;  %3685 = vst [vmem:[#allocation3 + $0x80] sm:$0xf] %v3608_v22  ;;  %3686 = vst [vmem:[#allocation3 + $0x8c] sm:$0xf] %v3618_v30  ;;  %v3377_v1 = vor.u32 %v3375_v15, %v6619_v41  ;;  %v1576_v47 = vor.u32 %v1575_v39, %v6573_v27  ;;  %v1589_v59 = vshll.u32 %v1446_v62, 16  ;;  %4949 = vmatmul.mubr.bf16.gmra.mxu0 %v5201_v49 }
 0x16b   : > { %v1581_v57 = vrot.slane %v1579_v58, 5  ;;  %v3369_v7 = vsel %vm5748_vm2, %v3361_v42, %v3368_v11  ;;  %v1593_v63 = vshrl.u32 %v1446_v62, 16  ;;  %v3491_v28 = vsel %vm6094_vm13, %v3474_v25, 0  ;;  %v5203_v51 = vld [vmem:[#allocation3 + $0x94] ss:$12 sps:$4 sm:$0xff]  }
 0x16c   : > { %v1585_v40 = vrot.slane %v1583_v50, 4  ;;  %v3378_v48 = vsel %vm5748_vm2, %v3370_v10, %v3377_v1  ;;  %v1577_v19 = vrot.slane %v1576_v47, 4  ;;  %v1591_v12 = vrot.slane %v1589_v59, 5  ;;  %v1173_v35 = vld [vmem:[#allocation2 + $0x40] sm:$0xf]  ;;  %3101 = vmatprep.mubr.bf16.mxu1 %v5203_v51  ;;  %v4672_v59 = vpop.f32.mrf.mxu0 }
 0x16d   : > { %v3492_v27 = vsel %vm7065_vm0, %v3475_v45, 0  ;;  %v3621_v60 = vrot.slane %v3619_v21, 4  ;;  %v3625_v26 = vshll.u32 %v3491_v28, 16  ;;  %v3629_v34 = vshrl.u32 %v3491_v28, 16  ;;  %v3477_v21 = vld [vmem:[#allocation2 + $0x58] sm:$0x1] }
 0x16e   : > { %v1586_v37 = vor.u32 %v1585_v40, %v1581_v57  ;;  %v1582_v22 = vsel %vm5712_vm14, %v1577_v19, %v1581_v57  ;;  %v3635_v43 = vshll.u32 %v3492_v27, 16  ;;  %v3639_v46 = vshrl.u32 %v3492_v27, 16  ;;  %v1174_v6 = vld [vmem:[#allocation2 + $0x44] sm:$0xf]  ;;  %1189 = vst [vmem:[#allocation3 + $0xac] sm:$0xf] %v1173_v35 }
 0x16f   : > { %vm7066_vm13 = vnez %v7027_v33  ;;  %v1669_v5 = vld [vmem:[#allocation3 + $0x90] sm:$0xff]  ;;  %1641 = vst [vmem:[#allocation3 + $0x98] sm:$0xf] %v1582_v22  ;;  %v3622_v54 = vor.u32 %v3621_v60, %v6590_v9  ;;  %v6638_v42 = vrot.slane %v3625_v26, 5  ;;  %v3631_v18 = vrot.slane %v3629_v34, 4  ;;  %v4910_v26 = vpop.f32.mrf.mxu1  ;;  %v4674_v34 = vpop.f32.mrf.mxu0 }
 0x170   : > { %v1447_v16 = vsel %vm7066_vm13, %v1206_v20, 0  ;;  %v1587_v2 = vrot.slane %v1586_v37, 4  ;;  %v1671_v13 = vld [vmem:[#allocation3 + $0x9c] sm:$0xff]  ;;  %v6640_v17 = vrot.slane %v3635_v43, 5  ;;  %v1448_v55 = vsel %vm7067_vm1, %v1207_v38, 0 }
 0x171   : > { %v1595_v14 = vrot.slane %v1593_v63, 4  ;;  %v6644_v30 = vadd.f32 %v4669_v29, %v4668_v0  ;;  %3425 = vst [vmem:[#allocation3 + $0x90] sm:$0xf] %v3369_v7  ;;  %3426 = vst [vmem:[#allocation3 + $0x9c] sm:$0xf] %v3378_v48  ;;  %v4487_v9 = vcombine.low %v1669_v5, %v1671_v13  ;;  %v3623_v15 = vrot.slane %v3622_v54, 4 }
 0x172   : > { %3457 = vst [vmem:[#allocation3 + $0x94] sm:$0xf] %v3441_v31  ;;  %3458 = vst [vmem:[#allocation3 + $0xa0] sm:$0xf] %v3442_v23  ;;  %v1592_v53 = vsel %vm5712_vm14, %v1587_v2, %v1591_v12  ;;  %v3632_v25 = vor.u32 %v3631_v18, %v6638_v42  ;;  %v1599_v36 = vshll.u32 %v1447_v16, 16  ;;  %v1603_v62 = vshrl.u32 %v1447_v16, 16  ;;  %v2686_v18 = vpop.f32.mrf.mxu1 }
 0x173   : > { %1642 = vst [vmem:[#allocation3 + $0xa4] sm:$0xf] %v1592_v53  ;;  %v1596_v24 = vor.u32 %v1595_v14, %v1591_v12  ;;  %v1609_v45 = vshll.u32 %v1448_v55, 16  ;;  %3102 = vmatmul.mubr.bf16.gmra.mxu1 %v4487_v9  ;;  %v3628_v39 = vsel %vm5712_vm14, %v3623_v15, %v6638_v42  ;;  %v3493_v0 = vsel %vm7066_vm13, %v3476_v3, 0  ;;  %v714_v11 = vld [vmem:[#allocation2 + $0x40] sm:$0xf] }
 0x174   : > { %v3633_v58 = vrot.slane %v3632_v25, 4  ;;  %v3494_v49 = vsel %vm7067_vm1, %v3477_v21, 0  ;;  %1190 = vst [vmem:[#allocation3 + $0xb8] sm:$0xf] %v1174_v6  ;;  %v1601_v50 = vrot.slane %v1599_v36, 5  ;;  %v1605_v1 = vrot.slane %v1603_v62, 4  ;;  %v4675_v21 = vpop.f32.mrf.mxu0  ;;  %v4911_v9 = vpop.f32.mrf.mxu1 }
 0x175   : > { %v1597_v10 = vrot.slane %v1596_v24, 4  ;;  %v1611_v47 = vrot.slane %v1609_v45, 5  ;;  %v715_v57 = vld [vmem:[#allocation2 + $0x44] sm:$0xf]  ;;  %v3641_v40 = vrot.slane %v3639_v46, 4  ;;  %v3645_v63 = vshll.u32 %v3493_v0, 16 }
 0x176   : > { %v3638_v7 = vsel %vm5712_vm14, %v3633_v58, %v6640_v17  ;;  %v3649_v28 = vshrl.u32 %v3493_v0, 16  ;;  %v1606_v52 = vor.u32 %v1605_v1, %v1601_v50  ;;  %v3655_v20 = vshll.u32 %v3494_v49, 16  ;;  %v3230_v31 = vld [vmem:[#allocation2 + $0x50] sm:$0xf]  ;;  %v3231_v23 = vld [vmem:[#allocation2 + $0x54] sm:$0xf]  ;;  %v4677_v53 = vpop.f32.mrf.mxu0  ;;  %v2689_v45 = vpop.f32.mrf.mxu1 }
 0x177   : > { %v1602_v33 = vsel %vm5712_vm14, %v1597_v10, %v1601_v50  ;;  %v974_v48 = vsel %vm6335_vm4, %v714_v11, 0  ;;  %v3642_v19 = vor.u32 %v3641_v40, %v6640_v17  ;;  %v3647_v12 = vrot.slane %v3645_v63, 5 }
 0x178   : > { %1643 = vst [vmem:[#allocation3 + $0xb0] sm:$0xf] %v1602_v33  ;;  %v3651_v27 = vrot.slane %v3649_v28, 4  ;;  %v975_v38 = vsel %vm958_vm11, %v715_v57, 0  ;;  %v1607_v29 = vrot.slane %v1606_v52, 4  ;;  %v3657_v37 = vrot.slane %v3655_v20, 5  ;;  %v4678_v44 = vpop.f32.mrf.mxu0 }
 0x179   : > { %v1111_v60 = vshrl.u32 %v974_v48, 16  ;;  %v1109_v46 = vrot.slane %v6602_v8, 4  ;;  %v1114_v16 = vshll.u32 %v974_v48, 16  ;;  %v4673_v3 = vadd.f32 %v4672_v59, %v4671_v4  ;;  %v3444_v52 = vld [vmem:[#allocation2 + $0x54] sm:$0xf] }
 0x17a   : > { %v5209_v22 = vld [vmem:[#allocation3 + $0x98] ss:$12 sps:$4 sm:$0xff]   ;;  %v3652_v43 = vor.u32 %v3651_v27, %v3647_v12  ;;  %v1612_v5 = vsel %vm5712_vm14, %v1607_v29, %v1611_v47  ;;  %v1120_v54 = vshrl.u32 %v975_v38, 16  ;;  %v1123_v42 = vshll.u32 %v975_v38, 16  ;;  %v5219_v20 = vld [vmem:[#allocation3] ss:$12 sps:$4 sm:$0xff]  }
 0x17b   : > { %3687 = vst [vmem:[#allocation3 + $0x98] sm:$0xf] %v3628_v39  ;;  %3688 = vst [vmem:[#allocation3 + $0xa4] sm:$0xf] %v3638_v7  ;;  %v1113_v2 = vrot.slane %v1111_v60, 7  ;;  %4952 = vmatprep.mubr.bf16.mxu0 %v5209_v22  ;;  %v3643_v13 = vrot.slane %v3642_v19, 4  ;;  %v6676_v61 = vadd.f32 %v6644_v30, %v2686_v18  ;;  %v6678_v58 = vadd.f32 %v4673_v3, %v2689_v45 }
 0x17c   : > { %1644 = vst [vmem:[#allocation3 + $0xbc] sm:$0xf] %v1612_v5  ;;  %v3247_v51 = vsel %vm6335_vm4, %v3230_v31, 0  ;;  %v3248_v8 = vsel %vm958_vm11, %v3231_v23, 0  ;;  %v3653_v17 = vrot.slane %v3652_v43, 4  ;;  %v1122_v4 = vrot.slane %v1120_v54, 7 }
 0x17d   : > { %v1116_v55 = vor.u32 %v1114_v16, %v1113_v2  ;;  %v1118_v14 = vrot.slane %v1113_v2, 4  ;;  %v3381_v15 = vshrl.u32 %v3247_v51, 16  ;;  %v3384_v25 = vshll.u32 %v3247_v51, 16  ;;  %v5221_v47 = vld [vmem:[#allocation3 + $0x4] ss:$12 sps:$4 sm:$0xff]   ;;  %v4914_v27 = vpop.f32.mrf.mxu1 }
 0x17e   : > { %v3390_v35 = vshrl.u32 %v3248_v8, 16  ;;  %v1125_v36 = vor.u32 %v1123_v42, %v1122_v4  ;;  %v3393_v62 = vshll.u32 %v3248_v8, 16  ;;  %v4676_v0 = vadd.f32 %v4675_v21, %v4674_v34  ;;  %v5213_v31 = vld [vmem:[#allocation3 + $0xac] ss:$12 sps:$4 sm:$0xff]   ;;  %v5222_v23 = vld [vmem:[#allocation3 + $0x8] ss:$12 sps:$4 sm:$0xff]  }
 0x17f   : > { %v1117_v24 = vsel %vm5748_vm2, %v1109_v46, %v1116_v55  ;;  %v3383_v6 = vrot.slane %v3381_v15, 7  ;;  %v3648_v49 = vsel %vm5712_vm14, %v3643_v13, %v3647_v12  ;;  %v3658_v11 = vsel %vm5712_vm14, %v3653_v17, %v3657_v37  ;;  %v5224_v12 = vld [vmem:[#allocation3 + $0x1c] ss:$12 sps:$4 sm:$0xff]   ;;  %3109 = vmatprep.mubr.bf16.mxu1 %v5213_v31  ;;  %v2702_v38 = vpop.f32.mrf.mxu1  ;;  %v4680_v56 = vpop.f32.mrf.mxu0  ;;  %v5223_v29 = vld [vmem:[#allocation3 + $0x20] ss:$12 sps:$4 sm:$0xff]  }
 0x180   : > { %1157 = vst [vmem:[#allocation3 + $0xa8] sm:$0xf] %v1117_v24  ;;  %v3392_v39 = vrot.slane %v3390_v35, 7  ;;  %v1126_v10 = vsel %vm5748_vm2, %v1118_v14, %v1125_v36  ;;  %v4679_v50 = vadd.f32 %v4678_v44, %v4677_v53  ;;  %v3379_v30 = vrot.slane %v6619_v41, 4  ;;  %v5226_v37 = vld [vmem:[#allocation3 + $0x18] ss:$12 sps:$4 sm:$0xff]  }
 0x181   : > { %1158 = vst [vmem:[#allocation3 + $0xb4] sm:$0xf] %v1126_v10  ;;  %v3388_v1 = vrot.slane %v3383_v6, 4  ;;  %v6687_v57 = vadd.f32 %v4910_v26, %v4676_v0  ;;  %v3386_v7 = vor.u32 %v3384_v25, %v3383_v6  ;;  %v5230_v60 = vld [vmem:[#allocation3 + $0x38] ss:$12 sps:$4 sm:$0xff]   ;;  %v4681_v26 = vpop.f32.mrf.mxu0  ;;  %v4915_v43 = vpop.f32.mrf.mxu1 }
 0x182   : > { %v3395_v40 = vor.u32 %v3393_v62, %v3392_v39  ;;  %v6689_v63 = vadd.f32 %v4911_v9, %v4679_v50  ;;  %v5227_v34 = vld [vmem:[#allocation3 + $0x34] ss:$12 sps:$4 sm:$0xff]   ;;  %v4682_v22 = vadd.f32 %v4681_v26, %v4680_v56  ;;  %v5231_v54 = vld [vmem:[#allocation3 + $0x50] ss:$12 sps:$4 sm:$0xff]   ;;  %v5232_v13 = vld [vmem:[#allocation3 + $0x4c] ss:$12 sps:$4 sm:$0xff]  }
 0x183   : > { %v5211_v59 = vld [vmem:[#allocation3 + $0xb0] ss:$12 sps:$4 sm:$0xff]   ;;  %v3387_v33 = vsel %vm5748_vm2, %v3379_v30, %v3386_v7  ;;  %v4683_v46 = vpop.f32.mrf.mxu0  ;;  %v2705_v2 = vpop.f32.mrf.mxu1  ;;  %v5238_v21 = vld [vmem:[#allocation3 + $0x68] ss:$12 sps:$4 sm:$0xff]   ;;  %v5239_v51 = vld [vmem:[#allocation3 + $0x80] ss:$12 sps:$4 sm:$0xff]  }
 0x184   : > { %3689 = vst [vmem:[#allocation3 + $0xb0] sm:$0xf] %v3648_v49  ;;  %3690 = vst [vmem:[#allocation3 + $0xbc] sm:$0xf] %v3658_v11  ;;  %4953 = vmatmul.mubr.bf16.gmra.mxu0 %v5211_v59  ;;  %v3396_v41 = vsel %vm5748_vm2, %v3388_v1, %v3395_v40  ;;  %v6695_v16 = vadd.f32 %v4682_v22, %v2702_v38  ;;  %v5229_v18 = vld [vmem:[#allocation3 + $0x30] ss:$12 sps:$4 sm:$0xff]  }
 0x185   : > { %4076 = vmatprep.mubr.bf16.mxu0 %v5221_v47  ;;  %v4684_v3 = vpop.f32.mrf.mxu0  ;;  %v5234_v8 = vld [vmem:[#allocation3 + $0x48] ss:$12 sps:$4 sm:$0xff]   ;;  %v5246_v17 = vld [vmem:[#allocation3 + $0x98] ss:$12 sps:$4 sm:$0xff]   ;;  %v5237_v9 = vld [vmem:[#allocation3 + $0x60] ss:$12 sps:$4 sm:$0xff]  }
 0x186   : > { %v4685_v5 = vadd.f32 %v4684_v3, %v4683_v46  ;;  %v5235_v55 = vld [vmem:[#allocation3 + $0x64] ss:$12 sps:$4 sm:$0xff]   ;;  %v5240_v15 = vld [vmem:[#allocation3 + $0x7c] ss:$12 sps:$4 sm:$0xff]   ;;  %v5243_v6 = vld [vmem:[#allocation3 + $0x94] ss:$12 sps:$4 sm:$0xff]  }
 0x187   : > { %v1673_v28 = vld [vmem:[#allocation3 + $0xa8] sm:$0xff]  ;;  %v5242_v44 = vld [vmem:[#allocation3 + $0x78] ss:$12 sps:$4 sm:$0xff]   ;;  %v5245_v0 = vld [vmem:[#allocation3 + $0x90] ss:$12 sps:$4 sm:$0xff]  }
 0x188   : > { %v1675_v48 = vld [vmem:[#allocation3 + $0xb4] sm:$0xff]  ;;  %3427 = vst [vmem:[#allocation3 + $0xa8] sm:$0xf] %v3387_v33  ;;  %3459 = vst [vmem:[#allocation3 + $0xac] sm:$0xf] %v3443_v32  ;;  %v6697_v42 = vadd.f32 %v4685_v5, %v2705_v2 }
 0x189   : > { %3428 = vst [vmem:[#allocation3 + $0xb4] sm:$0xf] %v3396_v41  ;;  %3460 = vst [vmem:[#allocation3 + $0xb8] sm:$0xf] %v3444_v52  ;;  %v4490_v19 = vcombine.low %v1673_v28, %v1675_v48 }
 0x18b   : > { %3110 = vmatmul.mubr.bf16.gmra.mxu1 %v4490_v19  ;;  %v5247_v4 = vld [vmem:[#allocation3 + $0xb0] ss:$12 sps:$4 sm:$0xff]  }
 0x18c   : > { %4077 = vmatmul.mubr.bf16.vlgmr.msra.gmra.mxu0 %v5219_v20  ;;  %4972 = vmatprep.mubr.bf16.mxu1 %v5222_v23 }
 0x18d   : > { %4084 = vmatprep.mubr.bf16.mxu0 %v5224_v12 }
 0x190   : > { %v5248_v49 = vld [vmem:[#allocation3 + $0xac] ss:$12 sps:$4 sm:$0xff]   ;;  %v5250_v7 = vld [vmem:[#allocation3 + $0xa8] ss:$12 sps:$4 sm:$0xff]  }
 0x193   : > { %4973 = vmatmul.mubr.bf16.vlgmr.msra.gmra.mxu1 %v5223_v29 }
 0x194   : > { %4085 = vmatmul.mubr.bf16.gmra.mxu0 %v5226_v37  ;;  %4976 = vmatprep.mubr.bf16.mxu1 %v5230_v60 }
 0x195   : > { %4092 = vmatprep.mubr.bf16.mxu0 %v5227_v34 }
 0x196   : > { %v4918_v39 = vpop.f32.mrf.mxu1 }
 0x197   : > { %v4686_v14 = vpop.f32.mrf.mxu0 }
 0x198   : > { %v2718_v11 = vpop.f32.mrf.mxu1 }
 0x199   : > { %v4687_v53 = vpop.f32.mrf.mxu0 }
 0x19a   : > { %v4688_v25 = vadd.f32 %v4687_v53, %v4686_v14  ;;  %v4919_v1 = vpop.f32.mrf.mxu1 }
 0x19b   : > { %4977 = vmatmul.mubr.bf16.gmra.mxu1 %v5231_v54  ;;  %v4689_v35 = vpop.f32.mrf.mxu0 }
 0x19c   : > { %4093 = vmatmul.mubr.bf16.gmra.mxu0 %v5229_v18  ;;  %4980 = vmatprep.mubr.bf16.mxu1 %v5238_v21  ;;  %v6699_v24 = vadd.f32 %v4914_v27, %v4688_v25  ;;  %v2721_v28 = vpop.f32.mrf.mxu1 }
 0x19d   : > { %4100 = vmatprep.mubr.bf16.mxu0 %v5232_v13  ;;  %v4690_v36 = vpop.f32.mrf.mxu0 }
 0x19e   : > { %v4691_v62 = vadd.f32 %v4690_v36, %v4689_v35 }
 0x1a0   : > { %v6701_v45 = vadd.f32 %v4915_v43, %v4691_v62 }
 0x1a3   : > { %4981 = vmatmul.mubr.bf16.gmra.mxu1 %v5239_v51 }
 0x1a4   : > { %4101 = vmatmul.mubr.bf16.gmra.mxu0 %v5234_v8  ;;  %4984 = vmatprep.mubr.bf16.mxu1 %v5246_v17 }
 0x1a5   : > { %4108 = vmatprep.mubr.bf16.mxu0 %v5235_v55 }
 0x1ab   : > { %4985 = vmatmul.mubr.bf16.gmra.mxu1 %v5247_v4 }
 0x1ac   : > { %4109 = vmatmul.mubr.bf16.gmra.mxu0 %v5237_v9  ;;  %v4922_v41 = vpop.f32.mrf.mxu1 }
 0x1ad   : > { %4116 = vmatprep.mubr.bf16.mxu0 %v5240_v15 }
 0x1ae   : > { %v4692_v10 = vpop.f32.mrf.mxu0  ;;  %v2734_v52 = vpop.f32.mrf.mxu1 }
 0x1b0   : > { %v4693_v50 = vpop.f32.mrf.mxu0  ;;  %v4923_v48 = vpop.f32.mrf.mxu1 }
 0x1b1   : > { %v4694_v30 = vadd.f32 %v4693_v50, %v4692_v10 }
 0x1b2   : > { %v4695_v47 = vpop.f32.mrf.mxu0  ;;  %v2737_v12 = vpop.f32.mrf.mxu1 }
 0x1b3   : > { %v6703_v59 = vadd.f32 %v4694_v30, %v2718_v11 }
 0x1b4   : > { %4117 = vmatmul.mubr.bf16.gmra.mxu0 %v5242_v44  ;;  %v4696_v40 = vpop.f32.mrf.mxu0  ;;  %v6709_v29 = vpop.f32.mrf.mxu1 }
 0x1b5   : > { %4124 = vmatprep.mubr.bf16.mxu0 %v5243_v6  ;;  %v4697_v32 = vadd.f32 %v4696_v40, %v4695_v47 }
 0x1b6   : > { %v6713_v60 = vpop.f32.mrf.mxu1 }
 0x1b7   : > { %v6705_v33 = vadd.f32 %v4697_v32, %v2721_v28 }
 0x1b8   : > { %v6715_v43 = vpop.f32.mrf.mxu1 }
 0x1b9   : > { %7068 = vst [vmem:[#allocation19_spill] sm:$0xff] %v6705_v33 }
 0x1ba   : > { %v6719_v54 = vpop.f32.mrf.mxu1 }
 0x1bc   : > { %4125 = vmatmul.mubr.bf16.gmra.mxu0 %v5245_v0 }
 0x1bd   : > { %4132 = vmatprep.mubr.bf16.mxu0 %v5248_v49 }
 0x1c3   : > { %v4754_v21 = vpop.f32.mrf.mxu1 }
 0x1c4   : > { %4133 = vmatmul.mubr.bf16.gmra.mxu0 %v5250_v7 }
 0x1c5   : > { %v4755_v17 = vpop.f32.mrf.mxu1 }
 0x1c7   : > { %v6723_v53 = vpop.f32.mrf.mxu1 }
 0x1c9   : > { %v4698_v20 = vpop.f32.mrf.mxu0  ;;  %v6725_v25 = vpop.f32.mrf.mxu1 }
 0x1cb   : > { %v4699_v31 = vpop.f32.mrf.mxu0 }
 0x1cc   : > { %v4700_v23 = vadd.f32 %v4699_v31, %v4698_v20 }
 0x1cd   : > { %v4701_v19 = vpop.f32.mrf.mxu0 }
 0x1ce   : > { %v6707_v27 = vadd.f32 %v4918_v39, %v4700_v23 }
 0x1cf   : > { %v4702_v38 = vpop.f32.mrf.mxu0 }
 0x1d0   : > { %7069 = vst [vmem:[#allocation20_spill] sm:$0xff] %v6707_v27  ;;  %v4703_v56 = vadd.f32 %v4702_v38, %v4701_v19 }
 0x1d1   : > { %v6727_v35 = vpop.f32.mrf.mxu1 }
 0x1d2   : > { %v6711_v37 = vadd.f32 %v4919_v1, %v4703_v56 }
 0x1d3   : > { %v6729_v36 = vpop.f32.mrf.mxu1 }
 0x1d4   : > { %7070 = vst [vmem:[#allocation21_spill] sm:$0xff] %v6711_v37 }
 0x1d5   : > { %v6731_v62 = vpop.f32.mrf.mxu1 }
 0x1d7   : > { %v6733_v44 = vpop.f32.mrf.mxu1 }
 0x1d8   : > { %v4704_v26 = vpop.f32.mrf.mxu0 }
 0x1da   : > { %v4705_v34 = vpop.f32.mrf.mxu0 }
 0x1db   : > { %v4706_v22 = vadd.f32 %v4705_v34, %v4704_v26 }
 0x1dc   : > { %v4707_v46 = vpop.f32.mrf.mxu0 }
 0x1dd   : > { %v6717_v3 = vadd.f32 %v4706_v22, %v2734_v52 }
 0x1de   : > { %v4708_v5 = vpop.f32.mrf.mxu0 }
 0x1df   : > { %7071 = vst [vmem:[#allocation22_spill] sm:$0xff] %v6717_v3  ;;  %v4709_v2 = vadd.f32 %v4708_v5, %v4707_v46 }
 0x1e1   : > { %v6721_v18 = vadd.f32 %v4709_v2, %v2737_v12 }
 0x1e2   : > { %v6735_v6 = vpop.f32.mrf.mxu1 }
 0x1e3   : > { %7072 = vst [vmem:[#allocation23_spill] sm:$0xff] %v6721_v18 }
 0x1e4   : > { %v6737_v39 = vpop.f32.mrf.mxu1 }
 0x1e5   : > { %v4710_v13 = vpop.f32.mrf.mxu0 }
 0x1e6   : > { %v6739_v0 = vpop.f32.mrf.mxu1 }
 0x1e7   : > { %v4711_v51 = vpop.f32.mrf.mxu0 }
 0x1e8   : > { %v4712_v8 = vadd.f32 %v4711_v51, %v4710_v13  ;;  %v6741_v11 = vpop.f32.mrf.mxu1 }
 0x1e9   : > { %v4713_v55 = vpop.f32.mrf.mxu0 }
 0x1ea   : > { %v2743_v14 = vadd.f32 %v4922_v41, %v4712_v8 }
 0x1eb   : > { %v4714_v4 = vpop.f32.mrf.mxu0 }
 0x1ec   : > { %v4715_v9 = vadd.f32 %v4714_v4, %v4713_v55 }
 0x1ee   : > { %v2746_v15 = vadd.f32 %v4923_v48, %v4715_v9 }
 0x1f8   : > { %v4942_v49 = vpop.f32.mrf.mxu0 }
 0x1fa   : > { %v3152_v10 = vpop.f32.mrf.mxu0 }
 0x1fc   : > { %v6745_v30 = vpop.f32.mrf.mxu0 }
 0x1fe   : > { %v3155_v47 = vpop.f32.mrf.mxu0 }
 0x1ff   : > { %v6743_v50 = vpop.f32.mrf.mxu1 }
 0x201   : > { %v6747_v1 = vpop.f32.mrf.mxu1 }
 0x203   : > { %v6749_v7 = vpop.f32.mrf.mxu1 }
 0x205   : > { %v6753_v32 = vpop.f32.mrf.mxu1 }
 0x211   : > { %v6751_v40 = vpop.f32.mrf.mxu0 }
 0x213   : > { %v6755_v28 = vpop.f32.mrf.mxu0 }
 0x215   : > { %v6759_v52 = vpop.f32.mrf.mxu0 }
 0x217   : > { %v6763_v48 = vpop.f32.mrf.mxu0 }
 0x21b   : > { %v6757_v41 = vpop.f32.mrf.mxu1 }
 0x21d   : > { %v6761_v20 = vpop.f32.mrf.mxu1 }
 0x21f   : > { %v6765_v31 = vpop.f32.mrf.mxu1 }
 0x220   : > { %7073 = vst [vmem:[#allocation24_spill] sm:$0xff] %v6765_v31 }
 0x221   : > { %v6769_v19 = vpop.f32.mrf.mxu1 }
 0x222   : > { %7075 = vst [vmem:[#allocation26_spill] sm:$0xff] %v6769_v19 }
 0x22a   : > { %v6767_v23 = vpop.f32.mrf.mxu0 }
 0x22b   : > { %7074 = vst [vmem:[#allocation25_spill] sm:$0xff] %v6767_v23 }
 0x22c   : > { %v6771_v12 = vpop.f32.mrf.mxu0 }
 0x22e   : > { %v6775_v56 = vpop.f32.mrf.mxu0 }
 0x22f   : > { %7077 = vst [vmem:[#allocation28_spill] sm:$0xff] %v6775_v56  ;;  %v4750_v56 = vadd.f32 %v6713_v60, %v6709_v29 }
 0x230   : > { %v6779_v34 = vpop.f32.mrf.mxu0 }
 0x231   : > { %7079 = vst [vmem:[#allocation30_spill] sm:$0xff] %v6779_v34  ;;  %v4756_v34 = vadd.f32 %v4755_v17, %v4754_v21 }
 0x233   : > { %v6773_v38 = vpop.f32.mrf.mxu1 }
 0x234   : > { %7076 = vst [vmem:[#allocation27_spill] sm:$0xff] %v6773_v38 }
 0x235   : > { %v6777_v26 = vpop.f32.mrf.mxu1 }
 0x236   : > { %7078 = vst [vmem:[#allocation29_spill] sm:$0xff] %v6777_v26 }
 0x237   : > { %v6781_v22 = vpop.f32.mrf.mxu1 }
 0x238   : > { %7080 = vst [vmem:[#allocation31_spill] sm:$0xff] %v6781_v22 }
 0x239   : > { %v6785_v2 = vpop.f32.mrf.mxu1 }
 0x23a   : > { %7082 = vst [vmem:[#allocation33_spill] sm:$0xff] %v6785_v2 }
 0x244   : > { %v4954_v46 = vpop.f32.mrf.mxu0 }
 0x246   : > { %v6783_v5 = vpop.f32.mrf.mxu0 }
 0x247   : > { %7081 = vst [vmem:[#allocation32_spill] sm:$0xff] %v6783_v5 }
 0x248   : > { %v4955_v13 = vpop.f32.mrf.mxu0 }
 0x24a   : > { %v6787_v51 = vpop.f32.mrf.mxu0 }
 0x24b   : > { %7083 = vst [vmem:[#allocation34_spill] sm:$0xff] %v6787_v51  ;;  %v4790_v8 = vpop.f32.mrf.mxu1  ;;  %v4753_v51 = vadd.f32 %v6719_v54, %v6715_v43 }
 0x24c   : > { %v4828_v55 = vpop.f32.mrf.mxu0 }
 0x24d   : > { %v4791_v4 = vpop.f32.mrf.mxu1  ;;  %v3059_v43 = vadd.f32 %v4753_v51, %v6678_v58 }
 0x24e   : > { %v4792_v9 = vadd.f32 %v4791_v4, %v4790_v8  ;;  %v4829_v18 = vpop.f32.mrf.mxu0  ;;  %v3056_v8 = vadd.f32 %v4750_v56, %v6676_v61 }
 0x24f   : > { %v4793_v3 = vpop.f32.mrf.mxu1  ;;  %v4830_v23 = vadd.f32 %v4829_v18, %v4828_v55  ;;  %v3064_v18 = vadd.f32 %v4756_v34, %v6687_v57 }
 0x250   : > { %v3112_v26 = vadd.f32 %v4792_v9, %v2743_v14  ;;  %v4831_v38 = vpop.f32.mrf.mxu0  ;;  %v3153_v33 = vadd.f32 %v3152_v10, %v3056_v8  ;;  %v4768_v9 = vadd.f32 %v6737_v39, %v6735_v6 }
 0x251   : > { %v4794_v22 = vpop.f32.mrf.mxu1 }
 0x252   : > { %v6791_v37 = vadd.f32 %v4954_v46, %v3112_v26  ;;  %v4795_v5 = vadd.f32 %v4794_v22, %v4793_v3  ;;  %v4832_v2 = vpop.f32.mrf.mxu0  ;;  %v4759_v3 = vadd.f32 %v6725_v25, %v6723_v53  ;;  %v3156_v22 = vadd.f32 %v3155_v47, %v3059_v43 }
 0x253   : > { %v4974_v27 = vpop.f32.mrf.mxu1  ;;  %v4833_v14 = vadd.f32 %v4832_v2, %v4831_v38  ;;  %v4762_v53 = vadd.f32 %v6729_v36, %v6727_v35  ;;  %v4765_v46 = vadd.f32 %v6733_v44, %v6731_v62 }
 0x254   : > { %v3115_v4 = vadd.f32 %v4795_v5, %v2746_v15  ;;  %v4834_v19 = vpop.f32.mrf.mxu0  ;;  %v3161_v15 = vadd.f32 %v4942_v49, %v3064_v18  ;;  %v3067_v57 = vadd.f32 %v4759_v3, %v6689_v63  ;;  %v3080_v3 = vadd.f32 %v4768_v9, %v6699_v24  ;;  %v7091_v9 = vld [vmem:[#allocation27_spill] sm:$0xff] }
 0x255   : > { %v4175_v31 = vpop.f32.mrf.mxu1  ;;  %v3072_v35 = vadd.f32 %v4762_v53, %v6695_v16  ;;  %v3075_v8 = vadd.f32 %v4765_v46, %v6697_v42 }
 0x256   : > { %v6796_v29 = vadd.f32 %v4955_v13, %v3115_v4  ;;  %v4176_v60 = vadd.f32 %v4830_v23, %v4175_v31  ;;  %v4835_v26 = vpop.f32.mrf.mxu0  ;;  %v3164_v49 = vadd.f32 %v6745_v30, %v3067_v57  ;;  %v3177_v42 = vadd.f32 %v6751_v40, %v3080_v3 }
 0x257   : > { %v4975_v21 = vpop.f32.mrf.mxu1  ;;  %v4836_v17 = vadd.f32 %v4835_v26, %v4834_v19  ;;  %v3169_v13 = vadd.f32 %v6755_v28, %v3072_v35  ;;  %v3172_v4 = vadd.f32 %v6763_v48, %v3075_v8  ;;  %v4771_v28 = vadd.f32 %v6741_v11, %v6739_v0  ;;  %v7092_v8 = vld [vmem:[#allocation29_spill] sm:$0xff] }
 0x258   : > { %v4238_v61 = vadd.f32 %v4176_v60, %v3153_v33  ;;  %v4837_v54 = vpop.f32.mrf.mxu0  ;;  %v4774_v48 = vadd.f32 %v6747_v1, %v6743_v50  ;;  %v4777_v40 = vadd.f32 %v6753_v32, %v6749_v7 }
 0x259   : > { %v4178_v10 = vpop.f32.mrf.mxu1  ;;  %v4184_v56 = vadd.f32 %v4974_v27, %v4836_v17 }
 0x25a   : > { %4254 = vst [vmem:[%s5649_s30] sm:$0xff] %v4238_v61  ;;  %v4179_v31 = vadd.f32 %v4833_v14, %v4178_v10  ;;  %v4838_v23 = vpop.f32.mrf.mxu0  ;;  %v3083_v61 = vadd.f32 %v4771_v28, %v6701_v45  ;;  %v4780_v45 = vadd.f32 %v6761_v20, %v6757_v41 }
 0x25b   : > { %v4240_v25 = vadd.f32 %v4184_v56, %v3161_v15  ;;  %v4839_v19 = vadd.f32 %v4838_v23, %v4837_v54  ;;  %v4978_v38 = vpop.f32.mrf.mxu1 }
 0x25c   : > { %v4239_v58 = vadd.f32 %v4179_v31, %v3156_v22  ;;  %v4840_v33 = vpop.f32.mrf.mxu0  ;;  %v3180_v24 = vadd.f32 %v6759_v52, %v3083_v61  ;;  %v3088_v22 = vadd.f32 %v4774_v48, %v6703_v59  ;;  %v7085_v59 = vld [vmem:[#allocation24_spill] sm:$0xff] }
 0x25d   : > { %4256 = vst [vmem:[%s5649_s30 + $0x10] sm:$0xff] %v4240_v25  ;;  %v4187_v27 = vadd.f32 %v4975_v21, %v4839_v19  ;;  %v4191_v34 = vpop.f32.mrf.mxu1  ;;  %v7084_v25 = vld [vmem:[#allocation19_spill] sm:$0xff]  ;;  %v7097_v61 = vld [vmem:[#allocation32_spill] sm:$0xff] }
 0x25e   : > { %4255 = vst [vmem:[%s5649_s30 + $0x8] sm:$0xff] %v4239_v58  ;;  %v4841_v47 = vpop.f32.mrf.mxu0  ;;  %v3185_v23 = vadd.f32 %v6771_v12, %v3088_v22  ;;  %v3091_v19 = vadd.f32 %v4777_v40, %v7084_v25  ;;  %v7086_v58 = vld [vmem:[#allocation26_spill] sm:$0xff] }
 0x25f   : > { %v4241_v63 = vadd.f32 %v4187_v27, %v3164_v49  ;;  %v4842_v36 = vadd.f32 %v4841_v47, %v4840_v33  ;;  %v4979_v5 = vpop.f32.mrf.mxu1  ;;  %v4783_v33 = vadd.f32 %v7086_v58, %v7085_v59  ;;  %v7087_v49 = vld [vmem:[#allocation20_spill] sm:$0xff] }
 0x260   : > { %v4843_v2 = vpop.f32.mrf.mxu0  ;;  %v3096_v27 = vadd.f32 %v4780_v45, %v7087_v49 }
 0x261   : > { %4257 = vst [vmem:[%s5649_s30 + $0x18] sm:$0xff] %v4241_v63  ;;  %v4192_v51 = vadd.f32 %v4842_v36, %v4191_v34  ;;  %v4194_v55 = vpop.f32.mrf.mxu1  ;;  %v7088_v34 = vld [vmem:[#allocation30_spill] sm:$0xff]  ;;  %v7089_v36 = vld [vmem:[#allocation25_spill] sm:$0xff] }
 0x262   : > { %v4844_v30 = vpop.f32.mrf.mxu0  ;;  %v3188_v47 = vadd.f32 %v7088_v34, %v3091_v19 }
 0x263   : > { %v4242_v62 = vadd.f32 %v4192_v51, %v3169_v13  ;;  %v4845_v44 = vadd.f32 %v4844_v30, %v4843_v2  ;;  %v4982_v26 = vpop.f32.mrf.mxu1  ;;  %v7090_v2 = vld [vmem:[#allocation21_spill] sm:$0xff] }
 0x264   : > { %v4846_v16 = vpop.f32.mrf.mxu0  ;;  %v3099_v13 = vadd.f32 %v4783_v33, %v7090_v2 }
 0x265   : > { %4258 = vst [vmem:[%s5649_s30 + $0x20] sm:$0xff] %v4242_v62  ;;  %v4195_v60 = vadd.f32 %v4845_v44, %v4194_v55  ;;  %v4207_v43 = vpop.f32.mrf.mxu1  ;;  %v4786_v62 = vadd.f32 %v7092_v8, %v7091_v9 }
 0x266   : > { %v4847_v14 = vpop.f32.mrf.mxu0 }
 0x267   : > { %v4243_v18 = vadd.f32 %v4195_v60, %v3172_v4  ;;  %v4848_v6 = vadd.f32 %v4847_v14, %v4846_v16  ;;  %v4983_v56 = vpop.f32.mrf.mxu1  ;;  %v7093_v60 = vld [vmem:[#allocation28_spill] sm:$0xff] }
 0x268   : > { %v4849_v39 = vpop.f32.mrf.mxu0  ;;  %v3196_v14 = vadd.f32 %v7093_v60, %v3099_v13 }
 0x269   : > { %4259 = vst [vmem:[%s5649_s30 + $0x28] sm:$0xff] %v4243_v18  ;;  %v4200_v21 = vadd.f32 %v4978_v38, %v4848_v6  ;;  %v4210_v57 = vpop.f32.mrf.mxu1  ;;  %v7094_v6 = vld [vmem:[#allocation31_spill] sm:$0xff] }
 0x26a   : > { %v4850_v17 = vpop.f32.mrf.mxu0 }
 0x26b   : > { %v4244_v54 = vadd.f32 %v4200_v21, %v3177_v42  ;;  %v4851_v0 = vadd.f32 %v4850_v17, %v4849_v39  ;;  %v4986_v12 = vpop.f32.mrf.mxu1  ;;  %v7095_v39 = vld [vmem:[#allocation33_spill] sm:$0xff] }
 0x26c   : > { %v4852_v11 = vpop.f32.mrf.mxu0  ;;  %v4789_v42 = vadd.f32 %v7095_v39, %v7094_v6 }
 0x26d   : > { %4260 = vst [vmem:[%s5649_s30 + $0x30] sm:$0xff] %v4244_v54  ;;  %v4203_v15 = vadd.f32 %v4979_v5, %v4851_v0  ;;  %v3193_v5 = vadd.f32 %v7089_v36, %v3096_v27  ;;  %v4223_v55 = vpop.f32.mrf.mxu1 }
 0x26e   : > { %v4853_v10 = vpop.f32.mrf.mxu0 }
 0x26f   : > { %v4245_v31 = vadd.f32 %v4203_v15, %v3180_v24  ;;  %v4854_v50 = vadd.f32 %v4853_v10, %v4852_v11  ;;  %v4987_v18 = vpop.f32.mrf.mxu1  ;;  %v7098_v15 = vld [vmem:[#allocation23_spill] sm:$0xff] }
 0x270   : > { %v4855_v1 = vpop.f32.mrf.mxu0  ;;  %v3107_v10 = vadd.f32 %v4789_v42, %v7098_v15 }
 0x271   : > { %4261 = vst [vmem:[%s5649_s30 + $0x38] sm:$0xff] %v4245_v31  ;;  %v4208_v52 = vadd.f32 %v4854_v50, %v4207_v43  ;;  %v4226_v24 = vpop.f32.mrf.mxu1  ;;  %v7099_v31 = vld [vmem:[#allocation34_spill] sm:$0xff] }
 0x272   : > { %v4856_v53 = vpop.f32.mrf.mxu0  ;;  %v3204_v50 = vadd.f32 %v7099_v31, %v3107_v10 }
 0x273   : > { %v4246_v38 = vadd.f32 %v4208_v52, %v3185_v23  ;;  %v4857_v7 = vadd.f32 %v4856_v53, %v4855_v1 }
 0x274   : > { %v4858_v32 = vpop.f32.mrf.mxu0 }
 0x275   : > { %4262 = vst [vmem:[%s5649_s30 + $0x40] sm:$0xff] %v4246_v38  ;;  %v4211_v41 = vadd.f32 %v4857_v7, %v4210_v57 }
 0x276   : > { %v4859_v20 = vpop.f32.mrf.mxu0 }
 0x277   : > { %v4247_v46 = vadd.f32 %v4211_v41, %v3188_v47  ;;  %v4860_v35 = vadd.f32 %v4859_v20, %v4858_v32 }
 0x278   : > { %v4861_v63 = vpop.f32.mrf.mxu0 }
 0x279   : > { %4263 = vst [vmem:[%s5649_s30 + $0x48] sm:$0xff] %v4247_v46  ;;  %v4216_v51 = vadd.f32 %v4982_v26, %v4860_v35  ;;  %v7096_v26 = vld [vmem:[#allocation22_spill] sm:$0xff] }
 0x27a   : > { %v4862_v30 = vpop.f32.mrf.mxu0  ;;  %v3104_v21 = vadd.f32 %v4786_v62, %v7096_v26 }
 0x27b   : > { %v4248_v44 = vadd.f32 %v4216_v51, %v3193_v5  ;;  %v4863_v16 = vadd.f32 %v4862_v30, %v4861_v63 }
 0x27c   : > { %v4864_v4 = vpop.f32.mrf.mxu0  ;;  %v3201_v54 = vadd.f32 %v7097_v61, %v3104_v21 }
 0x27d   : > { %4264 = vst [vmem:[%s5649_s30 + $0x50] sm:$0xff] %v4248_v44  ;;  %v4219_v28 = vadd.f32 %v4983_v56, %v4863_v16 }
 0x27e   : > { %v4865_v3 = vpop.f32.mrf.mxu0 }
 0x27f   : > { %v4249_v17 = vadd.f32 %v4219_v28, %v3196_v14  ;;  %v4866_v43 = vadd.f32 %v4865_v3, %v4864_v4 }
 0x280   : > { %v4867_v48 = vpop.f32.mrf.mxu0 }
 0x281   : > { %4265 = vst [vmem:[%s5649_s30 + $0x58] sm:$0xff] %v4249_v17  ;;  %v4224_v0 = vadd.f32 %v4866_v43, %v4223_v55 }
 0x282   : > { %v4868_v11 = vpop.f32.mrf.mxu0 }
 0x283   : > { %v4250_v56 = vadd.f32 %v4224_v0, %v3201_v54  ;;  %v4869_v40 = vadd.f32 %v4868_v11, %v4867_v48 }
 0x284   : > { %v4870_v22 = vpop.f32.mrf.mxu0 }
 0x285   : > { %4266 = vst [vmem:[%s5649_s30 + $0x60] sm:$0xff] %v4250_v56  ;;  %v4227_v1 = vadd.f32 %v4869_v40, %v4226_v24 }
 0x286   : > { %v4871_v45 = vpop.f32.mrf.mxu0 }
 0x287   : > { %v4251_v23 = vadd.f32 %v4227_v1, %v3204_v50  ;;  %v4872_v52 = vadd.f32 %v4871_v45, %v4870_v22 }
 0x288   : > { %v4873_v53 = vpop.f32.mrf.mxu0 }
 0x289   : > { %4267 = vst [vmem:[%s5649_s30 + $0x68] sm:$0xff] %v4251_v23  ;;  %v4232_v57 = vadd.f32 %v4986_v12, %v4872_v52 }
 0x28a   : > { %v4874_v25 = vpop.f32.mrf.mxu0 }
 0x28b   : > { %v4252_v19 = vadd.f32 %v4232_v57, %v6791_v37  ;;  %v4875_v38 = vadd.f32 %v4874_v25, %v4873_v53 }
 0x28d   : > { %4268 = vst [vmem:[%s5649_s30 + $0x70] sm:$0xff] %v4252_v19  ;;  %v4235_v7 = vadd.f32 %v4987_v18, %v4875_v38 }
 0x28f   : > { %v4253_v32 = vadd.f32 %v4235_v7, %v6796_v29 }
 0x291   : > { %4269 = vst [vmem:[%s5649_s30 + $0x78] sm:$0xff] %v4253_v32 }
 0x292   : > { %5318 = shalt.err (!%p5315_p6)
}
 0x293   : > { %s5319_s21 = scalar_lea.hbm %s6869_s5, 2048  ;;  %s5323_s11 = scalar_lea.hbm %s6927_s4, 8192 }
 0x294   : > { %p5320_p7 = scmp.ne.s32.totalorder %s6869_s5, %s5319_s21  ;;  %p5324_p12 = scmp.lt.s32.totalorder %s6869_s5, %s6927_s4 }
 0x295   : > { %p5325_p1 = scmp.lt.s32.totalorder %s5323_s11, %s5319_s21 }
 0x296   : > { %p5321_p9 = pnand %p5320_p7, %p5533_p11 }
 0x297   : > { %p5326_p8 = por %p5325_p1, %p5324_p12 }
 0x298   : > { %p5322_p10 = pneg %p5321_p9 }
 0x29a   : > { %p5327_p13 = pnand %p5326_p8, %p5322_p10 }
 0x29c   : > { %5330 = shalt.err (!%p5327_p13)
}
 0x29d   : > { %s5418_s12 = smov 128   ;;  %s5419_s30 = smov 8  }
 0x29e   : > { %4998 = dma.vmem_to_hbm [thread:$0]  (%p5533_p11), %s6863_s10, 2048, %s6869_s5, %s4271_s6, %s5418_s12, %s5418_s12, %s5419_s30  }
 0x29f PF: > { %s7100_s7 = sld [smem:[#allocation15_spill]] }
 0x2a0   : > { %s7101_s8 = sld [smem:[#allocation13_spill]] }
 0x2a1   : > { %s7102_s9 = sld [smem:[#allocation16_spill]] }
 0x2a5   : > { %p5015_p0 = scmp.ge.s32.totalorder %s7100_s7, 2 }
 0x2a6   : > { %s4301_s14 = sand.u32 1, %s7101_s8  }
 0x2a7   : > { %p7103_p2 = scmp.ne.s32.totalorder %s7102_s9, 0  ;;  %s4302_s18 = scalar_lea.sflag [#allocation6], %s4301_s14 }
 0x2a9   : > { %p5009_p3 = pnand %p5015_p0, %p7103_p2 }
 0x2ab   : > { %p5010_p5 = pneg %p5009_p3 }
 0x2ad   : > { %5372 = dma.done.wait (%p5010_p5), %s4302_s18, 2048  }
 0x2ae   : > { %5374 = vsyncadd (%p5010_p5), %s4302_s18, 4294965248  ;;  %s21_s22 = sadd.s32 1, %s7100_s7   ;;  %s7104_s19 = sld [smem:[#allocation14_spill]] }
 0x2af   : > { %p18_p4 = scmp.ge.s32.totalorder %s21_s22, 6   ;;  %s7105_s23 = sld [smem:[#allocation17_spill]] }
 0x2b0   : > { %s7106_s21 = sld [smem:[#allocation18_spill]]  ;;  %s7107_s15 = smov %s5381_s16 }
 0x2b1   : > { %s7108_s16 = smov %s5385_s17  ;;  %s7109_s17 = smov %s5550_s26 }
 0x2b2   : > { %s7110_s18 = smov %s5397_s20  ;;  %20 = sbr.rel (!%p18_p4) target bundleno = 10 (0xa), region = 96 }
 0x2b5   : > { %s7111_s20 = smov %s7105_s23 }
 0x2b7   :  { %4307 = vsyncpa [#allocation5], 1 }
 0x2b8   :  { %4309 = vsyncpa [#allocation5 + $0x1], 1 }
 0x2b9   :  { %4310 = vsyncpa [#allocation8], 1 }
 0x2ba   :  { %4311 = vsyncpa [#allocation6], 1 }
 0x2bb   :  { %4313 = vsyncpa [#allocation6 + $0x1], 1 }

</bundles_post_ra>
